<compile_context>
chip_gen: v5e
topology: v5e:2x2
jax: 0.10.0
libtpu: 0.0.40
codegen_flags: <defaults>
</compile_context>

<pallas_src>
import functools

import numpy as np
import jax
import jax.numpy as jnp
from jax import lax
from jax.experimental import pallas as pl
from jax.experimental.pallas import tpu as pltpu

EPS = 1e-5
LANE = 128


def _round_up(x, m):
    return ((x + m - 1) // m) * m


# ----------------------------------------------------------------------------
# Pallas kernel: 3x3 "same" conv as a single im2col matmul (+ optional fused
# BN+ReLU on the input, + one-pass per-image BN moments on the output)
# ----------------------------------------------------------------------------
def _conv3x3_kernel(x_ref, sc_ref, sh_ref, w_ref, y_ref, st_ref,
                    xp_ref, patch_ref, *, apply_bn_relu):
    # x_ref    : (H, W, C)      one batch element, NHWC
    # sc_ref   : (1, C)         folded BN scale (unused if not apply_bn_relu)
    # sh_ref   : (1, C)         folded BN shift
    # w_ref    : (9*C, CO)      conv weights, rows ordered (dy, dx, c)
    # y_ref    : (H, W, CO)     raw conv output (pre-BN), CO lane-dense (128k)
    # st_ref   : (2, CO)        [sum, sum_of_squares] over this image
    # xp_ref   : VMEM (H+2, W+2, C)  zero-halo padded copy of the input
    # patch_ref: VMEM (H*W, 9*C)     im2col patch
    H, W, C = x_ref.shape

    x = x_ref[...]
    if apply_bn_relu:  # previous layer's BN + ReLU fused into this kernel
        x = jnp.maximum(x * sc_ref[0] + sh_ref[0], 0.0)

    # Zero only the four halo strips, then write the interior once.
    xp_ref[0:1, :, :] = jnp.zeros((1, W + 2, C), jnp.float32)
    xp_ref[H + 1:H + 2, :, :] = jnp.zeros((1, W + 2, C), jnp.float32)
    xp_ref[:, 0:1, :] = jnp.zeros((H + 2, 1, C), jnp.float32)
    xp_ref[:, W + 1:W + 2, :] = jnp.zeros((H + 2, 1, C), jnp.float32)
    xp_ref[1:H + 1, 1:W + 1, :] = x

    # im2col: materialize the 9 shifted taps once into the patch scratch.
    for t in range(9):
        dy, dx = t // 3, t % 3
        piece = xp_ref[dy:dy + H, dx:dx + W, :]
        patch_ref[:, t * C:(t + 1) * C] = piece.reshape(H * W, C)

    # The whole 3x3 conv is a single MXU matmul (K = 9*C).
    acc = jnp.dot(patch_ref[...], w_ref[...],
                  preferred_element_type=jnp.float32)          # (H*W, CO)

    y_ref[...] = acc.reshape(H, W, -1)
    # One-pass moments for BatchNorm (cross-batch reduction done outside).
    st_ref[0:1, :] = jnp.sum(acc, axis=0, keepdims=True)
    st_ref[1:2, :] = jnp.sum(acc * acc, axis=0, keepdims=True)


def _conv3x3_bn_stats(x_nhwc, scale, shift, w_mat, *, apply_bn_relu):
    """3x3 'same' conv over NHWC input, one grid step per batch element.

    Returns (raw conv output (N,H,W,CO), per-image moments (N,2,CO))."""
    N, H, W, C = x_nhwc.shape
    K, CO = w_mat.shape
    assert K == 9 * C

    kern = functools.partial(_conv3x3_kernel, apply_bn_relu=apply_bn_relu)
    flops = int(2 * N * H * W * K * CO)
    bytes_accessed = int(4 * (x_nhwc.size + w_mat.size
                              + N * H * W * CO + N * 2 * CO))

    return pl.pallas_call(
        kern,
        out_shape=(jax.ShapeDtypeStruct((N, H, W, CO), jnp.float32),
                   jax.ShapeDtypeStruct((N, 2, CO), jnp.float32)),
        grid=(N,),
        in_specs=[
            pl.BlockSpec((None, H, W, C), lambda i: (i, 0, 0, 0)),
            pl.BlockSpec((1, C), lambda i: (0, 0)),
            pl.BlockSpec((1, C), lambda i: (0, 0)),
            pl.BlockSpec((K, CO), lambda i: (0, 0)),
        ],
        out_specs=(
            pl.BlockSpec((None, H, W, CO), lambda i: (i, 0, 0, 0)),
            pl.BlockSpec((None, 2, CO), lambda i: (i, 0, 0)),
        ),
        scratch_shapes=[
            pltpu.VMEM((H + 2, W + 2, C), jnp.float32),   # padded input
            pltpu.VMEM((H * W, 9 * C), jnp.float32),      # im2col patch
        ],
        compiler_params=pltpu.CompilerParams(
            dimension_semantics=("parallel",),            # megacore on v7x
            vmem_limit_bytes=64 * 1024 * 1024),
        cost_estimate=pl.CostEstimate(flops=flops, transcendentals=0,
                                      bytes_accessed=bytes_accessed),
    )(x_nhwc, scale, shift, w_mat)


# ----------------------------------------------------------------------------
# BN helpers (tiny cross-batch reduction + gamma/beta folding — JAX glue)
# ----------------------------------------------------------------------------
def _fold_bn(stats, gamma, beta, count):
    s = jnp.sum(stats[:, 0, :], axis=0)
    sq = jnp.sum(stats[:, 1, :], axis=0)
    mean = s / count
    var = sq / count - mean * mean          # biased, training-mode batch stats
    scale = gamma * lax.rsqrt(var + EPS)
    shift = beta - mean * scale
    return scale, shift


# ----------------------------------------------------------------------------
# DoubleConv: (conv3x3 -> BN -> ReLU) x 2, channel-padded to lane width
# ----------------------------------------------------------------------------
def double_conv_pallas(x_nhwc, w1, g1, b1, w2, g2, b2):
    """x_nhwc: (N,H,W,Cin) f32; w* HWIO; g*/b* shape (C,). Returns NHWC out."""
    N, H, W, Cin = x_nhwc.shape
    Cmid, Cout = w1.shape[-1], w2.shape[-1]
    CPm = _round_up(Cmid, LANE)
    CPo = _round_up(Cout, LANE)
    count = float(N * H * W)

    # conv1 weights -> (9*Cin, CPm); pad output channels with zeros.
    w1m = jnp.pad(w1.reshape(9 * Cin, Cmid), ((0, 0), (0, CPm - Cmid)))
    # conv2 weights -> (9*CPm, CPo); pad both input and output channels.
    w2p = jnp.pad(w2, ((0, 0), (0, 0), (0, CPm - Cmid), (0, CPo - Cout)))
    w2m = w2p.reshape(9 * CPm, CPo)
    # Padded gammas/betas are zero -> padded channels stay exactly 0.
    g1p = jnp.pad(g1.reshape(-1), (0, CPm - Cmid))
    b1p = jnp.pad(b1.reshape(-1), (0, CPm - Cmid))
    g2p = jnp.pad(g2.reshape(-1), (0, CPo - Cout))
    b2p = jnp.pad(b2.reshape(-1), (0, CPo - Cout))

    one = jnp.ones((1, Cin), jnp.float32)      # dummy scale/shift (unused)
    zero = jnp.zeros((1, Cin), jnp.float32)

    # conv1 (raw) + per-image moments
    y1, st1 = _conv3x3_bn_stats(x_nhwc, one, zero, w1m, apply_bn_relu=False)
    sc1, sh1 = _fold_bn(st1, g1p, b1p, count)

    # BN1 + ReLU fused into conv2, + per-image moments
    y2, st2 = _conv3x3_bn_stats(y1, sc1.reshape(1, CPm), sh1.reshape(1, CPm),
                                w2m, apply_bn_relu=True)
    sc2, sh2 = _fold_bn(st2, g2p, b2p, count)

    # Final BN2 + ReLU + channel un-pad (XLA fuses this into one pass together
    # with the NHWC->NCHW transpose in the caller).
    return jnp.maximum(y2 * sc2 + sh2, 0.0)[..., :Cout]


# ----------------------------------------------------------------------------
# Bilinear (align_corners=True) interpolation matrix — exact F.interpolate map
# ----------------------------------------------------------------------------
def bilinear_matrix(n_in, n_out):
    A = np.zeros((n_out, n_in), np.float32)
    if n_out == 1 or n_in == 1:
        A[:, 0] = 1.0
        return A
    scale = (n_in - 1) / (n_out - 1)
    for i in range(n_out):
        s = i * scale
        i0 = min(int(np.floor(s)), n_in - 1)
        i1 = min(i0 + 1, n_in - 1)
        w = s - i0
        A[i, i0] += 1.0 - w
        A[i, i1] += w
    return A


def _upsample_cat(x1, x2):
    """Upsample x1 2x (bilinear, align_corners=True), pad/crop to x2's spatial
    size (PyTorch F.pad semantics), concat [x2, x1u] on channels (NCHW)."""
    N, C1, H1, W1 = x1.shape
    H2, W2 = x2.shape[2], x2.shape[3]
    Ah = jnp.asarray(bilinear_matrix(H1, 2 * H1))
    Aw = jnp.asarray(bilinear_matrix(W1, 2 * W1))
    x1u = jnp.einsum('Hh,nchw,Ww->ncHW', Ah, x1, Aw)
    dy = H2 - x1u.shape[2]
    dx = W2 - x1u.shape[3]
    if dy != 0 or dx != 0:   # lax.pad handles negative widths (crop), like F.pad
        x1u = lax.pad(x1u, jnp.array(0.0, x1u.dtype),
                      ((0, 0, 0), (0, 0, 0),
                       (dy // 2, dy - dy // 2, 0),
                       (dx // 2, dx - dx // 2, 0)))
    return jnp.concatenate([x2, x1u], axis=1)


# ----------------------------------------------------------------------------
# `Up.forward(x1, x2)` — NCHW in / NCHW out, like the PyTorch module
# ----------------------------------------------------------------------------
def up_forward(x1, x2, params):
    w1, g1, b1, w2, g2, b2 = params
    x = _upsample_cat(x1, x2)                       # (N, Cin, H, W)
    x_nhwc = jnp.transpose(x, (0, 2, 3, 1))         # NHWC for the kernel
    out_nhwc = double_conv_pallas(x_nhwc, w1, g1, b1, w2, g2, b2)
    return jnp.transpose(out_nhwc, (0, 3, 1, 2))    # back to NCHW


# ----------------------------------------------------------------------------
# Pure-JAX reference (for correctness check)
# ----------------------------------------------------------------------------
def up_forward_ref(x1, x2, params):
    w1, g1, b1, w2, g2, b2 = params
    x = _upsample_cat(x1, x2)

    def conv_bn_relu(x, w_hwio, g, b):
        y = lax.conv_general_dilated(
            x, w_hwio, window_strides=(1, 1), padding='SAME',
            dimension_numbers=('NCHW', 'HWIO', 'NCHW'))
        mean = jnp.mean(y, axis=(0, 2, 3), keepdims=True)
        var = jnp.mean((y - mean) ** 2, axis=(0, 2, 3), keepdims=True)
        y = (y - mean) * lax.rsqrt(var + EPS)
        y = y * g.reshape(1, -1, 1, 1) + b.reshape(1, -1, 1, 1)
        return jnp.maximum(y, 0.0)

    x = conv_bn_relu(x, w1, g1, b1)
    x = conv_bn_relu(x, w2, g2, b2)
    return x


# ----------------------------------------------------------------------------
if __name__ == "__main__":
    # Up(in_ch=8, out_ch=4, upsample=True):
    #   x1: (N, in_ch//2, H, W),  x2: (N, in_ch//2, 2H, 2W)
    N, C_half, H1, W1 = 2, 4, 8, 8
    in_ch, out_ch = 2 * C_half, 4

    key = jax.random.PRNGKey(0)
    k1, k2, kw1, kw2, kg1, kb1, kg2, kb2 = jax.random.split(key, 8)

    x1 = jax.random.normal(k1, (N, C_half, H1, W1), jnp.float32)
    x2 = jax.random.normal(k2, (N, C_half, 2 * H1, 2 * W1), jnp.float32)

    # Conv weights stored HWIO (kh, kw, Cin, Cout); BN affine params (C,).
    w1 = 0.2 * jax.random.normal(kw1, (3, 3, in_ch, out_ch), jnp.float32)
    w2 = 0.2 * jax.random.normal(kw2, (3, 3, out_ch, out_ch), jnp.float32)
    g1 = 1.0 + 0.1 * jax.random.normal(kg1, (out_ch,), jnp.float32)
    b1 = 0.1 * jax.random.normal(kb1, (out_ch,), jnp.float32)
    g2 = 1.0 + 0.1 * jax.random.normal(kg2, (out_ch,), jnp.float32)
    b2 = 0.1 * jax.random.normal(kb2, (out_ch,), jnp.float32)

    params = (w1, g1, b1, w2, g2, b2)

    out = jax.block_until_ready(jax.jit(up_forward)(x1, x2, params))
    ref = jax.block_until_ready(up_forward_ref(x1, x2, params))

    assert out.shape == (N, out_ch, 2 * H1, 2 * W1), out.shape
    np.testing.assert_allclose(np.asarray(out), np.asarray(ref),
                               rtol=5e-4, atol=5e-4)
    print("KERNEL_OK")
</pallas_src>

<mosaic_0001>
module attributes {stable_mosaic.version = 11 : i64} {
  func.func @_conv3x3_kernel(%arg0: i32, %arg1: memref<1x16x16x8xf32, #tpu.memory_space<vmem>>, %arg2: memref<1x8xf32, #tpu.memory_space<vmem>>, %arg3: memref<1x8xf32, #tpu.memory_space<vmem>>, %arg4: memref<72x128xf32, #tpu.memory_space<vmem>>, %arg5: memref<1x16x16x128xf32, #tpu.memory_space<vmem>>, %arg6: memref<1x2x128xf32, #tpu.memory_space<vmem>>, %arg7: memref<18x18x8xf32, #tpu.memory_space<vmem>>, %arg8: memref<256x72xf32, #tpu.memory_space<vmem>>) attributes {dimension_semantics = [#tpu.dimension_semantics<parallel>], iteration_bounds = array<i64: 2>, scalar_prefetch = 0 : i64, scratch_operands = 2 : i64, tpu.core_type = #tpu.core_type<tc>, window_params = [{transform_indices = @transform_0, window_bounds = array<i64: 1, 16, 16, 8>}, {pipeline_mode = #tpu.pipeline_mode<synchronous>, transform_indices = @transform_1, window_bounds = array<i64: 1, 8>}, {pipeline_mode = #tpu.pipeline_mode<synchronous>, transform_indices = @transform_2, window_bounds = array<i64: 1, 8>}, {pipeline_mode = #tpu.pipeline_mode<synchronous>, transform_indices = @transform_3, window_bounds = array<i64: 72, 128>}, {transform_indices = @transform_4, window_bounds = array<i64: 1, 16, 16, 128>}, {transform_indices = @transform_5, window_bounds = array<i64: 1, 2, 128>}]} {
    %c0 = arith.constant 0 : index
    %c0_0 = arith.constant 0 : index
    %c0_1 = arith.constant 0 : index
    %c0_2 = arith.constant 0 : index
    %0 = vector.load %arg1[%c0, %c0_0, %c0_1, %c0_2] : memref<1x16x16x8xf32, #tpu.memory_space<vmem>>, vector<1x16x16x8xf32>
    %1 = vector.shape_cast %0 : vector<1x16x16x8xf32> to vector<16x16x8xf32>
    %cst = arith.constant 0.000000e+00 : f32
    %2 = vector.broadcast %cst : f32 to vector<1x18x8xf32>
    %c0_3 = arith.constant 0 : index
    %c0_4 = arith.constant 0 : index
    %c0_5 = arith.constant 0 : index
    %3 = vector.load %arg7[%c0_3, %c0_4, %c0_5] : memref<18x18x8xf32, #tpu.memory_space<vmem>>, vector<1x18x8xf32>
    tpu.vector_store %arg7[%c0_3, %c0_4, %c0_5], %2 {strides = array<i32>} : memref<18x18x8xf32, #tpu.memory_space<vmem>>, vector<1x18x8xf32>,
    %cst_6 = arith.constant 0.000000e+00 : f32
    %4 = vector.broadcast %cst_6 : f32 to vector<1x18x8xf32>
    %c17 = arith.constant 17 : index
    %c0_7 = arith.constant 0 : index
    %c0_8 = arith.constant 0 : index
    %5 = vector.load %arg7[%c17, %c0_7, %c0_8] : memref<18x18x8xf32, #tpu.memory_space<vmem>>, vector<1x18x8xf32>
    tpu.vector_store %arg7[%c17, %c0_7, %c0_8], %4 {strides = array<i32>} : memref<18x18x8xf32, #tpu.memory_space<vmem>>, vector<1x18x8xf32>,
    %cst_9 = arith.constant 0.000000e+00 : f32
    %6 = vector.broadcast %cst_9 : f32 to vector<18x1x8xf32>
    %c0_10 = arith.constant 0 : index
    %c0_11 = arith.constant 0 : index
    %c0_12 = arith.constant 0 : index
    %7 = vector.load %arg7[%c0_10, %c0_11, %c0_12] : memref<18x18x8xf32, #tpu.memory_space<vmem>>, vector<18x1x8xf32>
    tpu.vector_store %arg7[%c0_10, %c0_11, %c0_12], %6 {strides = array<i32>} : memref<18x18x8xf32, #tpu.memory_space<vmem>>, vector<18x1x8xf32>,
    %cst_13 = arith.constant 0.000000e+00 : f32
    %8 = vector.broadcast %cst_13 : f32 to vector<18x1x8xf32>
    %c0_14 = arith.constant 0 : index
    %c17_15 = arith.constant 17 : index
    %c0_16 = arith.constant 0 : index
    %9 = vector.load %arg7[%c0_14, %c17_15, %c0_16] : memref<18x18x8xf32, #tpu.memory_space<vmem>>, vector<18x1x8xf32>
    tpu.vector_store %arg7[%c0_14, %c17_15, %c0_16], %8 {strides = array<i32>} : memref<18x18x8xf32, #tpu.memory_space<vmem>>, vector<18x1x8xf32>,
    %c1 = arith.constant 1 : index
    %c1_17 = arith.constant 1 : index
    %c0_18 = arith.constant 0 : index
    %10 = vector.load %arg7[%c1, %c1_17, %c0_18] : memref<18x18x8xf32, #tpu.memory_space<vmem>>, vector<16x16x8xf32>
    tpu.vector_store %arg7[%c1, %c1_17, %c0_18], %1 {strides = array<i32>} : memref<18x18x8xf32, #tpu.memory_space<vmem>>, vector<16x16x8xf32>,
    %c0_19 = arith.constant 0 : index
    %c0_20 = arith.constant 0 : index
    %c0_21 = arith.constant 0 : index
    %11 = vector.load %arg7[%c0_19, %c0_20, %c0_21] : memref<18x18x8xf32, #tpu.memory_space<vmem>>, vector<16x16x8xf32>
    %12 = vector.shape_cast %11 : vector<16x16x8xf32> to vector<256x8xf32>
    %c0_22 = arith.constant 0 : index
    %c0_23 = arith.constant 0 : index
    %13 = vector.load %arg8[%c0_22, %c0_23] : memref<256x72xf32, #tpu.memory_space<vmem>>, vector<256x8xf32>
    tpu.vector_store %arg8[%c0_22, %c0_23], %12 {strides = array<i32>} : memref<256x72xf32, #tpu.memory_space<vmem>>, vector<256x8xf32>,
    %c0_24 = arith.constant 0 : index
    %c1_25 = arith.constant 1 : index
    %c0_26 = arith.constant 0 : index
    %14 = vector.load %arg7[%c0_24, %c1_25, %c0_26] : memref<18x18x8xf32, #tpu.memory_space<vmem>>, vector<16x16x8xf32>
    %15 = vector.shape_cast %14 : vector<16x16x8xf32> to vector<256x8xf32>
    %c0_27 = arith.constant 0 : index
    %c8 = arith.constant 8 : index
    %16 = vector.load %arg8[%c0_27, %c8] : memref<256x72xf32, #tpu.memory_space<vmem>>, vector<256x8xf32>
    tpu.vector_store %arg8[%c0_27, %c8], %15 {strides = array<i32>} : memref<256x72xf32, #tpu.memory_space<vmem>>, vector<256x8xf32>,
    %c0_28 = arith.constant 0 : index
    %c2 = arith.constant 2 : index
    %c0_29 = arith.constant 0 : index
    %17 = vector.load %arg7[%c0_28, %c2, %c0_29] : memref<18x18x8xf32, #tpu.memory_space<vmem>>, vector<16x16x8xf32>
    %18 = vector.shape_cast %17 : vector<16x16x8xf32> to vector<256x8xf32>
    %c0_30 = arith.constant 0 : index
    %c16 = arith.constant 16 : index
    %19 = vector.load %arg8[%c0_30, %c16] : memref<256x72xf32, #tpu.memory_space<vmem>>, vector<256x8xf32>
    tpu.vector_store %arg8[%c0_30, %c16], %18 {strides = array<i32>} : memref<256x72xf32, #tpu.memory_space<vmem>>, vector<256x8xf32>,
    %c1_31 = arith.constant 1 : index
    %c0_32 = arith.constant 0 : index
    %c0_33 = arith.constant 0 : index
    %20 = vector.load %arg7[%c1_31, %c0_32, %c0_33] : memref<18x18x8xf32, #tpu.memory_space<vmem>>, vector<16x16x8xf32>
    %21 = vector.shape_cast %20 : vector<16x16x8xf32> to vector<256x8xf32>
    %c0_34 = arith.constant 0 : index
    %c24 = arith.constant 24 : index
    %22 = vector.load %arg8[%c0_34, %c24] : memref<256x72xf32, #tpu.memory_space<vmem>>, vector<256x8xf32>
    tpu.vector_store %arg8[%c0_34, %c24], %21 {strides = array<i32>} : memref<256x72xf32, #tpu.memory_space<vmem>>, vector<256x8xf32>,
    %c1_35 = arith.constant 1 : index
    %c1_36 = arith.constant 1 : index
    %c0_37 = arith.constant 0 : index
    %23 = vector.load %arg7[%c1_35, %c1_36, %c0_37] : memref<18x18x8xf32, #tpu.memory_space<vmem>>, vector<16x16x8xf32>
    %24 = vector.shape_cast %23 : vector<16x16x8xf32> to vector<256x8xf32>
    %c0_38 = arith.constant 0 : index
    %c32 = arith.constant 32 : index
    %25 = vector.load %arg8[%c0_38, %c32] : memref<256x72xf32, #tpu.memory_space<vmem>>, vector<256x8xf32>
    tpu.vector_store %arg8[%c0_38, %c32], %24 {strides = array<i32>} : memref<256x72xf32, #tpu.memory_space<vmem>>, vector<256x8xf32>,
    %c1_39 = arith.constant 1 : index
    %c2_40 = arith.constant 2 : index
    %c0_41 = arith.constant 0 : index
    %26 = vector.load %arg7[%c1_39, %c2_40, %c0_41] : memref<18x18x8xf32, #tpu.memory_space<vmem>>, vector<16x16x8xf32>
    %27 = vector.shape_cast %26 : vector<16x16x8xf32> to vector<256x8xf32>
    %c0_42 = arith.constant 0 : index
    %c40 = arith.constant 40 : index
    %28 = vector.load %arg8[%c0_42, %c40] : memref<256x72xf32, #tpu.memory_space<vmem>>, vector<256x8xf32>
    tpu.vector_store %arg8[%c0_42, %c40], %27 {strides = array<i32>} : memref<256x72xf32, #tpu.memory_space<vmem>>, vector<256x8xf32>,
    %c2_43 = arith.constant 2 : index
    %c0_44 = arith.constant 0 : index
    %c0_45 = arith.constant 0 : index
    %29 = vector.load %arg7[%c2_43, %c0_44, %c0_45] : memref<18x18x8xf32, #tpu.memory_space<vmem>>, vector<16x16x8xf32>
    %30 = vector.shape_cast %29 : vector<16x16x8xf32> to vector<256x8xf32>
    %c0_46 = arith.constant 0 : index
    %c48 = arith.constant 48 : index
    %31 = vector.load %arg8[%c0_46, %c48] : memref<256x72xf32, #tpu.memory_space<vmem>>, vector<256x8xf32>
    tpu.vector_store %arg8[%c0_46, %c48], %30 {strides = array<i32>} : memref<256x72xf32, #tpu.memory_space<vmem>>, vector<256x8xf32>,
    %c2_47 = arith.constant 2 : index
    %c1_48 = arith.constant 1 : index
    %c0_49 = arith.constant 0 : index
    %32 = vector.load %arg7[%c2_47, %c1_48, %c0_49] : memref<18x18x8xf32, #tpu.memory_space<vmem>>, vector<16x16x8xf32>
    %33 = vector.shape_cast %32 : vector<16x16x8xf32> to vector<256x8xf32>
    %c0_50 = arith.constant 0 : index
    %c56 = arith.constant 56 : index
    %34 = vector.load %arg8[%c0_50, %c56] : memref<256x72xf32, #tpu.memory_space<vmem>>, vector<256x8xf32>
    tpu.vector_store %arg8[%c0_50, %c56], %33 {strides = array<i32>} : memref<256x72xf32, #tpu.memory_space<vmem>>, vector<256x8xf32>,
    %c2_51 = arith.constant 2 : index
    %c2_52 = arith.constant 2 : index
    %c0_53 = arith.constant 0 : index
    %35 = vector.load %arg7[%c2_51, %c2_52, %c0_53] : memref<18x18x8xf32, #tpu.memory_space<vmem>>, vector<16x16x8xf32>
    %36 = vector.shape_cast %35 : vector<16x16x8xf32> to vector<256x8xf32>
    %c0_54 = arith.constant 0 : index
    %c64 = arith.constant 64 : index
    %37 = vector.load %arg8[%c0_54, %c64] : memref<256x72xf32, #tpu.memory_space<vmem>>, vector<256x8xf32>
    tpu.vector_store %arg8[%c0_54, %c64], %36 {strides = array<i32>} : memref<256x72xf32, #tpu.memory_space<vmem>>, vector<256x8xf32>,
    %c0_55 = arith.constant 0 : index
    %c0_56 = arith.constant 0 : index
    %38 = vector.load %arg8[%c0_55, %c0_56] : memref<256x72xf32, #tpu.memory_space<vmem>>, vector<256x72xf32>
    %c0_57 = arith.constant 0 : index
    %c0_58 = arith.constant 0 : index
    %39 = vector.load %arg4[%c0_57, %c0_58] : memref<72x128xf32, #tpu.memory_space<vmem>>, vector<72x128xf32>
    %cst_59 = arith.constant dense<0.000000e+00> : vector<256x128xf32>
    %40 = tpu.matmul %38, %39, %cst_59 {dimension_numbers = #tpu.dot_dimension_numbers<[1], [0], [0], [1], [0, 0, 1, 1], [], []>} : vector<256x72xf32>, vector<72x128xf32>, vector<256x128xf32> -> vector<256x128xf32>
    %41 = vector.shape_cast %40 : vector<256x128xf32> to vector<16x16x128xf32>
    %c0_60 = arith.constant 0 : index
    %c0_61 = arith.constant 0 : index
    %c0_62 = arith.constant 0 : index
    %c0_63 = arith.constant 0 : index
    %42 = vector.load %arg5[%c0_60, %c0_61, %c0_62, %c0_63] : memref<1x16x16x128xf32, #tpu.memory_space<vmem>>, vector<1x16x16x128xf32>
    %43 = vector.shape_cast %42 : vector<1x16x16x128xf32> to vector<16x16x128xf32>
    %44 = vector.shape_cast %41 : vector<16x16x128xf32> to vector<1x16x16x128xf32>
    tpu.vector_store %arg5[%c0_60, %c0_61, %c0_62, %c0_63], %44 {strides = array<i32>} : memref<1x16x16x128xf32, #tpu.memory_space<vmem>>, vector<1x16x16x128xf32>,
    %cst_64 = arith.constant dense<0.000000e+00> : vector<128xf32>
    %45 = vector.multi_reduction <add>, %40, %cst_64 [0] : vector<256x128xf32> to vector<128xf32>
    %46 = vector.shape_cast %45 : vector<128xf32> to vector<1x128xf32>
    %c0_65 = arith.constant 0 : index
    %c0_66 = arith.constant 0 : index
    %c0_67 = arith.constant 0 : index
    %47 = vector.load %arg6[%c0_65, %c0_66, %c0_67] : memref<1x2x128xf32, #tpu.memory_space<vmem>>, vector<1x1x128xf32>
    %48 = vector.shape_cast %47 : vector<1x1x128xf32> to vector<1x128xf32>
    %49 = vector.shape_cast %46 : vector<1x128xf32> to vector<1x1x128xf32>
    tpu.vector_store %arg6[%c0_65, %c0_66, %c0_67], %49 {strides = array<i32>} : memref<1x2x128xf32, #tpu.memory_space<vmem>>, vector<1x1x128xf32>,
    %50 = arith.mulf %40, %40 : vector<256x128xf32>
    %cst_68 = arith.constant dense<0.000000e+00> : vector<128xf32>
    %51 = vector.multi_reduction <add>, %50, %cst_68 [0] : vector<256x128xf32> to vector<128xf32>
    %52 = vector.shape_cast %51 : vector<128xf32> to vector<1x128xf32>
    %c0_69 = arith.constant 0 : index
    %c1_70 = arith.constant 1 : index
    %c0_71 = arith.constant 0 : index
    %53 = vector.load %arg6[%c0_69, %c1_70, %c0_71] : memref<1x2x128xf32, #tpu.memory_space<vmem>>, vector<1x1x128xf32>
    %54 = vector.shape_cast %53 : vector<1x1x128xf32> to vector<1x128xf32>
    %55 = vector.shape_cast %52 : vector<1x128xf32> to vector<1x1x128xf32>
    tpu.vector_store %arg6[%c0_69, %c1_70, %c0_71], %55 {strides = array<i32>} : memref<1x2x128xf32, #tpu.memory_space<vmem>>, vector<1x1x128xf32>,
    return
  }
  func.func @transform_0(%arg0: i32) -> (i32, i32, i32, i32) {
    %c0_i32 = arith.constant 0 : i32
    %c0_i32_0 = arith.constant 0 : i32
    %c0_i32_1 = arith.constant 0 : i32
    %c0_i32_2 = arith.constant 0 : i32
    return %arg0, %c0_i32, %c0_i32_0, %c0_i32_1 : i32, i32, i32, i32
  }
  func.func @transform_1(%arg0: i32) -> (i32, i32) {
    %c0_i32 = arith.constant 0 : i32
    %c0_i32_0 = arith.constant 0 : i32
    %c0_i32_1 = arith.constant 0 : i32
    return %c0_i32, %c0_i32_0 : i32, i32
  }
  func.func @transform_2(%arg0: i32) -> (i32, i32) {
    %c0_i32 = arith.constant 0 : i32
    %c0_i32_0 = arith.constant 0 : i32
    %c0_i32_1 = arith.constant 0 : i32
    return %c0_i32, %c0_i32_0 : i32, i32
  }
  func.func @transform_3(%arg0: i32) -> (i32, i32) {
    %c0_i32 = arith.constant 0 : i32
    %c0_i32_0 = arith.constant 0 : i32
    %c0_i32_1 = arith.constant 0 : i32
    return %c0_i32, %c0_i32_0 : i32, i32
  }
  func.func @transform_4(%arg0: i32) -> (i32, i32, i32, i32) {
    %c0_i32 = arith.constant 0 : i32
    %c0_i32_0 = arith.constant 0 : i32
    %c0_i32_1 = arith.constant 0 : i32
    %c0_i32_2 = arith.constant 0 : i32
    return %arg0, %c0_i32, %c0_i32_0, %c0_i32_1 : i32, i32, i32, i32
  }
  func.func @transform_5(%arg0: i32) -> (i32, i32, i32) {
    %c0_i32 = arith.constant 0 : i32
    %c0_i32_0 = arith.constant 0 : i32
    %c0_i32_1 = arith.constant 0 : i32
    return %arg0, %c0_i32, %c0_i32_0 : i32, i32, i32
  }
}

module attributes {stable_mosaic.version = 11 : i64} {
  func.func @_conv3x3_kernel(%arg0: i32, %arg1: memref<1x16x16x128xf32, #tpu.memory_space<vmem>>, %arg2: memref<1x128xf32, #tpu.memory_space<vmem>>, %arg3: memref<1x128xf32, #tpu.memory_space<vmem>>, %arg4: memref<1152x128xf32, #tpu.memory_space<vmem>>, %arg5: memref<1x16x16x128xf32, #tpu.memory_space<vmem>>, %arg6: memref<1x2x128xf32, #tpu.memory_space<vmem>>, %arg7: memref<18x18x128xf32, #tpu.memory_space<vmem>>, %arg8: memref<256x1152xf32, #tpu.memory_space<vmem>>) attributes {dimension_semantics = [#tpu.dimension_semantics<parallel>], iteration_bounds = array<i64: 2>, scalar_prefetch = 0 : i64, scratch_operands = 2 : i64, tpu.core_type = #tpu.core_type<tc>, window_params = [{transform_indices = @transform_0, window_bounds = array<i64: 1, 16, 16, 128>}, {pipeline_mode = #tpu.pipeline_mode<synchronous>, transform_indices = @transform_1, window_bounds = array<i64: 1, 128>}, {pipeline_mode = #tpu.pipeline_mode<synchronous>, transform_indices = @transform_2, window_bounds = array<i64: 1, 128>}, {pipeline_mode = #tpu.pipeline_mode<synchronous>, transform_indices = @transform_3, window_bounds = array<i64: 1152, 128>}, {transform_indices = @transform_4, window_bounds = array<i64: 1, 16, 16, 128>}, {transform_indices = @transform_5, window_bounds = array<i64: 1, 2, 128>}]} {
    %c0 = arith.constant 0 : index
    %c0_0 = arith.constant 0 : index
    %c0_1 = arith.constant 0 : index
    %c0_2 = arith.constant 0 : index
    %0 = vector.load %arg1[%c0, %c0_0, %c0_1, %c0_2] : memref<1x16x16x128xf32, #tpu.memory_space<vmem>>, vector<1x16x16x128xf32>
    %1 = vector.shape_cast %0 : vector<1x16x16x128xf32> to vector<16x16x128xf32>
    %c0_3 = arith.constant 0 : index
    %c0_4 = arith.constant 0 : index
    %2 = vector.load %arg2[%c0_3, %c0_4] : memref<1x128xf32, #tpu.memory_space<vmem>>, vector<1x128xf32>
    %3 = vector.shape_cast %2 : vector<1x128xf32> to vector<128xf32>
    %4 = vector.shape_cast %3 : vector<128xf32> to vector<1x1x128xf32>
    %5 = vector.broadcast %4 : vector<1x1x128xf32> to vector<16x16x128xf32>
    %6 = arith.mulf %1, %5 : vector<16x16x128xf32>
    %c0_5 = arith.constant 0 : index
    %c0_6 = arith.constant 0 : index
    %7 = vector.load %arg3[%c0_5, %c0_6] : memref<1x128xf32, #tpu.memory_space<vmem>>, vector<1x128xf32>
    %8 = vector.shape_cast %7 : vector<1x128xf32> to vector<128xf32>
    %9 = vector.shape_cast %8 : vector<128xf32> to vector<1x1x128xf32>
    %10 = vector.broadcast %9 : vector<1x1x128xf32> to vector<16x16x128xf32>
    %11 = arith.addf %6, %10 : vector<16x16x128xf32>
    %cst = arith.constant 0.000000e+00 : f32
    %12 = vector.broadcast %cst : f32 to vector<16x16x128xf32>
    %13 = arith.maximumf %11, %12 : vector<16x16x128xf32>
    %cst_7 = arith.constant 0.000000e+00 : f32
    %14 = vector.broadcast %cst_7 : f32 to vector<1x18x128xf32>
    %c0_8 = arith.constant 0 : index
    %c0_9 = arith.constant 0 : index
    %c0_10 = arith.constant 0 : index
    %15 = vector.load %arg7[%c0_8, %c0_9, %c0_10] : memref<18x18x128xf32, #tpu.memory_space<vmem>>, vector<1x18x128xf32>
    tpu.vector_store %arg7[%c0_8, %c0_9, %c0_10], %14 {strides = array<i32>} : memref<18x18x128xf32, #tpu.memory_space<vmem>>, vector<1x18x128xf32>,
    %cst_11 = arith.constant 0.000000e+00 : f32
    %16 = vector.broadcast %cst_11 : f32 to vector<1x18x128xf32>
    %c17 = arith.constant 17 : index
    %c0_12 = arith.constant 0 : index
    %c0_13 = arith.constant 0 : index
    %17 = vector.load %arg7[%c17, %c0_12, %c0_13] : memref<18x18x128xf32, #tpu.memory_space<vmem>>, vector<1x18x128xf32>
    tpu.vector_store %arg7[%c17, %c0_12, %c0_13], %16 {strides = array<i32>} : memref<18x18x128xf32, #tpu.memory_space<vmem>>, vector<1x18x128xf32>,
    %cst_14 = arith.constant 0.000000e+00 : f32
    %18 = vector.broadcast %cst_14 : f32 to vector<18x1x128xf32>
    %c0_15 = arith.constant 0 : index
    %c0_16 = arith.constant 0 : index
    %c0_17 = arith.constant 0 : index
    %19 = vector.load %arg7[%c0_15, %c0_16, %c0_17] : memref<18x18x128xf32, #tpu.memory_space<vmem>>, vector<18x1x128xf32>
    tpu.vector_store %arg7[%c0_15, %c0_16, %c0_17], %18 {strides = array<i32>} : memref<18x18x128xf32, #tpu.memory_space<vmem>>, vector<18x1x128xf32>,
    %cst_18 = arith.constant 0.000000e+00 : f32
    %20 = vector.broadcast %cst_18 : f32 to vector<18x1x128xf32>
    %c0_19 = arith.constant 0 : index
    %c17_20 = arith.constant 17 : index
    %c0_21 = arith.constant 0 : index
    %21 = vector.load %arg7[%c0_19, %c17_20, %c0_21] : memref<18x18x128xf32, #tpu.memory_space<vmem>>, vector<18x1x128xf32>
    tpu.vector_store %arg7[%c0_19, %c17_20, %c0_21], %20 {strides = array<i32>} : memref<18x18x128xf32, #tpu.memory_space<vmem>>, vector<18x1x128xf32>,
    %c1 = arith.constant 1 : index
    %c1_22 = arith.constant 1 : index
    %c0_23 = arith.constant 0 : index
    %22 = vector.load %arg7[%c1, %c1_22, %c0_23] : memref<18x18x128xf32, #tpu.memory_space<vmem>>, vector<16x16x128xf32>
    tpu.vector_store %arg7[%c1, %c1_22, %c0_23], %13 {strides = array<i32>} : memref<18x18x128xf32, #tpu.memory_space<vmem>>, vector<16x16x128xf32>,
    %c0_24 = arith.constant 0 : index
    %c0_25 = arith.constant 0 : index
    %c0_26 = arith.constant 0 : index
    %23 = vector.load %arg7[%c0_24, %c0_25, %c0_26] : memref<18x18x128xf32, #tpu.memory_space<vmem>>, vector<16x16x128xf32>
    %24 = vector.shape_cast %23 : vector<16x16x128xf32> to vector<256x128xf32>
    %c0_27 = arith.constant 0 : index
    %c0_28 = arith.constant 0 : index
    %25 = vector.load %arg8[%c0_27, %c0_28] : memref<256x1152xf32, #tpu.memory_space<vmem>>, vector<256x128xf32>
    tpu.vector_store %arg8[%c0_27, %c0_28], %24 {strides = array<i32>} : memref<256x1152xf32, #tpu.memory_space<vmem>>, vector<256x128xf32>,
    %c0_29 = arith.constant 0 : index
    %c1_30 = arith.constant 1 : index
    %c0_31 = arith.constant 0 : index
    %26 = vector.load %arg7[%c0_29, %c1_30, %c0_31] : memref<18x18x128xf32, #tpu.memory_space<vmem>>, vector<16x16x128xf32>
    %27 = vector.shape_cast %26 : vector<16x16x128xf32> to vector<256x128xf32>
    %c0_32 = arith.constant 0 : index
    %c128 = arith.constant 128 : index
    %28 = vector.load %arg8[%c0_32, %c128] : memref<256x1152xf32, #tpu.memory_space<vmem>>, vector<256x128xf32>
    tpu.vector_store %arg8[%c0_32, %c128], %27 {strides = array<i32>} : memref<256x1152xf32, #tpu.memory_space<vmem>>, vector<256x128xf32>,
    %c0_33 = arith.constant 0 : index
    %c2 = arith.constant 2 : index
    %c0_34 = arith.constant 0 : index
    %29 = vector.load %arg7[%c0_33, %c2, %c0_34] : memref<18x18x128xf32, #tpu.memory_space<vmem>>, vector<16x16x128xf32>
    %30 = vector.shape_cast %29 : vector<16x16x128xf32> to vector<256x128xf32>
    %c0_35 = arith.constant 0 : index
    %c256 = arith.constant 256 : index
    %31 = vector.load %arg8[%c0_35, %c256] : memref<256x1152xf32, #tpu.memory_space<vmem>>, vector<256x128xf32>
    tpu.vector_store %arg8[%c0_35, %c256], %30 {strides = array<i32>} : memref<256x1152xf32, #tpu.memory_space<vmem>>, vector<256x128xf32>,
    %c1_36 = arith.constant 1 : index
    %c0_37 = arith.constant 0 : index
    %c0_38 = arith.constant 0 : index
    %32 = vector.load %arg7[%c1_36, %c0_37, %c0_38] : memref<18x18x128xf32, #tpu.memory_space<vmem>>, vector<16x16x128xf32>
    %33 = vector.shape_cast %32 : vector<16x16x128xf32> to vector<256x128xf32>
    %c0_39 = arith.constant 0 : index
    %c384 = arith.constant 384 : index
    %34 = vector.load %arg8[%c0_39, %c384] : memref<256x1152xf32, #tpu.memory_space<vmem>>, vector<256x128xf32>
    tpu.vector_store %arg8[%c0_39, %c384], %33 {strides = array<i32>} : memref<256x1152xf32, #tpu.memory_space<vmem>>, vector<256x128xf32>,
    %c1_40 = arith.constant 1 : index
    %c1_41 = arith.constant 1 : index
    %c0_42 = arith.constant 0 : index
    %35 = vector.load %arg7[%c1_40, %c1_41, %c0_42] : memref<18x18x128xf32, #tpu.memory_space<vmem>>, vector<16x16x128xf32>
    %36 = vector.shape_cast %35 : vector<16x16x128xf32> to vector<256x128xf32>
    %c0_43 = arith.constant 0 : index
    %c512 = arith.constant 512 : index
    %37 = vector.load %arg8[%c0_43, %c512] : memref<256x1152xf32, #tpu.memory_space<vmem>>, vector<256x128xf32>
    tpu.vector_store %arg8[%c0_43, %c512], %36 {strides = array<i32>} : memref<256x1152xf32, #tpu.memory_space<vmem>>, vector<256x128xf32>,
    %c1_44 = arith.constant 1 : index
    %c2_45 = arith.constant 2 : index
    %c0_46 = arith.constant 0 : index
    %38 = vector.load %arg7[%c1_44, %c2_45, %c0_46] : memref<18x18x128xf32, #tpu.memory_space<vmem>>, vector<16x16x128xf32>
    %39 = vector.shape_cast %38 : vector<16x16x128xf32> to vector<256x128xf32>
    %c0_47 = arith.constant 0 : index
    %c640 = arith.constant 640 : index
    %40 = vector.load %arg8[%c0_47, %c640] : memref<256x1152xf32, #tpu.memory_space<vmem>>, vector<256x128xf32>
    tpu.vector_store %arg8[%c0_47, %c640], %39 {strides = array<i32>} : memref<256x1152xf32, #tpu.memory_space<vmem>>, vector<256x128xf32>,
    %c2_48 = arith.constant 2 : index
    %c0_49 = arith.constant 0 : index
    %c0_50 = arith.constant 0 : index
    %41 = vector.load %arg7[%c2_48, %c0_49, %c0_50] : memref<18x18x128xf32, #tpu.memory_space<vmem>>, vector<16x16x128xf32>
    %42 = vector.shape_cast %41 : vector<16x16x128xf32> to vector<256x128xf32>
    %c0_51 = arith.constant 0 : index
    %c768 = arith.constant 768 : index
    %43 = vector.load %arg8[%c0_51, %c768] : memref<256x1152xf32, #tpu.memory_space<vmem>>, vector<256x128xf32>
    tpu.vector_store %arg8[%c0_51, %c768], %42 {strides = array<i32>} : memref<256x1152xf32, #tpu.memory_space<vmem>>, vector<256x128xf32>,
    %c2_52 = arith.constant 2 : index
    %c1_53 = arith.constant 1 : index
    %c0_54 = arith.constant 0 : index
    %44 = vector.load %arg7[%c2_52, %c1_53, %c0_54] : memref<18x18x128xf32, #tpu.memory_space<vmem>>, vector<16x16x128xf32>
    %45 = vector.shape_cast %44 : vector<16x16x128xf32> to vector<256x128xf32>
    %c0_55 = arith.constant 0 : index
    %c896 = arith.constant 896 : index
    %46 = vector.load %arg8[%c0_55, %c896] : memref<256x1152xf32, #tpu.memory_space<vmem>>, vector<256x128xf32>
    tpu.vector_store %arg8[%c0_55, %c896], %45 {strides = array<i32>} : memref<256x1152xf32, #tpu.memory_space<vmem>>, vector<256x128xf32>,
    %c2_56 = arith.constant 2 : index
    %c2_57 = arith.constant 2 : index
    %c0_58 = arith.constant 0 : index
    %47 = vector.load %arg7[%c2_56, %c2_57, %c0_58] : memref<18x18x128xf32, #tpu.memory_space<vmem>>, vector<16x16x128xf32>
    %48 = vector.shape_cast %47 : vector<16x16x128xf32> to vector<256x128xf32>
    %c0_59 = arith.constant 0 : index
    %c1024 = arith.constant 1024 : index
    %49 = vector.load %arg8[%c0_59, %c1024] : memref<256x1152xf32, #tpu.memory_space<vmem>>, vector<256x128xf32>
    tpu.vector_store %arg8[%c0_59, %c1024], %48 {strides = array<i32>} : memref<256x1152xf32, #tpu.memory_space<vmem>>, vector<256x128xf32>,
    %c0_60 = arith.constant 0 : index
    %c0_61 = arith.constant 0 : index
    %50 = vector.load %arg8[%c0_60, %c0_61] : memref<256x1152xf32, #tpu.memory_space<vmem>>, vector<256x1152xf32>
    %c0_62 = arith.constant 0 : index
    %c0_63 = arith.constant 0 : index
    %51 = vector.load %arg4[%c0_62, %c0_63] : memref<1152x128xf32, #tpu.memory_space<vmem>>, vector<1152x128xf32>
    %cst_64 = arith.constant dense<0.000000e+00> : vector<256x128xf32>
    %52 = tpu.matmul %50, %51, %cst_64 {dimension_numbers = #tpu.dot_dimension_numbers<[1], [0], [0], [1], [0, 0, 1, 1], [], []>} : vector<256x1152xf32>, vector<1152x128xf32>, vector<256x128xf32> -> vector<256x128xf32>
    %53 = vector.shape_cast %52 : vector<256x128xf32> to vector<16x16x128xf32>
    %c0_65 = arith.constant 0 : index
    %c0_66 = arith.constant 0 : index
    %c0_67 = arith.constant 0 : index
    %c0_68 = arith.constant 0 : index
    %54 = vector.load %arg5[%c0_65, %c0_66, %c0_67, %c0_68] : memref<1x16x16x128xf32, #tpu.memory_space<vmem>>, vector<1x16x16x128xf32>
    %55 = vector.shape_cast %54 : vector<1x16x16x128xf32> to vector<16x16x128xf32>
    %56 = vector.shape_cast %53 : vector<16x16x128xf32> to vector<1x16x16x128xf32>
    tpu.vector_store %arg5[%c0_65, %c0_66, %c0_67, %c0_68], %56 {strides = array<i32>} : memref<1x16x16x128xf32, #tpu.memory_space<vmem>>, vector<1x16x16x128xf32>,
    %cst_69 = arith.constant dense<0.000000e+00> : vector<128xf32>
    %57 = vector.multi_reduction <add>, %52, %cst_69 [0] : vector<256x128xf32> to vector<128xf32>
    %58 = vector.shape_cast %57 : vector<128xf32> to vector<1x128xf32>
    %c0_70 = arith.constant 0 : index
    %c0_71 = arith.constant 0 : index
    %c0_72 = arith.constant 0 : index
    %59 = vector.load %arg6[%c0_70, %c0_71, %c0_72] : memref<1x2x128xf32, #tpu.memory_space<vmem>>, vector<1x1x128xf32>
    %60 = vector.shape_cast %59 : vector<1x1x128xf32> to vector<1x128xf32>
    %61 = vector.shape_cast %58 : vector<1x128xf32> to vector<1x1x128xf32>
    tpu.vector_store %arg6[%c0_70, %c0_71, %c0_72], %61 {strides = array<i32>} : memref<1x2x128xf32, #tpu.memory_space<vmem>>, vector<1x1x128xf32>,
    %62 = arith.mulf %52, %52 : vector<256x128xf32>
    %cst_73 = arith.constant dense<0.000000e+00> : vector<128xf32>
    %63 = vector.multi_reduction <add>, %62, %cst_73 [0] : vector<256x128xf32> to vector<128xf32>
    %64 = vector.shape_cast %63 : vector<128xf32> to vector<1x128xf32>
    %c0_74 = arith.constant 0 : index
    %c1_75 = arith.constant 1 : index
    %c0_76 = arith.constant 0 : index
    %65 = vector.load %arg6[%c0_74, %c1_75, %c0_76] : memref<1x2x128xf32, #tpu.memory_space<vmem>>, vector<1x1x128xf32>
    %66 = vector.shape_cast %65 : vector<1x1x128xf32> to vector<1x128xf32>
    %67 = vector.shape_cast %64 : vector<1x128xf32> to vector<1x1x128xf32>
    tpu.vector_store %arg6[%c0_74, %c1_75, %c0_76], %67 {strides = array<i32>} : memref<1x2x128xf32, #tpu.memory_space<vmem>>, vector<1x1x128xf32>,
    return
  }
  func.func @transform_0(%arg0: i32) -> (i32, i32, i32, i32) {
    %c0_i32 = arith.constant 0 : i32
    %c0_i32_0 = arith.constant 0 : i32
    %c0_i32_1 = arith.constant 0 : i32
    %c0_i32_2 = arith.constant 0 : i32
    return %arg0, %c0_i32, %c0_i32_0, %c0_i32_1 : i32, i32, i32, i32
  }
  func.func @transform_1(%arg0: i32) -> (i32, i32) {
    %c0_i32 = arith.constant 0 : i32
    %c0_i32_0 = arith.constant 0 : i32
    %c0_i32_1 = arith.constant 0 : i32
    return %c0_i32, %c0_i32_0 : i32, i32
  }
  func.func @transform_2(%arg0: i32) -> (i32, i32) {
    %c0_i32 = arith.constant 0 : i32
    %c0_i32_0 = arith.constant 0 : i32
    %c0_i32_1 = arith.constant 0 : i32
    return %c0_i32, %c0_i32_0 : i32, i32
  }
  func.func @transform_3(%arg0: i32) -> (i32, i32) {
    %c0_i32 = arith.constant 0 : i32
    %c0_i32_0 = arith.constant 0 : i32
    %c0_i32_1 = arith.constant 0 : i32
    return %c0_i32, %c0_i32_0 : i32, i32
  }
  func.func @transform_4(%arg0: i32) -> (i32, i32, i32, i32) {
    %c0_i32 = arith.constant 0 : i32
    %c0_i32_0 = arith.constant 0 : i32
    %c0_i32_1 = arith.constant 0 : i32
    %c0_i32_2 = arith.constant 0 : i32
    return %arg0, %c0_i32, %c0_i32_0, %c0_i32_1 : i32, i32, i32, i32
  }
  func.func @transform_5(%arg0: i32) -> (i32, i32, i32) {
    %c0_i32 = arith.constant 0 : i32
    %c0_i32_0 = arith.constant 0 : i32
    %c0_i32_1 = arith.constant 0 : i32
    return %arg0, %c0_i32, %c0_i32_0 : i32, i32, i32
  }
}

</mosaic_0001>

<bundles_post_ra>
// kernel: up_forward.2
= control target key start
LH: loop header
LB: loop body
LE: loop exit
PB: predicated region body
PF: predicated region fallthrough
CT: control target
= control target key end

     0   :  { %s2570_s18 = smov 0   ;;  %s3764_s0 = inlined_call_operand.vmem [shape: f32[2,16,16,8], index: 0, kind: input, shape index: {}]   ;;  %s3765_s1 = inlined_call_operand.vmem [shape: f32[1,8], index: 1, kind: input, shape index: {}]   ;;  %s3766_s2 = inlined_call_operand.vmem [shape: f32[1,8], index: 2, kind: input, shape index: {}]   ;;  %s3767_s3 = inlined_call_operand.vmem [shape: f32[72,128], index: 3, kind: input, shape index: {}]   ;;  %s3768_s4 = inlined_call_operand.vmem [shape: f32[2,16,16,128], index: 4, kind: output, shape index: {0}]   ;;  %s3769_s5 = inlined_call_operand.vmem [shape: f32[2,2,128], index: 5, kind: output, shape index: {1}]  }
   0x1 LB: > { %s2433_s1 = sadd.s32 4294967295, %s2529_s18   ;;  %p2437_p0 = scmp.ge.s32.totalorder %s2529_s18, 1  ;;  %s2529_s18 = sphi %s2570_s18, %s16_s18  }
   0x2   : > { %p190_p1 = scmp.lt.s32.totalorder %s2529_s18, 3 }
   0x4   : > { %p191_p2 = pnand %p2437_p0, %p190_p1 }
   0x6   : > { %194 = sbr.rel (%p191_p2) target bundleno = 1003 (0x3eb), region = 36 }
   0xb   : > { %vm268_vm0 = vcmask 64512   ;;  %v2531_v0 = vmov 0.0   ;;  %vm277_vm1 = vcmask 57344   ;;  %s2532_s2 = smov 8   ;;  %p222_p3 = scmp.lt.s32.totalorder %s2433_s1, 1  ;;  %vm271_vm2 = vcmask 58368  }
   0xc   : > { %269 = vst.msk [vmem:[#allocation2] sm:$0xff] %vm268_vm0, %v2531_v0  ;;  %vm571_vm3 = vcmask 130112   ;;  %s2533_s23 = smov 16   ;;  %s2534_s24 = smov 24   ;;  %vm764_vm4 = vcmask 195712   ;;  %vm957_vm5 = vcmask 261312  }
   0xd   : > { %270 = vst.msk [vmem:[#allocation2 + $0x8] sm:$0xff] %vm268_vm0, %v2531_v0  ;;  %s3864_s1 = smov (!%p222_p3, %s2433_s1), 1  ;;  %s2535_s25 = smov 32   ;;  %vm1150_vm6 = vcmask 326912   ;;  %vm1343_vm7 = vcmask 392512   ;;  %vm1537_vm8 = vcmask 458112  }
   0xe   : > { %278 = vst.msk [vmem:[#allocation2] sm:$0x1] %vm277_vm1, %v2531_v0  ;;  %s2477_s19 = sshll.u32 %s3864_s1, 8  ;;  %s2536_s26 = smov 40   ;;  %vm1730_vm9 = vcmask 523712   ;;  %vm1923_vm10 = vcmask 589312  }
   0xf   : > { %274 = vst.msk [vmem:[#allocation2 + $0x198] sm:$0xff] %vm268_vm0, %v2531_v0  ;;  %s2623_s22 = scalar_lea.vmem %s3764_s0, %s2477_s19  ;;  %s2537_s27 = smov 56   ;;  %vm1997_vm11 = vcmask 588800  }
  0x10   : > { %275 = vst.msk [vmem:[#allocation2 + $0x1a0] sm:$0xff] %vm268_vm0, %v2531_v0  ;;  %v236_v2 = vld [vmem:[%s2623_s22] sm:$0xff]  ;;  %v237_v3 = vld [vmem:[%s2623_s22 + $0x8] sm:$0xff]  ;;  %v238_v6 = vld [vmem:[%s2623_s22 + $0x10] sm:$0xff]  ;;  %s2538_s28 = smov 64   ;;  %s2539_s29 = smov 48  }
  0x11   : > { %279 = vst.msk [vmem:[#allocation2 + $0x18] sm:$0x1] %vm277_vm1, %v2531_v0  ;;  %v240_v4 = vld [vmem:[%s2623_s22 + $0x20] sm:$0xff]  ;;  %v241_v5 = vld [vmem:[%s2623_s22 + $0x28] sm:$0xff]  ;;  %v243_v8 = vld [vmem:[%s2623_s22 + $0x38] sm:$0xff]  ;;  %s3605_s30 = scalar_lea.vmem %s3768_s4, %s2477_s19  ;;  %s2442_s19 = sshll.u32 %s3864_s1, 1 }
  0x12   : > { %280 = vst.msk [vmem:[#allocation2 + $0x30] sm:$0x1] %vm277_vm1, %v2531_v0  ;;  %v244_v9 = vld [vmem:[%s2623_s22 + $0x40] sm:$0xff]  ;;  %v239_v11 = vld [vmem:[%s2623_s22 + $0x18] sm:$0xff]  ;;  %v246_v12 = vld [vmem:[%s2623_s22 + $0x50] sm:$0xff] }
  0x13   : > { %281 = vst.msk [vmem:[#allocation2 + $0x48] sm:$0x1] %vm277_vm1, %v2531_v0  ;;  %v247_v13 = vld [vmem:[%s2623_s22 + $0x58] sm:$0xff]  ;;  %v242_v14 = vld [vmem:[%s2623_s22 + $0x30] sm:$0xff]  ;;  %v249_v16 = vld [vmem:[%s2623_s22 + $0x68] sm:$0xff] }
  0x14   : > { %v411_v1 = vld [vmem:[#allocation2 + $0x1] sm:$0xff]  ;;  %282 = vst.msk [vmem:[#allocation2 + $0x60] sm:$0x1] %vm277_vm1, %v2531_v0  ;;  %v250_v17 = vld [vmem:[%s2623_s22 + $0x70] sm:$0xff]  ;;  %v255_v24 = vld [vmem:[%s2623_s22 + $0x98] sm:$0xff] }
  0x15   : > { %475 = vrot.lane.b32.xlu0 %v411_v1, %s2532_s2  ;;  %283 = vst.msk [vmem:[#allocation2 + $0x78] sm:$0x1] %vm277_vm1, %v2531_v0  ;;  %v245_v19 = vld [vmem:[%s2623_s22 + $0x48] sm:$0xff]  ;;  %v252_v21 = vld [vmem:[%s2623_s22 + $0x80] sm:$0xff]  ;;  %v251_v29 = vld [vmem:[%s2623_s22 + $0x78] sm:$0xff] }
  0x16   : > { %284 = vst.msk [vmem:[#allocation2 + $0x90] sm:$0x1] %vm277_vm1, %v2531_v0  ;;  %v253_v22 = vld [vmem:[%s2623_s22 + $0x88] sm:$0xff]  ;;  %v248_v23 = vld [vmem:[%s2623_s22 + $0x60] sm:$0xff]  ;;  %v258_v30 = vld [vmem:[%s2623_s22 + $0xb0] sm:$0xff] }
  0x17   : > { %285 = vst.msk [vmem:[#allocation2 + $0xa8] sm:$0x1] %vm277_vm1, %v2531_v0  ;;  %v256_v28 = vld [vmem:[%s2623_s22 + $0xa0] sm:$0xff]  ;;  %v259_v34 = vld [vmem:[%s2623_s22 + $0xb8] sm:$0xff]  ;;  %v254_v35 = vld [vmem:[%s2623_s22 + $0x90] sm:$0xff] }
  0x18   : > { %286 = vst.msk [vmem:[#allocation2 + $0xc0] sm:$0x1] %vm277_vm1, %v2531_v0  ;;  %v261_v36 = vld [vmem:[%s2623_s22 + $0xc8] sm:$0xff]  ;;  %v262_v40 = vld [vmem:[%s2623_s22 + $0xd0] sm:$0xff]  ;;  %v264_v42 = vld [vmem:[%s2623_s22 + $0xe0] sm:$0xff] }
  0x19   : > { %287 = vst.msk [vmem:[#allocation2 + $0xd8] sm:$0x1] %vm277_vm1, %v2531_v0  ;;  %v257_v41 = vld [vmem:[%s2623_s22 + $0xa8] sm:$0xff]  ;;  %v260_v47 = vld [vmem:[%s2623_s22 + $0xc0] sm:$0xff]  ;;  %v263_v51 = vld [vmem:[%s2623_s22 + $0xd8] sm:$0xff] }
  0x1a   : > { %288 = vst.msk [vmem:[#allocation2 + $0xf0] sm:$0x1] %vm277_vm1, %v2531_v0  ;;  %v265_v46 = vld [vmem:[%s2623_s22 + $0xe8] sm:$0xff]  ;;  %v347_v62 = vld [vmem:[#allocation2] sm:$0xff] }
  0x1b   : > { %289 = vst.msk [vmem:[#allocation2 + $0x108] sm:$0x1] %vm277_vm1, %v2531_v0 }
  0x1c   : > { %290 = vst.msk [vmem:[#allocation2 + $0x120] sm:$0x1] %vm277_vm1, %v2531_v0 }
  0x1d   : > { %291 = vst.msk [vmem:[#allocation2 + $0x138] sm:$0x1] %vm277_vm1, %v2531_v0 }
  0x1e   : > { %292 = vst.msk [vmem:[#allocation2 + $0x150] sm:$0x1] %vm277_vm1, %v2531_v0 }
  0x1f   : > { %293 = vst.msk [vmem:[#allocation2 + $0x168] sm:$0x1] %vm277_vm1, %v2531_v0 }
  0x20   : > { %294 = vst.msk [vmem:[#allocation2 + $0x180] sm:$0x1] %vm277_vm1, %v2531_v0 }
  0x21   : > { %297 = vst.msk [vmem:[#allocation2 + $0x29] sm:$0x1] %vm277_vm1, %v2531_v0 }
  0x22   : > { %298 = vst.msk [vmem:[#allocation2 + $0x41] sm:$0x1] %vm277_vm1, %v2531_v0 }
  0x23   : > { %299 = vst.msk [vmem:[#allocation2 + $0x59] sm:$0x1] %vm277_vm1, %v2531_v0 }
  0x24   : > { %300 = vst.msk [vmem:[#allocation2 + $0x71] sm:$0x1] %vm277_vm1, %v2531_v0 }
  0x25   : > { %301 = vst.msk [vmem:[#allocation2 + $0x89] sm:$0x1] %vm277_vm1, %v2531_v0 }
  0x26   : > { %302 = vst.msk [vmem:[#allocation2 + $0xa1] sm:$0x1] %vm277_vm1, %v2531_v0 }
  0x27   : > { %303 = vst.msk [vmem:[#allocation2 + $0xb9] sm:$0x1] %vm277_vm1, %v2531_v0 }
  0x28   : > { %304 = vst.msk [vmem:[#allocation2 + $0xd1] sm:$0x1] %vm277_vm1, %v2531_v0 }
  0x29   : > { %305 = vst.msk [vmem:[#allocation2 + $0xe9] sm:$0x1] %vm277_vm1, %v2531_v0 }
  0x2a   : > { %306 = vst.msk [vmem:[#allocation2 + $0x101] sm:$0x1] %vm277_vm1, %v2531_v0 }
  0x2b   : > { %307 = vst.msk [vmem:[#allocation2 + $0x119] sm:$0x1] %vm277_vm1, %v2531_v0 }
  0x2c   : > { %308 = vst.msk [vmem:[#allocation2 + $0x131] sm:$0x1] %vm277_vm1, %v2531_v0 }
  0x2d   : > { %309 = vst.msk [vmem:[#allocation2 + $0x149] sm:$0x1] %vm277_vm1, %v2531_v0 }
  0x2e   : > { %310 = vst.msk [vmem:[#allocation2 + $0x161] sm:$0x1] %vm277_vm1, %v2531_v0 }
  0x2f   : > { %311 = vst.msk [vmem:[#allocation2 + $0x179] sm:$0x1] %vm277_vm1, %v2531_v0 }
  0x30   : > { %312 = vst.msk [vmem:[#allocation2 + $0x191] sm:$0x1] %vm277_vm1, %v2531_v0 }
  0x31   : > { %315 = vst.msk [vmem:[#allocation2 + $0x19] sm:$0xff] %vm268_vm0, %v236_v2 }
  0x32   : > { %295 = vst.msk [vmem:[#allocation2 + $0x198] sm:$0x1] %vm277_vm1, %v2531_v0 }
  0x33   : > { %272 = vst.msk [vmem:[#allocation2 + $0x10] sm:$0x3] %vm271_vm2, %v2531_v0 }
  0x34   : > { %276 = vst.msk [vmem:[#allocation2 + $0x1a8] sm:$0x3] %vm271_vm2, %v2531_v0 }
  0x35   : > { %296 = vst.msk [vmem:[#allocation2 + $0x11] sm:$0x1] %vm277_vm1, %v2531_v0 }
  0x36   : > { %316 = vst.msk [vmem:[#allocation2 + $0x21] sm:$0xff] %vm268_vm0, %v237_v3 }
  0x37   : > { %313 = vst.msk [vmem:[#allocation2 + $0x1a9] sm:$0x1] %vm277_vm1, %v2531_v0 }
  0x38   : > { %v2640_v7 = vld [vmem:[#allocation2 + $0x19] sm:$0xff]  ;;  %319 = vst.msk [vmem:[#allocation2 + $0x49] sm:$0xff] %vm268_vm0, %v240_v4 }
  0x39   : > { %479 = vrot.lane.b32.xlu1 %v2640_v7, %s2532_s2  ;;  %320 = vst.msk [vmem:[#allocation2 + $0x51] sm:$0xff] %vm268_vm0, %v241_v5  ;;  %v2820_v3 = vld [vmem:[#allocation2 + $0x18] sm:$0xff]  ;;  %v348_v5 = vld [vmem:[#allocation2 + $0x8] sm:$0xff] }
  0x3a   : > { %v412_v10 = vld [vmem:[#allocation2 + $0x9] sm:$0xff]  ;;  %317 = vst.msk [vmem:[#allocation2 + $0x31] sm:$0xff] %vm268_vm0, %v238_v6 }
  0x3b   : > { %477 = vrot.lane.b32.xlu0 %v412_v10, %s2532_s2  ;;  %322 = vst.msk [vmem:[#allocation2 + $0x69] sm:$0xff] %vm268_vm0, %v243_v8  ;;  %v604_v8 = vld [vmem:[#allocation2 + $0x2] sm:$0xff] }
  0x3c   : > { %323 = vst.msk [vmem:[#allocation2 + $0x79] sm:$0xff] %vm268_vm0, %v244_v9  ;;  %v605_v2 = vld [vmem:[#allocation2 + $0xa] sm:$0xff] }
  0x3d   : > { %318 = vst.msk [vmem:[#allocation2 + $0x39] sm:$0xff] %vm268_vm0, %v239_v11  ;;  %v2657_v15 = vld [vmem:[#allocation2 + $0x21] sm:$0xff] }
  0x3e   : > { %325 = vst.msk [vmem:[#allocation2 + $0x91] sm:$0xff] %vm268_vm0, %v246_v12  ;;  %v2829_v6 = vld [vmem:[#allocation2 + $0x1a] sm:$0xff] }
  0x3f   : > { %326 = vst.msk [vmem:[#allocation2 + $0x99] sm:$0xff] %vm268_vm0, %v247_v13  ;;  %v2663_v18 = vld [vmem:[#allocation2 + $0x49] sm:$0xff]  ;;  %v2837_v10 = vld [vmem:[#allocation2 + $0x20] sm:$0xff] }
  0x40   : > { %321 = vst.msk [vmem:[#allocation2 + $0x61] sm:$0xff] %vm268_vm0, %v242_v14  ;;  %v2684_v25 = vld [vmem:[#allocation2 + $0x51] sm:$0xff]  ;;  %v2845_v12 = vld [vmem:[#allocation2 + $0x48] sm:$0xff] }
  0x41   : > { %481 = vrot.lane.b32.xlu1 %v2657_v15, %s2532_s2  ;;  %v2669_v20 = vld [vmem:[#allocation2 + $0x31] sm:$0xff]  ;;  %328 = vst.msk [vmem:[#allocation2 + $0xb1] sm:$0xff] %vm268_vm0, %v249_v16  ;;  %v2853_v14 = vld [vmem:[#allocation2 + $0x22] sm:$0xff] }
  0x42   : > { %483 = vrot.lane.b32.xlu2 %v2669_v20, %s2532_s2  ;;  %329 = vst.msk [vmem:[#allocation2 + $0xc1] sm:$0xff] %vm268_vm0, %v250_v17  ;;  %v2690_v27 = vld [vmem:[#allocation2 + $0x69] sm:$0xff]  ;;  %v2855_v16 = vld [vmem:[#allocation2 + $0x52] sm:$0xff] }
  0x43   : > { %487 = vrot.lane.b32.xlu0 %v2663_v18, %s2532_s2  ;;  %324 = vst.msk [vmem:[#allocation2 + $0x81] sm:$0xff] %vm268_vm0, %v245_v19  ;;  %v2704_v31 = vld [vmem:[#allocation2 + $0x79] sm:$0xff]  ;;  %v2806_v61 = vld [vmem:[#allocation2 + $0x30] sm:$0xff] }
  0x44   : > { %331 = vst.msk [vmem:[#allocation2 + $0xd9] sm:$0xff] %vm268_vm0, %v252_v21  ;;  %v2687_v26 = vld [vmem:[#allocation2 + $0x39] sm:$0xff]  ;;  %v2861_v17 = vld [vmem:[#allocation2 + $0x50] sm:$0xff] }
  0x45   : > { %332 = vst.msk [vmem:[#allocation2 + $0xe1] sm:$0xff] %vm268_vm0, %v253_v22  ;;  %v2708_v33 = vld [vmem:[#allocation2 + $0x91] sm:$0xff]  ;;  %v2849_v13 = vld [vmem:[#allocation2 + $0x3a] sm:$0xff] }
  0x46   : > { %327 = vst.msk [vmem:[#allocation2 + $0xa9] sm:$0xff] %vm268_vm0, %v248_v23  ;;  %v2722_v37 = vld [vmem:[#allocation2 + $0x99] sm:$0xff] }
  0x47   : > { %334 = vst.msk [vmem:[#allocation2 + $0xf9] sm:$0xff] %vm268_vm0, %v255_v24  ;;  %v2706_v32 = vld [vmem:[#allocation2 + $0x61] sm:$0xff]  ;;  %v2825_v4 = vld [vmem:[#allocation2 + $0x38] sm:$0xff]  ;;  %v2876_v24 = vld [vmem:[#allocation2 + $0x4a] sm:$0xff] }
  0x48   : > { %335 = vst.msk [vmem:[#allocation2 + $0x109] sm:$0xff] %vm268_vm0, %v256_v28  ;;  %v2726_v39 = vld [vmem:[#allocation2 + $0xb1] sm:$0xff]  ;;  %v2843_v11 = vld [vmem:[#allocation2 + $0x60] sm:$0xff]  ;;  %v2869_v22 = vld [vmem:[#allocation2 + $0x68] sm:$0xff] }
  0x49   : > { %489 = vrot.lane.b32.xlu1 %v2684_v25, %s2532_s2  ;;  %330 = vst.msk [vmem:[#allocation2 + $0xc9] sm:$0xff] %vm268_vm0, %v251_v29  ;;  %v2740_v43 = vld [vmem:[#allocation2 + $0xc1] sm:$0xff]  ;;  %v2832_v9 = vld [vmem:[#allocation2 + $0x32] sm:$0xff] }
  0x4a   : > { %485 = vrot.lane.b32.xlu2 %v2687_v26, %s2532_s2  ;;  %337 = vst.msk [vmem:[#allocation2 + $0x121] sm:$0xff] %vm268_vm0, %v258_v30  ;;  %v2724_v38 = vld [vmem:[#allocation2 + $0x81] sm:$0xff]  ;;  %v2886_v29 = vld [vmem:[#allocation2 + $0x78] sm:$0xff] }
  0x4b   : > { %493 = vrot.lane.b32.xlu0 %v2690_v27, %s2532_s2  ;;  %338 = vst.msk [vmem:[#allocation2 + $0x129] sm:$0xff] %vm268_vm0, %v259_v34  ;;  %v2744_v45 = vld [vmem:[#allocation2 + $0xd9] sm:$0xff]  ;;  %v2872_v23 = vld [vmem:[#allocation2 + $0x62] sm:$0xff] }
  0x4c   : > { %333 = vst.msk [vmem:[#allocation2 + $0xf1] sm:$0xff] %vm268_vm0, %v254_v35  ;;  %v2756_v48 = vld [vmem:[#allocation2 + $0xe1] sm:$0xff]  ;;  %v2894_v35 = vld [vmem:[#allocation2 + $0x90] sm:$0xff] }
  0x4d   : > { %340 = vst.msk [vmem:[#allocation2 + $0x141] sm:$0xff] %vm268_vm0, %v261_v36  ;;  %v2742_v44 = vld [vmem:[#allocation2 + $0xa9] sm:$0xff]  ;;  %v2867_v21 = vld [vmem:[#allocation2 + $0x80] sm:$0xff] }
  0x4e   : > { %341 = vst.msk [vmem:[#allocation2 + $0x151] sm:$0xff] %vm268_vm0, %v262_v40  ;;  %v2760_v50 = vld [vmem:[#allocation2 + $0xf9] sm:$0xff]  ;;  %v2892_v34 = vld [vmem:[#allocation2 + $0xa8] sm:$0xff] }
  0x4f   : > { %336 = vst.msk [vmem:[#allocation2 + $0x111] sm:$0xff] %vm268_vm0, %v257_v41  ;;  %v2770_v52 = vld [vmem:[#allocation2 + $0x109] sm:$0xff]  ;;  %v2880_v28 = vld [vmem:[#allocation2 + $0x7a] sm:$0xff] }
  0x50   : > { %343 = vst.msk [vmem:[#allocation2 + $0x169] sm:$0xff] %vm268_vm0, %v264_v42  ;;  %v2758_v49 = vld [vmem:[#allocation2 + $0xc9] sm:$0xff]  ;;  %v2905_v41 = vld [vmem:[#allocation2 + $0x9a] sm:$0xff] }
  0x51   : > { %495 = vrot.lane.b32.xlu1 %v2704_v31, %s2532_s2  ;;  %344 = vst.msk [vmem:[#allocation2 + $0x171] sm:$0xff] %vm268_vm0, %v265_v46  ;;  %v2774_v54 = vld [vmem:[#allocation2 + $0x121] sm:$0xff]  ;;  %v2901_v40 = vld [vmem:[#allocation2 + $0x6a] sm:$0xff]  ;;  %v2911_v42 = vld [vmem:[#allocation2 + $0x98] sm:$0xff] }
  0x52   : > { %491 = vrot.lane.b32.xlu2 %v2706_v32, %s2532_s2  ;;  %339 = vst.msk [vmem:[#allocation2 + $0x139] sm:$0xff] %vm268_vm0, %v260_v47  ;;  %v2782_v55 = vld [vmem:[#allocation2 + $0x129] sm:$0xff] }
  0x53   : > { %499 = vrot.lane.b32.xlu0 %v2708_v33, %s2532_s2  ;;  %342 = vst.msk [vmem:[#allocation2 + $0x159] sm:$0xff] %vm268_vm0, %v263_v51  ;;  %v2772_v53 = vld [vmem:[#allocation2 + $0xf1] sm:$0xff]  ;;  %v2897_v36 = vld [vmem:[#allocation2 + $0x82] sm:$0xff] }
  0x54   : > { %v2786_v57 = vld [vmem:[#allocation2 + $0x141] sm:$0xff]  ;;  %383 = vst.msk [vmem:[#allocation3 + $0x20] sm:$0xff] %vm268_vm0, %v2806_v61 }
  0x55   : > { %v2794_v58 = vld [vmem:[#allocation2 + $0x151] sm:$0xff]  ;;  %379 = vst.msk [vmem:[#allocation3] sm:$0xff] %vm268_vm0, %v347_v62  ;;  %v2918_v51 = vld [vmem:[#allocation2 + $0xc8] sm:$0xff] }
  0x56   : > { %v2784_v56 = vld [vmem:[#allocation2 + $0x111] sm:$0xff]  ;;  %3801 = vst [vmem:[#allocation4_spill] sm:$0xff] %v2794_v58 }
  0x57   : > { %v2798_v60 = vld [vmem:[#allocation2 + $0x169] sm:$0xff]  ;;  %381 = vst.msk [vmem:[#allocation3 + $0x10] sm:$0xff] %vm268_vm0, %v2820_v3 }
  0x58   : > { %v2811_v63 = vld [vmem:[#allocation2 + $0x171] sm:$0xff]  ;;  %384 = vst.msk [vmem:[#allocation3 + $0x28] sm:$0xff] %vm268_vm0, %v2825_v4 }
  0x59   : > { %501 = vrot.lane.b32.xlu1 %v2722_v37, %s2532_s2  ;;  %v2796_v59 = vld [vmem:[#allocation2 + $0x139] sm:$0xff]  ;;  %3802 = vst [vmem:[#allocation5_spill] sm:$0xff] %v2811_v63 }
  0x5a   : > { %497 = vrot.lane.b32.xlu2 %v2724_v38, %s2532_s2  ;;  %v2813_v0 = vld [vmem:[#allocation2 + $0x159] sm:$0xff]  ;;  %3803 = vst [vmem:[#allocation6_spill] sm:$0xff] %v2829_v6 }
  0x5b   : > { %505 = vrot.lane.b32.xlu0 %v2726_v39, %s2532_s2  ;;  %380 = vst.msk [vmem:[#allocation3 + $0x8] sm:$0xff] %vm268_vm0, %v348_v5  ;;  %v2926_v5 = vld [vmem:[#allocation2 + $0x92] sm:$0xff] }
  0x5c   : > { %3804 = vst [vmem:[#allocation7_spill] sm:$0xff] %v2832_v9 }
  0x5d   : > { %382 = vst.msk [vmem:[#allocation3 + $0x18] sm:$0xff] %vm268_vm0, %v2837_v10 }
  0x5e   : > { %387 = vst.msk [vmem:[#allocation3 + $0x40] sm:$0xff] %vm268_vm0, %v2843_v11 }
  0x5f   : > { %3805 = vst [vmem:[#allocation8_spill] sm:$0xff] %v2849_v13 }
  0x60   : > { %385 = vst.msk [vmem:[#allocation3 + $0x30] sm:$0xff] %vm268_vm0, %v2845_v12 }
  0x61   : > { %507 = vrot.lane.b32.xlu1 %v2740_v43, %s2532_s2  ;;  %3806 = vst [vmem:[#allocation9_spill] sm:$0xff] %v2853_v14 }
  0x62   : > { %503 = vrot.lane.b32.xlu2 %v2742_v44, %s2532_s2  ;;  %3807 = vst [vmem:[#allocation10_spill] sm:$0xff] %v2855_v16 }
  0x63   : > { %511 = vrot.lane.b32.xlu0 %v2744_v45, %s2532_s2  ;;  %386 = vst.msk [vmem:[#allocation3 + $0x38] sm:$0xff] %vm268_vm0, %v2861_v17 }
  0x64   : > { %3808 = vst [vmem:[#allocation11_spill] sm:$0xff] %v2872_v23 }
  0x65   : > { %390 = vst.msk [vmem:[#allocation3 + $0x58] sm:$0xff] %vm268_vm0, %v2867_v21 }
  0x66   : > { %3809 = vst [vmem:[#allocation12_spill] sm:$0xff] %v2876_v24 }
  0x67   : > { %388 = vst.msk [vmem:[#allocation3 + $0x48] sm:$0xff] %vm268_vm0, %v2869_v22 }
  0x68   : > { %3810 = vst [vmem:[#allocation13_spill] sm:$0xff] %v2880_v28 }
  0x69   : > { %513 = vrot.lane.b32.xlu1 %v2756_v48, %s2532_s2  ;;  %389 = vst.msk [vmem:[#allocation3 + $0x50] sm:$0xff] %vm268_vm0, %v2886_v29 }
  0x6a   : > { %509 = vrot.lane.b32.xlu2 %v2758_v49, %s2532_s2  ;;  %3811 = vst [vmem:[#allocation14_spill] sm:$0xff] %v2897_v36 }
  0x6b   : > { %517 = vrot.lane.b32.xlu0 %v2760_v50, %s2532_s2  ;;  %393 = vst.msk [vmem:[#allocation3 + $0x70] sm:$0xff] %vm268_vm0, %v2892_v34 }
  0x6c   : > { %3812 = vst [vmem:[#allocation15_spill] sm:$0xff] %v2901_v40 }
  0x6d   : > { %391 = vst.msk [vmem:[#allocation3 + $0x60] sm:$0xff] %vm268_vm0, %v2894_v35 }
  0x6e   : > { %3813 = vst [vmem:[#allocation16_spill] sm:$0xff] %v2905_v41 }
  0x6f   : > { %392 = vst.msk [vmem:[#allocation3 + $0x68] sm:$0xff] %vm268_vm0, %v2911_v42 }
  0x70   : > { %3815 = vst [vmem:[#allocation18_spill] sm:$0xff] %v2926_v5 }
  0x71   : > { %519 = vrot.lane.b32.xlu1 %v2770_v52, %s2532_s2  ;;  %396 = vst.msk [vmem:[#allocation3 + $0x88] sm:$0xff] %vm268_vm0, %v2918_v51 }
  0x72   : > { %515 = vrot.lane.b32.xlu2 %v2772_v53, %s2532_s2 }
  0x73   : > { %523 = vrot.lane.b32.xlu0 %v2774_v54, %s2532_s2 }
  0x79   : > { %525 = vrot.lane.b32.xlu1 %v2782_v55, %s2532_s2 }
  0x7a   : > { %521 = vrot.lane.b32.xlu2 %v2784_v56, %s2532_s2 }
  0x7b   : > { %529 = vrot.lane.b32.xlu0 %v2786_v57, %s2532_s2 }
  0x81   : > { %531 = vrot.lane.b32.xlu1 %v2794_v58, %s2532_s2 }
  0x82   : > { %527 = vrot.lane.b32.xlu2 %v2796_v59, %s2532_s2 }
  0x83   : > { %535 = vrot.lane.b32.xlu0 %v2798_v60, %s2532_s2 }
  0x87   : > { %v476_v1 = vpop.permute.xlu0 %475 }
  0x88   : > { %572 = vst.msk [vmem:[#allocation3] sm:$0xff] %vm571_vm3, %v476_v1  ;;  %v2921_v1 = vld [vmem:[#allocation2 + $0xb0] sm:$0xff] }
  0x89   : > { %537 = vrot.lane.b32.xlu1 %v2811_v63, %s2532_s2  ;;  %394 = vst.msk [vmem:[#allocation3 + $0x78] sm:$0xff] %vm268_vm0, %v2921_v1 }
  0x8a   : > { %533 = vrot.lane.b32.xlu2 %v2813_v0, %s2532_s2 }
  0x8b   : > { %670 = vrot.lane.b32.xlu0 %v605_v2, %s2533_s23  ;;  %v2924_v2 = vld [vmem:[#allocation2 + $0xaa] sm:$0xff] }
  0x8c   : > { %3814 = vst [vmem:[#allocation17_spill] sm:$0xff] %v2924_v2 }
  0x91   : > { %672 = vrot.lane.b32.xlu1 %v2829_v6, %s2533_s23 }
  0x92   : > { %668 = vrot.lane.b32.xlu2 %v604_v8, %s2533_s23  ;;  %v2930_v8 = vld [vmem:[#allocation2 + $0xc2] sm:$0xff] }
  0x93   : > { %676 = vrot.lane.b32.xlu0 %v2832_v9, %s2533_s23  ;;  %3816 = vst [vmem:[#allocation19_spill] sm:$0xff] %v2930_v8  ;;  %v3034_v9 = vld [vmem:[#allocation2 + $0x122] sm:$0xff] }
  0x94   : > { %3827 = vst [vmem:[#allocation30_spill] sm:$0xff] %v3034_v9 }
  0x99   : > { %678 = vrot.lane.b32.xlu1 %v2849_v13, %s2533_s23 }
  0x9a   : > { %674 = vrot.lane.b32.xlu2 %v2853_v14, %s2533_s23  ;;  %v3053_v14 = vld [vmem:[#allocation2 + $0x168] sm:$0xff] }
  0x9b   : > { %682 = vrot.lane.b32.xlu0 %v2855_v16, %s2533_s23  ;;  %v3007_v16 = vld [vmem:[#allocation2 + $0xfa] sm:$0xff]  ;;  %409 = vst.msk [vmem:[#allocation3 + $0xf0] sm:$0xff] %vm268_vm0, %v3053_v14 }
  0x9c   : > { %v484_v19 = vpop.permute.xlu2 %483  ;;  %3824 = vst [vmem:[#allocation27_spill] sm:$0xff] %v3007_v16 }
  0x9d   : > { %576 = vst.msk [vmem:[#allocation3 + $0x20] sm:$0xff] %vm571_vm3, %v484_v19  ;;  %v2938_v19 = vld [vmem:[#allocation2 + $0xc0] sm:$0xff] }
  0x9e   : > { %395 = vst.msk [vmem:[#allocation3 + $0x80] sm:$0xff] %vm268_vm0, %v2938_v19 }
  0xa1   : > { %684 = vrot.lane.b32.xlu1 %v2872_v23, %s2533_s23 }
  0xa2   : > { %680 = vrot.lane.b32.xlu2 %v2876_v24, %s2533_s23  ;;  %v3026_v24 = vld [vmem:[#allocation2 + $0x158] sm:$0xff] }
  0xa3   : > { %688 = vrot.lane.b32.xlu0 %v2880_v28, %s2533_s23  ;;  %v2980_v28 = vld [vmem:[#allocation2 + $0xda] sm:$0xff]  ;;  %408 = vst.msk [vmem:[#allocation3 + $0xe8] sm:$0xff] %vm268_vm0, %v3026_v24 }
  0xa4   : > { %v486_v30 = vpop.permute.xlu2 %485  ;;  %3821 = vst [vmem:[#allocation24_spill] sm:$0xff] %v2980_v28 }
  0xa5   : > { %577 = vst.msk [vmem:[#allocation3 + $0x28] sm:$0xff] %vm571_vm3, %v486_v30 }
  0xa9   : > { %690 = vrot.lane.b32.xlu1 %v2897_v36, %s2533_s23  ;;  %v2951_v36 = vld [vmem:[#allocation2 + $0xca] sm:$0xff] }
  0xaa   : > { %686 = vrot.lane.b32.xlu2 %v2901_v40, %s2533_s23  ;;  %3817 = vst [vmem:[#allocation20_spill] sm:$0xff] %v2951_v36  ;;  %v2999_v40 = vld [vmem:[#allocation2 + $0x138] sm:$0xff] }
  0xab   : > { %694 = vrot.lane.b32.xlu0 %v2905_v41, %s2533_s23  ;;  %v480_v46 = vpop.permute.xlu1 %479  ;;  %v2953_v41 = vld [vmem:[#allocation2 + $0xb2] sm:$0xff]  ;;  %405 = vst.msk [vmem:[#allocation3 + $0xd0] sm:$0xff] %vm268_vm0, %v2999_v40 }
  0xac   : > { %574 = vst.msk [vmem:[#allocation3 + $0x10] sm:$0xff] %vm571_vm3, %v480_v46  ;;  %v492_v47 = vpop.permute.xlu2 %491 }
  0xad   : > { %v478_v62 = vpop.permute.xlu0 %477  ;;  %580 = vst.msk [vmem:[#allocation3 + $0x40] sm:$0xff] %vm571_vm3, %v492_v47  ;;  %v2945_v47 = vld [vmem:[#allocation2 + $0xf0] sm:$0xff] }
  0xae   : > { %573 = vst.msk [vmem:[#allocation3 + $0x8] sm:$0xff] %vm571_vm3, %v478_v62 }
  0xaf   : > { %3818 = vst [vmem:[#allocation21_spill] sm:$0xff] %v2953_v41 }
  0xb0   : > { %399 = vst.msk [vmem:[#allocation3 + $0xa0] sm:$0xff] %vm268_vm0, %v2945_v47 }
  0xb1   : > { %696 = vrot.lane.b32.xlu1 %v2924_v2, %s2533_s23  ;;  %v2948_v2 = vld [vmem:[#allocation2 + $0xd8] sm:$0xff] }
  0xb2   : > { %692 = vrot.lane.b32.xlu2 %v2926_v5, %s2533_s23  ;;  %397 = vst.msk [vmem:[#allocation3 + $0x90] sm:$0xff] %vm268_vm0, %v2948_v2  ;;  %v2972_v5 = vld [vmem:[#allocation2 + $0x110] sm:$0xff] }
  0xb3   : > { %700 = vrot.lane.b32.xlu0 %v2930_v8, %s2533_s23  ;;  %v482_v30 = vpop.permute.xlu1 %481  ;;  %v2957_v8 = vld [vmem:[#allocation2 + $0xe2] sm:$0xff]  ;;  %402 = vst.msk [vmem:[#allocation3 + $0xb8] sm:$0xff] %vm268_vm0, %v2972_v5 }
  0xb4   : > { %575 = vst.msk [vmem:[#allocation3 + $0x18] sm:$0xff] %vm571_vm3, %v482_v30  ;;  %v498_v46 = vpop.permute.xlu2 %497  ;;  %v2965_v30 = vld [vmem:[#allocation2 + $0xe0] sm:$0xff] }
  0xb5   : > { %v488_v62 = vpop.permute.xlu0 %487  ;;  %583 = vst.msk [vmem:[#allocation3 + $0x58] sm:$0xff] %vm571_vm3, %v498_v46 }
  0xb6   : > { %578 = vst.msk [vmem:[#allocation3 + $0x30] sm:$0xff] %vm571_vm3, %v488_v62 }
  0xb7   : > { %3819 = vst [vmem:[#allocation22_spill] sm:$0xff] %v2957_v8 }
  0xb8   : > { %398 = vst.msk [vmem:[#allocation3 + $0x98] sm:$0xff] %vm268_vm0, %v2965_v30 }
  0xb9   : > { %702 = vrot.lane.b32.xlu1 %v2951_v36, %s2533_s23  ;;  %v2975_v36 = vld [vmem:[#allocation2 + $0xf8] sm:$0xff] }
  0xba   : > { %698 = vrot.lane.b32.xlu2 %v2953_v41, %s2533_s23  ;;  %v2978_v41 = vld [vmem:[#allocation2 + $0xf2] sm:$0xff]  ;;  %400 = vst.msk [vmem:[#allocation3 + $0xa8] sm:$0xff] %vm268_vm0, %v2975_v36 }
  0xbb   : > { %706 = vrot.lane.b32.xlu0 %v2957_v8, %s2533_s23  ;;  %v490_v46 = vpop.permute.xlu1 %489  ;;  %3820 = vst [vmem:[#allocation23_spill] sm:$0xff] %v2978_v41  ;;  %v2984_v8 = vld [vmem:[#allocation2 + $0x10a] sm:$0xff] }
  0xbc   : > { %579 = vst.msk [vmem:[#allocation3 + $0x38] sm:$0xff] %vm571_vm3, %v490_v46  ;;  %v504_v62 = vpop.permute.xlu2 %503  ;;  %v2992_v46 = vld [vmem:[#allocation2 + $0x108] sm:$0xff] }
  0xbd   : > { %v494_v23 = vpop.permute.xlu0 %493  ;;  %586 = vst.msk [vmem:[#allocation3 + $0x70] sm:$0xff] %vm571_vm3, %v504_v62 }
  0xbe   : > { %581 = vst.msk [vmem:[#allocation3 + $0x48] sm:$0xff] %vm571_vm3, %v494_v23 }
  0xbf   : > { %3822 = vst [vmem:[#allocation25_spill] sm:$0xff] %v2984_v8 }
  0xc0   : > { %401 = vst.msk [vmem:[#allocation3 + $0xb0] sm:$0xff] %vm268_vm0, %v2992_v46 }
  0xc1   : > { %708 = vrot.lane.b32.xlu1 %v2978_v41, %s2533_s23  ;;  %v3002_v41 = vld [vmem:[#allocation2 + $0x120] sm:$0xff] }
  0xc2   : > { %704 = vrot.lane.b32.xlu2 %v2980_v28, %s2533_s23  ;;  %v3005_v28 = vld [vmem:[#allocation2 + $0x112] sm:$0xff]  ;;  %403 = vst.msk [vmem:[#allocation3 + $0xc0] sm:$0xff] %vm268_vm0, %v3002_v41 }
  0xc3   : > { %712 = vrot.lane.b32.xlu0 %v2984_v8, %s2533_s23  ;;  %v496_v23 = vpop.permute.xlu1 %495  ;;  %3823 = vst [vmem:[#allocation26_spill] sm:$0xff] %v3005_v28  ;;  %v3011_v8 = vld [vmem:[#allocation2 + $0x12a] sm:$0xff] }
  0xc4   : > { %582 = vst.msk [vmem:[#allocation3 + $0x50] sm:$0xff] %vm571_vm3, %v496_v23  ;;  %v510_v62 = vpop.permute.xlu2 %509  ;;  %v3019_v23 = vld [vmem:[#allocation2 + $0x128] sm:$0xff] }
  0xc5   : > { %v500_v13 = vpop.permute.xlu0 %499  ;;  %589 = vst.msk [vmem:[#allocation3 + $0x88] sm:$0xff] %vm571_vm3, %v510_v62 }
  0xc6   : > { %584 = vst.msk [vmem:[#allocation3 + $0x60] sm:$0xff] %vm571_vm3, %v500_v13 }
  0xc7   : > { %3825 = vst [vmem:[#allocation28_spill] sm:$0xff] %v3011_v8 }
  0xc8   : > { %404 = vst.msk [vmem:[#allocation3 + $0xc8] sm:$0xff] %vm268_vm0, %v3019_v23 }
  0xc9   : > { %714 = vrot.lane.b32.xlu1 %v3005_v28, %s2533_s23  ;;  %v3029_v28 = vld [vmem:[#allocation2 + $0x140] sm:$0xff] }
  0xca   : > { %710 = vrot.lane.b32.xlu2 %v3007_v16, %s2533_s23  ;;  %v3032_v16 = vld [vmem:[#allocation2 + $0x13a] sm:$0xff]  ;;  %406 = vst.msk [vmem:[#allocation3 + $0xd8] sm:$0xff] %vm268_vm0, %v3029_v28 }
  0xcb   : > { %718 = vrot.lane.b32.xlu0 %v3011_v8, %s2533_s23  ;;  %v502_v13 = vpop.permute.xlu1 %501  ;;  %3826 = vst [vmem:[#allocation29_spill] sm:$0xff] %v3032_v16  ;;  %v3038_v8 = vld [vmem:[#allocation2 + $0x152] sm:$0xff] }
  0xcc   : > { %585 = vst.msk [vmem:[#allocation3 + $0x68] sm:$0xff] %vm571_vm3, %v502_v13  ;;  %v516_v62 = vpop.permute.xlu2 %515  ;;  %v3046_v13 = vld [vmem:[#allocation2 + $0x150] sm:$0xff] }
  0xcd   : > { %v506_v6 = vpop.permute.xlu0 %505  ;;  %592 = vst.msk [vmem:[#allocation3 + $0xa0] sm:$0xff] %vm571_vm3, %v516_v62 }
  0xce   : > { %587 = vst.msk [vmem:[#allocation3 + $0x78] sm:$0xff] %vm571_vm3, %v506_v6 }
  0xcf   : > { %3828 = vst [vmem:[#allocation31_spill] sm:$0xff] %v3038_v8 }
  0xd0   : > { %407 = vst.msk [vmem:[#allocation3 + $0xe0] sm:$0xff] %vm268_vm0, %v3046_v13 }
  0xd1   : > { %720 = vrot.lane.b32.xlu1 %v3032_v16, %s2533_s23  ;;  %v3057_v16 = vld [vmem:[#allocation2 + $0x15a] sm:$0xff] }
  0xd2   : > { %716 = vrot.lane.b32.xlu2 %v3034_v9, %s2533_s23  ;;  %3829 = vst [vmem:[#allocation32_spill] sm:$0xff] %v3057_v16  ;;  %v3059_v9 = vld [vmem:[#allocation2 + $0x142] sm:$0xff] }
  0xd3   : > { %724 = vrot.lane.b32.xlu0 %v3038_v8, %s2533_s23  ;;  %v508_v6 = vpop.permute.xlu1 %507  ;;  %3830 = vst [vmem:[#allocation33_spill] sm:$0xff] %v3059_v9  ;;  %v3063_v8 = vld [vmem:[#allocation2 + $0x172] sm:$0xff] }
  0xd4   : > { %588 = vst.msk [vmem:[#allocation3 + $0x80] sm:$0xff] %vm571_vm3, %v508_v6  ;;  %v522_v62 = vpop.permute.xlu2 %521  ;;  %v3069_v6 = vld [vmem:[#allocation2 + $0x170] sm:$0xff] }
  0xd5   : > { %v512_v63 = vpop.permute.xlu0 %511  ;;  %595 = vst.msk [vmem:[#allocation3 + $0xb8] sm:$0xff] %vm571_vm3, %v522_v62 }
  0xd6   : > { %590 = vst.msk [vmem:[#allocation3 + $0x90] sm:$0xff] %vm571_vm3, %v512_v63 }
  0xd7   : > { %3831 = vst [vmem:[#allocation34_spill] sm:$0xff] %v3063_v8 }
  0xd8   : > { %410 = vst.msk [vmem:[#allocation3 + $0xf8] sm:$0xff] %vm268_vm0, %v3069_v6 }
  0xd9   : > { %726 = vrot.lane.b32.xlu1 %v3057_v16, %s2533_s23  ;;  %v3078_v16 = vld [vmem:[#allocation2 + $0x16a] sm:$0xff] }
  0xda   : > { %722 = vrot.lane.b32.xlu2 %v3059_v9, %s2533_s23 }
  0xdb   : > { %730 = vrot.lane.b32.xlu0 %v3063_v8, %s2533_s23  ;;  %v514_v63 = vpop.permute.xlu1 %513 }
  0xdc   : > { %591 = vst.msk [vmem:[#allocation3 + $0x98] sm:$0xff] %vm571_vm3, %v514_v63  ;;  %v528_v62 = vpop.permute.xlu2 %527 }
  0xdd   : > { %v518_v58 = vpop.permute.xlu0 %517  ;;  %598 = vst.msk [vmem:[#allocation3 + $0xd0] sm:$0xff] %vm571_vm3, %v528_v62 }
  0xde   : > { %593 = vst.msk [vmem:[#allocation3 + $0xa8] sm:$0xff] %vm571_vm3, %v518_v58 }
  0xe1   : > { %861 = vrot.lane.b32.xlu1 %v2820_v3, %s2534_s24 }
  0xe2   : > { %728 = vrot.lane.b32.xlu2 %v3078_v16, %s2533_s23 }
  0xe3   : > { %865 = vrot.lane.b32.xlu0 %v2806_v61, %s2534_s24  ;;  %v520_v8 = vpop.permute.xlu1 %519 }
  0xe4   : > { %594 = vst.msk [vmem:[#allocation3 + $0xb0] sm:$0xff] %vm571_vm3, %v520_v8  ;;  %v534_v63 = vpop.permute.xlu2 %533  ;;  %v266_v8 = vld [vmem:[%s2623_s22 + $0xf0] sm:$0xff] }
  0xe5   : > { %v524_v9 = vpop.permute.xlu0 %523  ;;  %601 = vst.msk [vmem:[#allocation3 + $0xe8] sm:$0xff] %vm571_vm3, %v534_v63  ;;  %v267_v63 = vld [vmem:[%s2623_s22 + $0xf8] sm:$0xff] }
  0xe6   : > { %596 = vst.msk [vmem:[#allocation3 + $0xc0] sm:$0xff] %vm571_vm3, %v524_v9 }
  0xe7   : > { %345 = vst.msk [vmem:[#allocation2 + $0x181] sm:$0xff] %vm268_vm0, %v266_v8 }
  0xe8   : > { %346 = vst.msk [vmem:[#allocation2 + $0x189] sm:$0xff] %vm268_vm0, %v267_v63 }
  0xe9   : > { %867 = vrot.lane.b32.xlu1 %v2825_v4, %s2534_s24 }
  0xea   : > { %863 = vrot.lane.b32.xlu2 %v2837_v10, %s2534_s24 }
  0xeb   : > { %871 = vrot.lane.b32.xlu0 %v2861_v17, %s2534_s24  ;;  %v526_v58 = vpop.permute.xlu1 %525 }
  0xec   : > { %597 = vst.msk [vmem:[#allocation3 + $0xc8] sm:$0xff] %vm571_vm3, %v526_v58  ;;  %v669_v61 = vpop.permute.xlu2 %668 }
  0xed   : > { %v530_v3 = vpop.permute.xlu0 %529  ;;  %765 = vst.msk [vmem:[#allocation3] sm:$0xff] %vm764_vm4, %v669_v61 }
  0xee   : > { %599 = vst.msk [vmem:[#allocation3 + $0xd8] sm:$0xff] %vm571_vm3, %v530_v3 }
  0xf1   : > { %873 = vrot.lane.b32.xlu1 %v2843_v11, %s2534_s24 }
  0xf2   : > { %869 = vrot.lane.b32.xlu2 %v2845_v12, %s2534_s24 }
  0xf3   : > { %877 = vrot.lane.b32.xlu0 %v2886_v29, %s2534_s24  ;;  %v532_v4 = vpop.permute.xlu1 %531 }
  0xf4   : > { %600 = vst.msk [vmem:[#allocation3 + $0xe0] sm:$0xff] %vm571_vm3, %v532_v4  ;;  %v675_v9 = vpop.permute.xlu2 %674  ;;  %v827_v4 = vld [vmem:[#allocation2 + $0x180] sm:$0xff] }
  0xf5   : > { %v536_v10 = vpop.permute.xlu0 %535  ;;  %768 = vst.msk [vmem:[#allocation3 + $0x18] sm:$0xff] %vm764_vm4, %v675_v9  ;;  %v828_v9 = vld [vmem:[#allocation2 + $0x188] sm:$0xff] }
  0xf6   : > { %602 = vst.msk [vmem:[#allocation3 + $0xf0] sm:$0xff] %vm571_vm3, %v536_v10 }
  0xf9   : > { %879 = vrot.lane.b32.xlu1 %v2867_v21, %s2534_s24 }
  0xfa   : > { %875 = vrot.lane.b32.xlu2 %v2869_v22, %s2534_s24 }
  0xfb   : > { %883 = vrot.lane.b32.xlu0 %v2911_v42, %s2534_s24  ;;  %v538_v11 = vpop.permute.xlu1 %537 }
  0xfc   : > { %603 = vst.msk [vmem:[#allocation3 + $0xf8] sm:$0xff] %vm571_vm3, %v538_v11  ;;  %v681_v12 = vpop.permute.xlu2 %680 }
  0xfd   : > { %v671_v17 = vpop.permute.xlu0 %670  ;;  %771 = vst.msk [vmem:[#allocation3 + $0x30] sm:$0xff] %vm764_vm4, %v681_v12  ;;  %v1020_v12 = vld [vmem:[#allocation2 + $0x181] sm:$0xff] }
  0xfe   : > { %766 = vst.msk [vmem:[#allocation3 + $0x8] sm:$0xff] %vm764_vm4, %v671_v17 }
 0x101   : > { %885 = vrot.lane.b32.xlu1 %v2892_v34, %s2534_s24 }
 0x102   : > { %881 = vrot.lane.b32.xlu2 %v2894_v35, %s2534_s24 }
 0x103   : > { %889 = vrot.lane.b32.xlu0 %v2938_v19, %s2534_s24  ;;  %v673_v21 = vpop.permute.xlu1 %672 }
 0x104   : > { %767 = vst.msk [vmem:[#allocation3 + $0x10] sm:$0xff] %vm764_vm4, %v673_v21  ;;  %v687_v22 = vpop.permute.xlu2 %686  ;;  %v1021_v21 = vld [vmem:[#allocation2 + $0x189] sm:$0xff] }
 0x105   : > { %v677_v29 = vpop.permute.xlu0 %676  ;;  %774 = vst.msk [vmem:[#allocation3 + $0x48] sm:$0xff] %vm764_vm4, %v687_v22  ;;  %v3833_v22 = vld [vmem:[#allocation5_spill] sm:$0xff] }
 0x106   : > { %769 = vst.msk [vmem:[#allocation3 + $0x20] sm:$0xff] %vm764_vm4, %v677_v29 }
 0x109   : > { %891 = vrot.lane.b32.xlu1 %v2918_v51, %s2534_s24 }
 0x10a   : > { %887 = vrot.lane.b32.xlu2 %v2921_v1, %s2534_s24 }
 0x10b   : > { %895 = vrot.lane.b32.xlu0 %v2965_v30, %s2534_s24  ;;  %v679_v34 = vpop.permute.xlu1 %678 }
 0x10c   : > { %770 = vst.msk [vmem:[#allocation3 + $0x28] sm:$0xff] %vm764_vm4, %v679_v34  ;;  %v693_v19 = vpop.permute.xlu2 %692 }
 0x10d   : > { %v683_v62 = vpop.permute.xlu0 %682  ;;  %777 = vst.msk [vmem:[#allocation3 + $0x60] sm:$0xff] %vm764_vm4, %v693_v19  ;;  %v3835_v19 = vld [vmem:[#allocation7_spill] sm:$0xff] }
 0x10e   : > { %772 = vst.msk [vmem:[#allocation3 + $0x38] sm:$0xff] %vm764_vm4, %v683_v62  ;;  %v3836_v62 = vld [vmem:[#allocation6_spill] sm:$0xff] }
 0x111   : > { %897 = vrot.lane.b32.xlu1 %v2945_v47, %s2534_s24 }
 0x112   : > { %893 = vrot.lane.b32.xlu2 %v2948_v2, %s2534_s24 }
 0x113   : > { %901 = vrot.lane.b32.xlu0 %v2992_v46, %s2534_s24  ;;  %v685_v51 = vpop.permute.xlu1 %684 }
 0x114   : > { %773 = vst.msk [vmem:[#allocation3 + $0x40] sm:$0xff] %vm764_vm4, %v685_v51  ;;  %v699_v1 = vpop.permute.xlu2 %698  ;;  %v3837_v51 = vld [vmem:[#allocation12_spill] sm:$0xff] }
 0x115   : > { %v689_v30 = vpop.permute.xlu0 %688  ;;  %780 = vst.msk [vmem:[#allocation3 + $0x78] sm:$0xff] %vm764_vm4, %v699_v1 }
 0x116   : > { %775 = vst.msk [vmem:[#allocation3 + $0x50] sm:$0xff] %vm764_vm4, %v689_v30 }
 0x119   : > { %903 = vrot.lane.b32.xlu1 %v2972_v5, %s2534_s24 }
 0x11a   : > { %899 = vrot.lane.b32.xlu2 %v2975_v36, %s2534_s24 }
 0x11b   : > { %907 = vrot.lane.b32.xlu0 %v3019_v23, %s2534_s24  ;;  %v691_v2 = vpop.permute.xlu1 %690 }
 0x11c   : > { %776 = vst.msk [vmem:[#allocation3 + $0x58] sm:$0xff] %vm764_vm4, %v691_v2  ;;  %v705_v46 = vpop.permute.xlu2 %704  ;;  %v3838_v2 = vld [vmem:[#allocation10_spill] sm:$0xff] }
 0x11d   : > { %v695_v58 = vpop.permute.xlu0 %694  ;;  %783 = vst.msk [vmem:[#allocation3 + $0x90] sm:$0xff] %vm764_vm4, %v705_v46  ;;  %v3839_v46 = vld [vmem:[#allocation8_spill] sm:$0xff] }
 0x11e   : > { %778 = vst.msk [vmem:[#allocation3 + $0x68] sm:$0xff] %vm764_vm4, %v695_v58  ;;  %v3840_v58 = vld [vmem:[#allocation15_spill] sm:$0xff] }
 0x121   : > { %909 = vrot.lane.b32.xlu1 %v2999_v40, %s2534_s24 }
 0x122   : > { %905 = vrot.lane.b32.xlu2 %v3002_v41, %s2534_s24 }
 0x123   : > { %913 = vrot.lane.b32.xlu0 %v3046_v13, %s2534_s24  ;;  %v697_v5 = vpop.permute.xlu1 %696 }
 0x124   : > { %779 = vst.msk [vmem:[#allocation3 + $0x70] sm:$0xff] %vm764_vm4, %v697_v5  ;;  %v711_v23 = vpop.permute.xlu2 %710 }
 0x125   : > { %v701_v61 = vpop.permute.xlu0 %700  ;;  %786 = vst.msk [vmem:[#allocation3 + $0xa8] sm:$0xff] %vm764_vm4, %v711_v23 }
 0x126   : > { %781 = vst.msk [vmem:[#allocation3 + $0x80] sm:$0xff] %vm764_vm4, %v701_v61 }
 0x129   : > { %915 = vrot.lane.b32.xlu1 %v3026_v24, %s2534_s24 }
 0x12a   : > { %911 = vrot.lane.b32.xlu2 %v3029_v28, %s2534_s24 }
 0x12b   : > { %919 = vrot.lane.b32.xlu0 %v3069_v6, %s2534_s24  ;;  %v703_v40 = vpop.permute.xlu1 %702 }
 0x12c   : > { %782 = vst.msk [vmem:[#allocation3 + $0x88] sm:$0xff] %vm764_vm4, %v703_v40  ;;  %v717_v41 = vpop.permute.xlu2 %716  ;;  %v3841_v40 = vld [vmem:[#allocation13_spill] sm:$0xff] }
 0x12d   : > { %v707_v3 = vpop.permute.xlu0 %706  ;;  %789 = vst.msk [vmem:[#allocation3 + $0xc0] sm:$0xff] %vm764_vm4, %v717_v41  ;;  %v3842_v41 = vld [vmem:[#allocation11_spill] sm:$0xff] }
 0x12e   : > { %784 = vst.msk [vmem:[#allocation3 + $0x98] sm:$0xff] %vm764_vm4, %v707_v3  ;;  %v3843_v3 = vld [vmem:[#allocation18_spill] sm:$0xff] }
 0x131   : > { %921 = vrot.lane.b32.xlu1 %v827_v4, %s2534_s24 }
 0x132   : > { %917 = vrot.lane.b32.xlu2 %v3053_v14, %s2534_s24 }
 0x133   : > { %1054 = vrot.lane.b32.xlu0 %v2640_v7, %s2535_s25  ;;  %v709_v24 = vpop.permute.xlu1 %708 }
 0x134   : > { %785 = vst.msk [vmem:[#allocation3 + $0xa0] sm:$0xff] %vm764_vm4, %v709_v24  ;;  %v723_v28 = vpop.permute.xlu2 %722 }
 0x135   : > { %v713_v6 = vpop.permute.xlu0 %712  ;;  %792 = vst.msk [vmem:[#allocation3 + $0xd8] sm:$0xff] %vm764_vm4, %v723_v28 }
 0x136   : > { %787 = vst.msk [vmem:[#allocation3 + $0xb0] sm:$0xff] %vm764_vm4, %v713_v6  ;;  %v3844_v6 = vld [vmem:[#allocation16_spill] sm:$0xff] }
 0x139   : > { %1056 = vrot.lane.b32.xlu1 %v2657_v15, %s2535_s25 }
 0x13a   : > { %923 = vrot.lane.b32.xlu2 %v828_v9, %s2534_s24  ;;  %v3845_v9 = vld [vmem:[#allocation14_spill] sm:$0xff] }
 0x13b   : > { %1060 = vrot.lane.b32.xlu0 %v2687_v26, %s2535_s25  ;;  %v715_v14 = vpop.permute.xlu1 %714 }
 0x13c   : > { %788 = vst.msk [vmem:[#allocation3 + $0xb8] sm:$0xff] %vm764_vm4, %v715_v14  ;;  %v729_v7 = vpop.permute.xlu2 %728  ;;  %v3846_v14 = vld [vmem:[#allocation21_spill] sm:$0xff] }
 0x13d   : > { %v719_v10 = vpop.permute.xlu0 %718  ;;  %795 = vst.msk [vmem:[#allocation3 + $0xf0] sm:$0xff] %vm764_vm4, %v729_v7 }
 0x13e   : > { %790 = vst.msk [vmem:[#allocation3 + $0xc8] sm:$0xff] %vm764_vm4, %v719_v10 }
 0x141   : > { %1062 = vrot.lane.b32.xlu1 %v2663_v18, %s2535_s25 }
 0x142   : > { %1058 = vrot.lane.b32.xlu2 %v2669_v20, %s2535_s25 }
 0x143   : > { %1066 = vrot.lane.b32.xlu0 %v2706_v32, %s2535_s25  ;;  %v721_v15 = vpop.permute.xlu1 %720 }
 0x144   : > { %791 = vst.msk [vmem:[#allocation3 + $0xd0] sm:$0xff] %vm764_vm4, %v721_v15  ;;  %v864_v26 = vpop.permute.xlu2 %863 }
 0x145   : > { %v725_v11 = vpop.permute.xlu0 %724  ;;  %959 = vst.msk [vmem:[#allocation3 + $0x8] sm:$0xff] %vm957_vm5, %v864_v26  ;;  %v3847_v26 = vld [vmem:[#allocation19_spill] sm:$0xff] }
 0x146   : > { %793 = vst.msk [vmem:[#allocation3 + $0xe0] sm:$0xff] %vm764_vm4, %v725_v11  ;;  %v3848_v11 = vld [vmem:[#allocation17_spill] sm:$0xff] }
 0x149   : > { %1068 = vrot.lane.b32.xlu1 %v2690_v27, %s2535_s25 }
 0x14a   : > { %1064 = vrot.lane.b32.xlu2 %v2684_v25, %s2535_s25 }
 0x14b   : > { %1072 = vrot.lane.b32.xlu0 %v2724_v38, %s2535_s25  ;;  %v727_v18 = vpop.permute.xlu1 %726 }
 0x14c   : > { %794 = vst.msk [vmem:[#allocation3 + $0xe8] sm:$0xff] %vm764_vm4, %v727_v18  ;;  %v870_v20 = vpop.permute.xlu2 %869  ;;  %v3849_v18 = vld [vmem:[#allocation24_spill] sm:$0xff] }
 0x14d   : > { %v731_v32 = vpop.permute.xlu0 %730  ;;  %962 = vst.msk [vmem:[#allocation3 + $0x20] sm:$0xff] %vm957_vm5, %v870_v20 }
 0x14e   : > { %796 = vst.msk [vmem:[#allocation3 + $0xf8] sm:$0xff] %vm764_vm4, %v731_v32 }
 0x151   : > { %1074 = vrot.lane.b32.xlu1 %v2708_v33, %s2535_s25 }
 0x152   : > { %1070 = vrot.lane.b32.xlu2 %v2704_v31, %s2535_s25 }
 0x153   : > { %1078 = vrot.lane.b32.xlu0 %v2742_v44, %s2535_s25  ;;  %v862_v25 = vpop.permute.xlu1 %861 }
 0x154   : > { %958 = vst.msk [vmem:[#allocation3] sm:$0xff] %vm957_vm5, %v862_v25  ;;  %v876_v27 = vpop.permute.xlu2 %875 }
 0x155   : > { %v866_v38 = vpop.permute.xlu0 %865  ;;  %965 = vst.msk [vmem:[#allocation3 + $0x38] sm:$0xff] %vm957_vm5, %v876_v27  ;;  %v3850_v27 = vld [vmem:[#allocation22_spill] sm:$0xff] }
 0x156   : > { %960 = vst.msk [vmem:[#allocation3 + $0x10] sm:$0xff] %vm957_vm5, %v866_v38  ;;  %v3851_v38 = vld [vmem:[#allocation20_spill] sm:$0xff] }
 0x159   : > { %1080 = vrot.lane.b32.xlu1 %v2726_v39, %s2535_s25 }
 0x15a   : > { %1076 = vrot.lane.b32.xlu2 %v2722_v37, %s2535_s25 }
 0x15b   : > { %1084 = vrot.lane.b32.xlu0 %v2758_v49, %s2535_s25  ;;  %v868_v31 = vpop.permute.xlu1 %867 }
 0x15c   : > { %961 = vst.msk [vmem:[#allocation3 + $0x18] sm:$0xff] %vm957_vm5, %v868_v31  ;;  %v882_v33 = vpop.permute.xlu2 %881  ;;  %v3852_v31 = vld [vmem:[#allocation27_spill] sm:$0xff] }
 0x15d   : > { %v872_v44 = vpop.permute.xlu0 %871  ;;  %968 = vst.msk [vmem:[#allocation3 + $0x50] sm:$0xff] %vm957_vm5, %v882_v33 }
 0x15e   : > { %963 = vst.msk [vmem:[#allocation3 + $0x28] sm:$0xff] %vm957_vm5, %v872_v44 }
 0x161   : > { %1086 = vrot.lane.b32.xlu1 %v2744_v45, %s2535_s25 }
 0x162   : > { %1082 = vrot.lane.b32.xlu2 %v2740_v43, %s2535_s25 }
 0x163   : > { %1090 = vrot.lane.b32.xlu0 %v2772_v53, %s2535_s25  ;;  %v874_v37 = vpop.permute.xlu1 %873 }
 0x164   : > { %964 = vst.msk [vmem:[#allocation3 + $0x30] sm:$0xff] %vm957_vm5, %v874_v37  ;;  %v888_v39 = vpop.permute.xlu2 %887 }
 0x165   : > { %v878_v49 = vpop.permute.xlu0 %877  ;;  %971 = vst.msk [vmem:[#allocation3 + $0x68] sm:$0xff] %vm957_vm5, %v888_v39  ;;  %v3853_v39 = vld [vmem:[#allocation25_spill] sm:$0xff] }
 0x166   : > { %966 = vst.msk [vmem:[#allocation3 + $0x40] sm:$0xff] %vm957_vm5, %v878_v49  ;;  %v3854_v49 = vld [vmem:[#allocation23_spill] sm:$0xff] }
 0x169   : > { %1092 = vrot.lane.b32.xlu1 %v2760_v50, %s2535_s25 }
 0x16a   : > { %1088 = vrot.lane.b32.xlu2 %v2756_v48, %s2535_s25 }
 0x16b   : > { %1096 = vrot.lane.b32.xlu0 %v2784_v56, %s2535_s25  ;;  %v880_v43 = vpop.permute.xlu1 %879 }
 0x16c   : > { %967 = vst.msk [vmem:[#allocation3 + $0x48] sm:$0xff] %vm957_vm5, %v880_v43  ;;  %v894_v45 = vpop.permute.xlu2 %893  ;;  %v3855_v43 = vld [vmem:[#allocation30_spill] sm:$0xff] }
 0x16d   : > { %v884_v53 = vpop.permute.xlu0 %883  ;;  %974 = vst.msk [vmem:[#allocation3 + $0x80] sm:$0xff] %vm957_vm5, %v894_v45 }
 0x16e   : > { %969 = vst.msk [vmem:[#allocation3 + $0x58] sm:$0xff] %vm957_vm5, %v884_v53 }
 0x171   : > { %1098 = vrot.lane.b32.xlu1 %v2774_v54, %s2535_s25 }
 0x172   : > { %1094 = vrot.lane.b32.xlu2 %v2770_v52, %s2535_s25 }
 0x173   : > { %1102 = vrot.lane.b32.xlu0 %v2796_v59, %s2535_s25  ;;  %v886_v48 = vpop.permute.xlu1 %885 }
 0x174   : > { %970 = vst.msk [vmem:[#allocation3 + $0x60] sm:$0xff] %vm957_vm5, %v886_v48  ;;  %v900_v50 = vpop.permute.xlu2 %899 }
 0x175   : > { %v890_v56 = vpop.permute.xlu0 %889  ;;  %977 = vst.msk [vmem:[#allocation3 + $0x98] sm:$0xff] %vm957_vm5, %v900_v50  ;;  %v3856_v50 = vld [vmem:[#allocation28_spill] sm:$0xff] }
 0x176   : > { %972 = vst.msk [vmem:[#allocation3 + $0x70] sm:$0xff] %vm957_vm5, %v890_v56  ;;  %v3857_v56 = vld [vmem:[#allocation26_spill] sm:$0xff] }
 0x179   : > { %1104 = vrot.lane.b32.xlu1 %v2786_v57, %s2535_s25  ;;  %v3832_v57 = vld [vmem:[#allocation4_spill] sm:$0xff] }
 0x17a   : > { %1100 = vrot.lane.b32.xlu2 %v2782_v55, %s2535_s25 }
 0x17b   : > { %1108 = vrot.lane.b32.xlu0 %v2813_v0, %s2535_s25  ;;  %v892_v52 = vpop.permute.xlu1 %891 }
 0x17c   : > { %973 = vst.msk [vmem:[#allocation3 + $0x78] sm:$0xff] %vm957_vm5, %v892_v52  ;;  %v906_v54 = vpop.permute.xlu2 %905  ;;  %v3858_v52 = vld [vmem:[#allocation33_spill] sm:$0xff] }
 0x17d   : > { %v896_v59 = vpop.permute.xlu0 %895  ;;  %980 = vst.msk [vmem:[#allocation3 + $0xb0] sm:$0xff] %vm957_vm5, %v906_v54 }
 0x17e   : > { %975 = vst.msk [vmem:[#allocation3 + $0x88] sm:$0xff] %vm957_vm5, %v896_v59 }
 0x181   : > { %1110 = vrot.lane.b32.xlu1 %v2798_v60, %s2535_s25  ;;  %v3834_v60 = vld [vmem:[#allocation9_spill] sm:$0xff] }
 0x182   : > { %1106 = vrot.lane.b32.xlu2 %v3832_v57, %s2535_s25  ;;  %v3859_v57 = vld [vmem:[#allocation31_spill] sm:$0xff] }
 0x183   : > { %1114 = vrot.lane.b32.xlu0 %v1020_v12, %s2535_s25  ;;  %v898_v55 = vpop.permute.xlu1 %897 }
 0x184   : > { %976 = vst.msk [vmem:[#allocation3 + $0x90] sm:$0xff] %vm957_vm5, %v898_v55  ;;  %v912_v0 = vpop.permute.xlu2 %911  ;;  %v3860_v55 = vld [vmem:[#allocation29_spill] sm:$0xff] }
 0x185   : > { %v902_v17 = vpop.permute.xlu0 %901  ;;  %983 = vst.msk [vmem:[#allocation3 + $0xc8] sm:$0xff] %vm957_vm5, %v912_v0 }
 0x186   : > { %978 = vst.msk [vmem:[#allocation3 + $0xa0] sm:$0xff] %vm957_vm5, %v902_v17 }
 0x189   : > { %1116 = vrot.lane.b32.xlu1 %v1021_v21, %s2535_s25 }
 0x18a   : > { %1112 = vrot.lane.b32.xlu2 %v3833_v22, %s2535_s25  ;;  %v1570_v22 = vld [vmem:[#allocation2 + $0x31] sm:$0xff] }
 0x18b   : > { %1249 = vrot.lane.b32.xlu0 %v3834_v60, %s2536_s26  ;;  %v904_v29 = vpop.permute.xlu1 %903  ;;  %v3861_v60 = vld [vmem:[#allocation34_spill] sm:$0xff] }
 0x18c   : > { %979 = vst.msk [vmem:[#allocation3 + $0xa8] sm:$0xff] %vm957_vm5, %v904_v29  ;;  %v918_v8 = vpop.permute.xlu2 %917  ;;  %v3862_v29 = vld [vmem:[#allocation32_spill] sm:$0xff] }
 0x18d   : > { %v908_v34 = vpop.permute.xlu0 %907  ;;  %986 = vst.msk [vmem:[#allocation3 + $0xe0] sm:$0xff] %vm957_vm5, %v918_v8 }
 0x18e   : > { %981 = vst.msk [vmem:[#allocation3 + $0xb8] sm:$0xff] %vm957_vm5, %v908_v34 }
 0x191   : > { %1251 = vrot.lane.b32.xlu1 %v3835_v19, %s2536_s26  ;;  %v1763_v19 = vld [vmem:[#allocation2 + $0x32] sm:$0xff] }
 0x192   : > { %1247 = vrot.lane.b32.xlu2 %v3836_v62, %s2536_s26  ;;  %v1377_v62 = vld [vmem:[#allocation2 + $0x30] sm:$0xff] }
 0x193   : > { %1255 = vrot.lane.b32.xlu0 %v3837_v51, %s2536_s26  ;;  %v910_v1 = vpop.permute.xlu1 %909  ;;  %v1571_v51 = vld [vmem:[#allocation2 + $0x39] sm:$0xff] }
 0x194   : > { %982 = vst.msk [vmem:[#allocation3 + $0xc0] sm:$0xff] %vm957_vm5, %v910_v1  ;;  %v924_v30 = vpop.permute.xlu2 %923 }
 0x195   : > { %v914_v63 = vpop.permute.xlu0 %913  ;;  %989 = vst.msk [vmem:[#allocation3 + $0xf8] sm:$0xff] %vm957_vm5, %v924_v30 }
 0x196   : > { %984 = vst.msk [vmem:[#allocation3 + $0xd0] sm:$0xff] %vm957_vm5, %v914_v63 }
 0x199   : > { %1257 = vrot.lane.b32.xlu1 %v3838_v2, %s2536_s26  ;;  %v1764_v2 = vld [vmem:[#allocation2 + $0x3a] sm:$0xff] }
 0x19a   : > { %1253 = vrot.lane.b32.xlu2 %v3839_v46, %s2536_s26  ;;  %v1378_v46 = vld [vmem:[#allocation2 + $0x38] sm:$0xff] }
 0x19b   : > { %1261 = vrot.lane.b32.xlu0 %v3840_v58, %s2536_s26  ;;  %v916_v5 = vpop.permute.xlu1 %915 }
 0x19c   : > { %985 = vst.msk [vmem:[#allocation3 + $0xd8] sm:$0xff] %vm957_vm5, %v916_v5  ;;  %v1059_v23 = vpop.permute.xlu2 %1058 }
 0x19d   : > { %v920_v61 = vpop.permute.xlu0 %919  ;;  %1153 = vst.msk [vmem:[#allocation3 + $0x10] sm:$0xff] %vm1150_vm6, %v1059_v23 }
 0x19e   : > { %987 = vst.msk [vmem:[#allocation3 + $0xe8] sm:$0xff] %vm957_vm5, %v920_v61  ;;  %v1572_v61 = vld [vmem:[#allocation2 + $0x49] sm:$0xff] }
 0x1a1   : > { %1263 = vrot.lane.b32.xlu1 %v3841_v40, %s2536_s26  ;;  %v1379_v40 = vld [vmem:[#allocation2 + $0x48] sm:$0xff] }
 0x1a2   : > { %1259 = vrot.lane.b32.xlu2 %v3842_v41, %s2536_s26  ;;  %v1765_v41 = vld [vmem:[#allocation2 + $0x4a] sm:$0xff] }
 0x1a3   : > { %1267 = vrot.lane.b32.xlu0 %v3843_v3, %s2536_s26  ;;  %v922_v4 = vpop.permute.xlu1 %921 }
 0x1a4   : > { %988 = vst.msk [vmem:[#allocation3 + $0xf0] sm:$0xff] %vm957_vm5, %v922_v4  ;;  %v1065_v24 = vpop.permute.xlu2 %1064 }
 0x1a5   : > { %v1055_v28 = vpop.permute.xlu0 %1054  ;;  %1156 = vst.msk [vmem:[#allocation3 + $0x28] sm:$0xff] %vm1150_vm6, %v1065_v24  ;;  %v1771_v24 = vld [vmem:[#allocation2 + $0x92] sm:$0xff] }
 0x1a6   : > { %1151 = vst.msk [vmem:[#allocation3] sm:$0xff] %vm1150_vm6, %v1055_v28  ;;  %v1578_v28 = vld [vmem:[#allocation2 + $0x91] sm:$0xff] }
 0x1a9   : > { %1269 = vrot.lane.b32.xlu1 %v3844_v6, %s2536_s26 }
 0x1aa   : > { %1265 = vrot.lane.b32.xlu2 %v3845_v9, %s2536_s26 }
 0x1ab   : > { %1273 = vrot.lane.b32.xlu0 %v3846_v14, %s2536_s26  ;;  %v1057_v7 = vpop.permute.xlu1 %1056 }
 0x1ac   : > { %1152 = vst.msk [vmem:[#allocation3 + $0x8] sm:$0xff] %vm1150_vm6, %v1057_v7  ;;  %v1071_v10 = vpop.permute.xlu2 %1070  ;;  %v1573_v7 = vld [vmem:[#allocation2 + $0x51] sm:$0xff] }
 0x1ad   : > { %v1061_v15 = vpop.permute.xlu0 %1060  ;;  %1159 = vst.msk [vmem:[#allocation3 + $0x40] sm:$0xff] %vm1150_vm6, %v1071_v10  ;;  %v1380_v10 = vld [vmem:[#allocation2 + $0x50] sm:$0xff] }
 0x1ae   : > { %1154 = vst.msk [vmem:[#allocation3 + $0x18] sm:$0xff] %vm1150_vm6, %v1061_v15 }
 0x1b1   : > { %1275 = vrot.lane.b32.xlu1 %v3847_v26, %s2536_s26 }
 0x1b2   : > { %1271 = vrot.lane.b32.xlu2 %v3848_v11, %s2536_s26  ;;  %v1766_v11 = vld [vmem:[#allocation2 + $0x52] sm:$0xff] }
 0x1b3   : > { %1279 = vrot.lane.b32.xlu0 %v3849_v18, %s2536_s26  ;;  %v1063_v20 = vpop.permute.xlu1 %1062  ;;  %v1579_v18 = vld [vmem:[#allocation2 + $0x99] sm:$0xff] }
 0x1b4   : > { %1155 = vst.msk [vmem:[#allocation3 + $0x20] sm:$0xff] %vm1150_vm6, %v1063_v20  ;;  %v1077_v32 = vpop.permute.xlu2 %1076  ;;  %v1586_v20 = vld [vmem:[#allocation2 + $0xf1] sm:$0xff] }
 0x1b5   : > { %v1067_v25 = vpop.permute.xlu0 %1066  ;;  %1162 = vst.msk [vmem:[#allocation3 + $0x58] sm:$0xff] %vm1150_vm6, %v1077_v32 }
 0x1b6   : > { %1157 = vst.msk [vmem:[#allocation3 + $0x30] sm:$0xff] %vm1150_vm6, %v1067_v25 }
 0x1b9   : > { %1281 = vrot.lane.b32.xlu1 %v3850_v27, %s2536_s26  ;;  %v1779_v27 = vld [vmem:[#allocation2 + $0xf2] sm:$0xff] }
 0x1ba   : > { %1277 = vrot.lane.b32.xlu2 %v3851_v38, %s2536_s26  ;;  %v1772_v38 = vld [vmem:[#allocation2 + $0x9a] sm:$0xff] }
 0x1bb   : > { %1285 = vrot.lane.b32.xlu0 %v3852_v31, %s2536_s26  ;;  %v1069_v33 = vpop.permute.xlu1 %1068  ;;  %v1387_v31 = vld [vmem:[#allocation2 + $0xa8] sm:$0xff] }
 0x1bc   : > { %1158 = vst.msk [vmem:[#allocation3 + $0x38] sm:$0xff] %vm1150_vm6, %v1069_v33  ;;  %v1083_v44 = vpop.permute.xlu2 %1082 }
 0x1bd   : > { %v1073_v37 = vpop.permute.xlu0 %1072  ;;  %1165 = vst.msk [vmem:[#allocation3 + $0x70] sm:$0xff] %vm1150_vm6, %v1083_v44 }
 0x1be   : > { %1160 = vst.msk [vmem:[#allocation3 + $0x48] sm:$0xff] %vm1150_vm6, %v1073_v37 }
 0x1c1   : > { %1287 = vrot.lane.b32.xlu1 %v3853_v39, %s2536_s26  ;;  %v1574_v39 = vld [vmem:[#allocation2 + $0x61] sm:$0xff] }
 0x1c2   : > { %1283 = vrot.lane.b32.xlu2 %v3854_v49, %s2536_s26  ;;  %v1381_v49 = vld [vmem:[#allocation2 + $0x60] sm:$0xff] }
 0x1c3   : > { %1291 = vrot.lane.b32.xlu0 %v3855_v43, %s2536_s26  ;;  %v1075_v45 = vpop.permute.xlu1 %1074 }
 0x1c4   : > { %1161 = vst.msk [vmem:[#allocation3 + $0x50] sm:$0xff] %vm1150_vm6, %v1075_v45  ;;  %v1089_v53 = vpop.permute.xlu2 %1088 }
 0x1c5   : > { %v1079_v48 = vpop.permute.xlu0 %1078  ;;  %1168 = vst.msk [vmem:[#allocation3 + $0x88] sm:$0xff] %vm1150_vm6, %v1089_v53 }
 0x1c6   : > { %1163 = vst.msk [vmem:[#allocation3 + $0x60] sm:$0xff] %vm1150_vm6, %v1079_v48  ;;  %v1767_v48 = vld [vmem:[#allocation2 + $0x62] sm:$0xff] }
 0x1c9   : > { %1293 = vrot.lane.b32.xlu1 %v3856_v50, %s2536_s26  ;;  %v1580_v50 = vld [vmem:[#allocation2 + $0xa9] sm:$0xff] }
 0x1ca   : > { %1289 = vrot.lane.b32.xlu2 %v3857_v56, %s2536_s26  ;;  %v1587_v56 = vld [vmem:[#allocation2 + $0xf9] sm:$0xff] }
 0x1cb   : > { %1297 = vrot.lane.b32.xlu0 %v3858_v52, %s2536_s26  ;;  %v1081_v54 = vpop.permute.xlu1 %1080 }
 0x1cc   : > { %1164 = vst.msk [vmem:[#allocation3 + $0x68] sm:$0xff] %vm1150_vm6, %v1081_v54  ;;  %v1095_v59 = vpop.permute.xlu2 %1094 }
 0x1cd   : > { %v1085_v12 = vpop.permute.xlu0 %1084  ;;  %1171 = vst.msk [vmem:[#allocation3 + $0xa0] sm:$0xff] %vm1150_vm6, %v1095_v59  ;;  %v1780_v59 = vld [vmem:[#allocation2 + $0xfa] sm:$0xff] }
 0x1ce   : > { %1166 = vst.msk [vmem:[#allocation3 + $0x78] sm:$0xff] %vm1150_vm6, %v1085_v12  ;;  %v1773_v12 = vld [vmem:[#allocation2 + $0xaa] sm:$0xff] }
 0x1d1   : > { %1299 = vrot.lane.b32.xlu1 %v3859_v57, %s2536_s26  ;;  %v1388_v57 = vld [vmem:[#allocation2 + $0xb0] sm:$0xff] }
 0x1d2   : > { %1295 = vrot.lane.b32.xlu2 %v3860_v55, %s2536_s26  ;;  %v1996_v55 = vld [vmem:[%s3767_s3 + $0x40] sm:$0xff] }
 0x1d3   : > { %1303 = vrot.lane.b32.xlu0 %v3078_v16, %s2536_s26  ;;  %v1087_v0 = vpop.permute.xlu1 %1086  ;;  %2101 = vmatpush.msra.mxu0 %v1996_v55 }
 0x1d4   : > { %1167 = vst.msk [vmem:[#allocation3 + $0x80] sm:$0xff] %vm1150_vm6, %v1087_v0  ;;  %v1101_v17 = vpop.permute.xlu2 %1100  ;;  %2479 = vmatpush.msra.mxu1 %v1996_v55  ;;  %2480 = vmatpush.msra.mxu2 %v1996_v55 }
 0x1d5   : > { %v1091_v21 = vpop.permute.xlu0 %1090  ;;  %1174 = vst.msk [vmem:[#allocation3 + $0xb8] sm:$0xff] %vm1150_vm6, %v1101_v17  ;;  %2481 = vmatpush.msra.mxu3 %v1996_v55  ;;  %v1397_v55 = vld [vmem:[#allocation2 + $0x120] sm:$0xff] }
 0x1d6   : > { %1169 = vst.msk [vmem:[#allocation3 + $0x90] sm:$0xff] %vm1150_vm6, %v1091_v21  ;;  %v1995_v21 = vld [vmem:[%s3767_s3 + $0x38] sm:$0xff] }
 0x1d7   : > { %2102 = vmatpush.msra.mxu0 %v1995_v21  ;;  %2482 = vmatpush.msra.mxu1 %v1995_v21 }
 0x1d8   : > { %2483 = vmatpush.msra.mxu2 %v1995_v21  ;;  %2484 = vmatpush.msra.mxu3 %v1995_v21 }
 0x1d9   : > { %1305 = vrot.lane.b32.xlu1 %v3861_v60, %s2536_s26  ;;  %v1575_v60 = vld [vmem:[#allocation2 + $0x69] sm:$0xff] }
 0x1da   : > { %1301 = vrot.lane.b32.xlu2 %v3862_v29, %s2536_s26  ;;  %v1994_v29 = vld [vmem:[%s3767_s3 + $0x30] sm:$0xff] }
 0x1db   : > { %1634 = vrot.lane.b32.xlu0 %v1570_v22, %s2537_s27  ;;  %v1093_v16 = vpop.permute.xlu1 %1092  ;;  %2103 = vmatpush.msra.mxu0 %v1994_v29 }
 0x1dc   : > { %1170 = vst.msk [vmem:[#allocation3 + $0x98] sm:$0xff] %vm1150_vm6, %v1093_v16  ;;  %v1107_v8 = vpop.permute.xlu2 %1106  ;;  %v1993_v16 = vld [vmem:[%s3767_s3 + $0x28] sm:$0xff]  ;;  %2485 = vmatpush.msra.mxu1 %v1994_v29  ;;  %2486 = vmatpush.msra.mxu2 %v1994_v29 }
 0x1dd   : > { %v1097_v34 = vpop.permute.xlu0 %1096  ;;  %1177 = vst.msk [vmem:[#allocation3 + $0xd0] sm:$0xff] %vm1150_vm6, %v1107_v8  ;;  %v1382_v8 = vld [vmem:[#allocation2 + $0x68] sm:$0xff]  ;;  %2487 = vmatpush.msra.mxu3 %v1994_v29  ;;  %2104 = vmatpush.msra.mxu0 %v1993_v16 }
 0x1de   : > { %1172 = vst.msk [vmem:[#allocation3 + $0xa8] sm:$0xff] %vm1150_vm6, %v1097_v34  ;;  %v1395_v34 = vld [vmem:[#allocation2 + $0x108] sm:$0xff]  ;;  %2488 = vmatpush.msra.mxu1 %v1993_v16  ;;  %2489 = vmatpush.msra.mxu2 %v1993_v16 }
 0x1df   : > { %2490 = vmatpush.msra.mxu3 %v1993_v16  ;;  %v1583_v29 = vld [vmem:[#allocation2 + $0xc9] sm:$0xff] }
 0x1e0   : > { %v1776_v16 = vld [vmem:[#allocation2 + $0xca] sm:$0xff] }
 0x1e1   : > { %1827 = vrot.lane.b32.xlu1 %v1763_v19, %s2538_s28  ;;  %v1992_v19 = vld [vmem:[%s3767_s3 + $0x20] sm:$0xff] }
 0x1e2   : > { %1441 = vrot.lane.b32.xlu2 %v1377_v62, %s2539_s29  ;;  %2105 = vmatpush.msra.mxu0 %v1992_v19 }
 0x1e3   : > { %1636 = vrot.lane.b32.xlu0 %v1571_v51, %s2537_s27  ;;  %v1099_v1 = vpop.permute.xlu1 %1098  ;;  %2491 = vmatpush.msra.mxu1 %v1992_v19 }
 0x1e4   : > { %1173 = vst.msk [vmem:[#allocation3 + $0xb0] sm:$0xff] %vm1150_vm6, %v1099_v1  ;;  %v1113_v30 = vpop.permute.xlu2 %1112  ;;  %v1991_v1 = vld [vmem:[%s3767_s3 + $0x18] sm:$0xff]  ;;  %2492 = vmatpush.msra.mxu2 %v1992_v19  ;;  %2493 = vmatpush.msra.mxu3 %v1992_v19 }
 0x1e5   : > { %v1103_v63 = vpop.permute.xlu0 %1102  ;;  %1180 = vst.msk [vmem:[#allocation3 + $0xe8] sm:$0xff] %vm1150_vm6, %v1113_v30  ;;  %2106 = vmatpush.msra.mxu0 %v1991_v1  ;;  %2494 = vmatpush.msra.mxu1 %v1991_v1 }
 0x1e6   : > { %1175 = vst.msk [vmem:[#allocation3 + $0xc0] sm:$0xff] %vm1150_vm6, %v1103_v63  ;;  %v1990_v63 = vld [vmem:[%s3767_s3 + $0x10] sm:$0xff]  ;;  %2495 = vmatpush.msra.mxu2 %v1991_v1  ;;  %2496 = vmatpush.msra.mxu3 %v1991_v1  ;;  %v1770_v1 = vld [vmem:[#allocation2 + $0x82] sm:$0xff] }
 0x1e7   : > { %2107 = vmatpush.msra.mxu0 %v1990_v63  ;;  %2497 = vmatpush.msra.mxu1 %v1990_v63 }
 0x1e8   : > { %2498 = vmatpush.msra.mxu2 %v1990_v63  ;;  %2499 = vmatpush.msra.mxu3 %v1990_v63 }
 0x1e9   : > { %1829 = vrot.lane.b32.xlu1 %v1764_v2, %s2538_s28  ;;  %v1989_v2 = vld [vmem:[%s3767_s3 + $0x8] sm:$0xff] }
 0x1ea   : > { %1443 = vrot.lane.b32.xlu2 %v1378_v46, %s2539_s29  ;;  %v1581_v46 = vld [vmem:[#allocation2 + $0xb1] sm:$0xff]  ;;  %2108 = vmatpush.msra.mxu0 %v1989_v2 }
 0x1eb   : > { %1457 = vrot.lane.b32.xlu0 %v2894_v35, %s2539_s29  ;;  %v1105_v58 = vpop.permute.xlu1 %1104  ;;  %2500 = vmatpush.msra.mxu1 %v1989_v2 }
 0x1ec   : > { %1176 = vst.msk [vmem:[#allocation3 + $0xc8] sm:$0xff] %vm1150_vm6, %v1105_v58  ;;  %v1248_v5 = vpop.permute.xlu2 %1247  ;;  %v1774_v58 = vld [vmem:[#allocation2 + $0xb2] sm:$0xff]  ;;  %2501 = vmatpush.msra.mxu2 %v1989_v2  ;;  %2502 = vmatpush.msra.mxu3 %v1989_v2 }
 0x1ed   : > { %v1109_v23 = vpop.permute.xlu0 %1108  ;;  %1344 = vst.msk [vmem:[#allocation3] sm:$0xff] %vm1343_vm7, %v1248_v5  ;;  %v1988_v5 = vld [vmem:[%s3767_s3] sm:$0xff] }
 0x1ee   : > { %1178 = vst.msk [vmem:[#allocation3 + $0xd8] sm:$0xff] %vm1150_vm6, %v1109_v23  ;;  %2109 = vmatpush.msra.mxu0 %v1988_v5  ;;  %2503 = vmatpush.msra.mxu1 %v1988_v5 }
 0x1ef   : > { %2504 = vmatpush.msra.mxu2 %v1988_v5  ;;  %2505 = vmatpush.msra.mxu3 %v1988_v5  ;;  %v1789_v5 = vld [vmem:[#allocation2 + $0x16a] sm:$0xff] }
 0x1f1   : > { %1638 = vrot.lane.b32.xlu1 %v1572_v61, %s2537_s27 }
 0x1f2   : > { %1445 = vrot.lane.b32.xlu2 %v1379_v40, %s2539_s29 }
 0x1f3   : > { %1831 = vrot.lane.b32.xlu0 %v1765_v41, %s2538_s28  ;;  %v1111_v3 = vpop.permute.xlu1 %1110  ;;  %v1768_v41 = vld [vmem:[#allocation2 + $0x6a] sm:$0xff] }
 0x1f4   : > { %1179 = vst.msk [vmem:[#allocation3 + $0xe0] sm:$0xff] %vm1150_vm6, %v1111_v3  ;;  %v1254_v35 = vpop.permute.xlu2 %1253  ;;  %v1781_v3 = vld [vmem:[#allocation2 + $0x10a] sm:$0xff] }
 0x1f5   : > { %v1115_v4 = vpop.permute.xlu0 %1114  ;;  %1347 = vst.msk [vmem:[#allocation3 + $0x18] sm:$0xff] %vm1343_vm7, %v1254_v35 }
 0x1f6   : > { %1181 = vst.msk [vmem:[#allocation3 + $0xf0] sm:$0xff] %vm1150_vm6, %v1115_v4 }
 0x1f9   : > { %1843 = vrot.lane.b32.xlu1 %v1771_v24, %s2538_s28 }
 0x1fa   : > { %1650 = vrot.lane.b32.xlu2 %v1578_v28, %s2537_s27  ;;  %v1787_v28 = vld [vmem:[#allocation2 + $0x152] sm:$0xff] }
 0x1fb   : > { %1459 = vrot.lane.b32.xlu0 %v2911_v42, %s2539_s29  ;;  %v1117_v6 = vpop.permute.xlu1 %1116 }
 0x1fc   : > { %1182 = vst.msk [vmem:[#allocation3 + $0xf8] sm:$0xff] %vm1150_vm6, %v1117_v6  ;;  %v1260_v9 = vpop.permute.xlu2 %1259  ;;  %v1594_v6 = vld [vmem:[#allocation2 + $0x151] sm:$0xff] }
 0x1fd   : > { %v1250_v14 = vpop.permute.xlu0 %1249  ;;  %1350 = vst.msk [vmem:[#allocation3 + $0x30] sm:$0xff] %vm1343_vm7, %v1260_v9  ;;  %v1389_v9 = vld [vmem:[#allocation2 + $0xc0] sm:$0xff] }
 0x1fe   : > { %1345 = vst.msk [vmem:[#allocation3 + $0x8] sm:$0xff] %vm1343_vm7, %v1250_v14 }
 0x201   : > { %1640 = vrot.lane.b32.xlu1 %v1573_v7, %s2537_s27 }
 0x202   : > { %1447 = vrot.lane.b32.xlu2 %v1380_v10, %s2539_s29 }
 0x203   : > { %1473 = vrot.lane.b32.xlu0 %v2945_v47, %s2539_s29  ;;  %v1252_v15 = vpop.permute.xlu1 %1251 }
 0x204   : > { %1346 = vst.msk [vmem:[#allocation3 + $0x10] sm:$0xff] %vm1343_vm7, %v1252_v15  ;;  %v1266_v42 = vpop.permute.xlu2 %1265  ;;  %v1576_v15 = vld [vmem:[#allocation2 + $0x79] sm:$0xff] }
 0x205   : > { %v1256_v26 = vpop.permute.xlu0 %1255  ;;  %1353 = vst.msk [vmem:[#allocation3 + $0x48] sm:$0xff] %vm1343_vm7, %v1266_v42  ;;  %v1383_v42 = vld [vmem:[#allocation2 + $0x78] sm:$0xff] }
 0x206   : > { %1348 = vst.msk [vmem:[#allocation3 + $0x20] sm:$0xff] %vm1343_vm7, %v1256_v26  ;;  %v1396_v26 = vld [vmem:[#allocation2 + $0x110] sm:$0xff] }
 0x209   : > { %1833 = vrot.lane.b32.xlu1 %v1766_v11, %s2538_s28 }
 0x20a   : > { %1652 = vrot.lane.b32.xlu2 %v1579_v18, %s2537_s27 }
 0x20b   : > { %1666 = vrot.lane.b32.xlu0 %v1586_v20, %s2537_s27  ;;  %v1258_v32 = vpop.permute.xlu1 %1257 }
 0x20c   : > { %1349 = vst.msk [vmem:[#allocation3 + $0x28] sm:$0xff] %vm1343_vm7, %v1258_v32  ;;  %v1272_v47 = vpop.permute.xlu2 %1271  ;;  %v1402_v32 = vld [vmem:[#allocation2 + $0x158] sm:$0xff] }
 0x20d   : > { %v1262_v25 = vpop.permute.xlu0 %1261  ;;  %1356 = vst.msk [vmem:[#allocation3 + $0x60] sm:$0xff] %vm1343_vm7, %v1272_v47  ;;  %v1582_v47 = vld [vmem:[#allocation2 + $0xc1] sm:$0xff] }
 0x20e   : > { %1351 = vst.msk [vmem:[#allocation3 + $0x38] sm:$0xff] %vm1343_vm7, %v1262_v25  ;;  %v1775_v25 = vld [vmem:[#allocation2 + $0xc2] sm:$0xff] }
 0x211   : > { %1859 = vrot.lane.b32.xlu1 %v1779_v27, %s2538_s28 }
 0x212   : > { %1845 = vrot.lane.b32.xlu2 %v1772_v38, %s2538_s28 }
 0x213   : > { %1461 = vrot.lane.b32.xlu0 %v1387_v31, %s2539_s29  ;;  %v1264_v33 = vpop.permute.xlu1 %1263 }
 0x214   : > { %1352 = vst.msk [vmem:[#allocation3 + $0x40] sm:$0xff] %vm1343_vm7, %v1264_v33  ;;  %v1278_v44 = vpop.permute.xlu2 %1277 }
 0x215   : > { %v1268_v37 = vpop.permute.xlu0 %1267  ;;  %1359 = vst.msk [vmem:[#allocation3 + $0x78] sm:$0xff] %vm1343_vm7, %v1278_v44  ;;  %v1589_v44 = vld [vmem:[#allocation2 + $0x111] sm:$0xff] }
 0x216   : > { %1354 = vst.msk [vmem:[#allocation3 + $0x50] sm:$0xff] %vm1343_vm7, %v1268_v37  ;;  %v1769_v37 = vld [vmem:[#allocation2 + $0x7a] sm:$0xff] }
 0x219   : > { %1642 = vrot.lane.b32.xlu1 %v1574_v39, %s2537_s27  ;;  %v1782_v39 = vld [vmem:[#allocation2 + $0x112] sm:$0xff] }
 0x21a   : > { %1449 = vrot.lane.b32.xlu2 %v1381_v49, %s2539_s29 }
 0x21b   : > { %1475 = vrot.lane.b32.xlu0 %v2975_v36, %s2539_s29  ;;  %v1270_v43 = vpop.permute.xlu1 %1269 }
 0x21c   : > { %1355 = vst.msk [vmem:[#allocation3 + $0x58] sm:$0xff] %vm1343_vm7, %v1270_v43  ;;  %v1284_v45 = vpop.permute.xlu2 %1283 }
 0x21d   : > { %v1274_v53 = vpop.permute.xlu0 %1273  ;;  %1362 = vst.msk [vmem:[#allocation3 + $0x90] sm:$0xff] %vm1343_vm7, %v1284_v45 }
 0x21e   : > { %1357 = vst.msk [vmem:[#allocation3 + $0x68] sm:$0xff] %vm1343_vm7, %v1274_v53 }
 0x221   : > { %1835 = vrot.lane.b32.xlu1 %v1767_v48, %s2538_s28  ;;  %v1788_v48 = vld [vmem:[#allocation2 + $0x15a] sm:$0xff] }
 0x222   : > { %1654 = vrot.lane.b32.xlu2 %v1580_v50, %s2537_s27  ;;  %v1595_v50 = vld [vmem:[#allocation2 + $0x159] sm:$0xff] }
 0x223   : > { %1668 = vrot.lane.b32.xlu0 %v1587_v56, %s2537_s27  ;;  %v1276_v52 = vpop.permute.xlu1 %1275  ;;  %v1390_v56 = vld [vmem:[#allocation2 + $0xc8] sm:$0xff] }
 0x224   : > { %1358 = vst.msk [vmem:[#allocation3 + $0x70] sm:$0xff] %vm1343_vm7, %v1276_v52  ;;  %v1290_v36 = vpop.permute.xlu2 %1289 }
 0x225   : > { %v1280_v54 = vpop.permute.xlu0 %1279  ;;  %1365 = vst.msk [vmem:[#allocation3 + $0xa8] sm:$0xff] %vm1343_vm7, %v1290_v36 }
 0x226   : > { %1360 = vst.msk [vmem:[#allocation3 + $0x80] sm:$0xff] %vm1343_vm7, %v1280_v54 }
 0x229   : > { %1861 = vrot.lane.b32.xlu1 %v1780_v59, %s2538_s28 }
 0x22a   : > { %1847 = vrot.lane.b32.xlu2 %v1773_v12, %s2538_s28  ;;  %v1577_v12 = vld [vmem:[#allocation2 + $0x81] sm:$0xff] }
 0x22b   : > { %1463 = vrot.lane.b32.xlu0 %v1388_v57, %s2539_s29  ;;  %v1282_v0 = vpop.permute.xlu1 %1281  ;;  %v1384_v57 = vld [vmem:[#allocation2 + $0x80] sm:$0xff] }
 0x22c   : > { %1361 = vst.msk [vmem:[#allocation3 + $0x88] sm:$0xff] %vm1343_vm7, %v1282_v0  ;;  %v1296_v17 = vpop.permute.xlu2 %1295 }
 0x22d   : > { %v1286_v22 = vpop.permute.xlu0 %1285  ;;  %1368 = vst.msk [vmem:[#allocation3 + $0xc0] sm:$0xff] %vm1343_vm7, %v1296_v17 }
 0x22e   : > { %1363 = vst.msk [vmem:[#allocation3 + $0x98] sm:$0xff] %vm1343_vm7, %v1286_v22 }
 0x231   : > { %1644 = vrot.lane.b32.xlu1 %v1575_v60, %s2537_s27  ;;  %v1403_v60 = vld [vmem:[#allocation2 + $0x168] sm:$0xff] }
 0x232   : > { %1451 = vrot.lane.b32.xlu2 %v1382_v8, %s2539_s29 }
 0x233   : > { %1477 = vrot.lane.b32.xlu0 %v1395_v34, %s2539_s29  ;;  %v1288_v62 = vpop.permute.xlu1 %1287 }
 0x234   : > { %1364 = vst.msk [vmem:[#allocation3 + $0xa0] sm:$0xff] %vm1343_vm7, %v1288_v62  ;;  %v1302_v51 = vpop.permute.xlu2 %1301 }
 0x235   : > { %v1292_v30 = vpop.permute.xlu0 %1291  ;;  %1371 = vst.msk [vmem:[#allocation3 + $0xd8] sm:$0xff] %vm1343_vm7, %v1302_v51  ;;  %v1590_v51 = vld [vmem:[#allocation2 + $0x121] sm:$0xff] }
 0x236   : > { %1366 = vst.msk [vmem:[#allocation3 + $0xb0] sm:$0xff] %vm1343_vm7, %v1292_v30  ;;  %v1783_v30 = vld [vmem:[#allocation2 + $0x122] sm:$0xff] }
 0x239   : > { %1489 = vrot.lane.b32.xlu1 %v3046_v13, %s2539_s29  ;;  %v1588_v13 = vld [vmem:[#allocation2 + $0x109] sm:$0xff] }
 0x23a   : > { %1656 = vrot.lane.b32.xlu2 %v1581_v46, %s2537_s27 }
 0x23b   : > { %1849 = vrot.lane.b32.xlu0 %v1774_v58, %s2538_s28  ;;  %v1294_v23 = vpop.permute.xlu1 %1293 }
 0x23c   : > { %1367 = vst.msk [vmem:[#allocation3 + $0xb8] sm:$0xff] %vm1343_vm7, %v1294_v23  ;;  %v1442_v61 = vpop.permute.xlu2 %1441  ;;  %v1596_v23 = vld [vmem:[#allocation2 + $0x169] sm:$0xff] }
 0x23d   : > { %v1298_v40 = vpop.permute.xlu0 %1297  ;;  %1538 = vst.msk [vmem:[#allocation3] sm:$0xff] %vm1537_vm8, %v1442_v61  ;;  %v1584_v61 = vld [vmem:[#allocation2 + $0xd9] sm:$0xff] }
 0x23e   : > { %1369 = vst.msk [vmem:[#allocation3 + $0xc8] sm:$0xff] %vm1343_vm7, %v1298_v40 }
 0x241   : > { %1670 = vrot.lane.b32.xlu1 %v1588_v13, %s2537_s27 }
 0x242   : > { %1837 = vrot.lane.b32.xlu2 %v1768_v41, %s2538_s28 }
 0x243   : > { %1863 = vrot.lane.b32.xlu0 %v1781_v3, %s2538_s28  ;;  %v1300_v35 = vpop.permute.xlu1 %1299 }
 0x244   : > { %1370 = vst.msk [vmem:[#allocation3 + $0xd0] sm:$0xff] %vm1343_vm7, %v1300_v35  ;;  %v1444_v4 = vpop.permute.xlu2 %1443  ;;  %v1398_v35 = vld [vmem:[#allocation2 + $0x128] sm:$0xff] }
 0x245   : > { %v1304_v24 = vpop.permute.xlu0 %1303  ;;  %1539 = vst.msk [vmem:[#allocation3 + $0x8] sm:$0xff] %vm1537_vm8, %v1444_v4 }
 0x246   : > { %1372 = vst.msk [vmem:[#allocation3 + $0xe0] sm:$0xff] %vm1343_vm7, %v1304_v24  ;;  %v1391_v24 = vld [vmem:[#allocation2 + $0xd8] sm:$0xff] }
 0x249   : > { %1875 = vrot.lane.b32.xlu1 %v1787_v28, %s2538_s28  ;;  %v1777_v28 = vld [vmem:[#allocation2 + $0xda] sm:$0xff] }
 0x24a   : > { %1682 = vrot.lane.b32.xlu2 %v1594_v6, %s2537_s27 }
 0x24b   : > { %1465 = vrot.lane.b32.xlu0 %v1389_v9, %s2539_s29  ;;  %v1306_v14 = vpop.permute.xlu1 %1305 }
 0x24c   : > { %1373 = vst.msk [vmem:[#allocation3 + $0xe8] sm:$0xff] %vm1343_vm7, %v1306_v14  ;;  %v1446_v7 = vpop.permute.xlu2 %1445 }
 0x24d   : > { %v1635_v10 = vpop.permute.xlu0 %1634  ;;  %1540 = vst.msk [vmem:[#allocation3 + $0x10] sm:$0xff] %vm1537_vm8, %v1446_v7  ;;  %v1591_v7 = vld [vmem:[#allocation2 + $0x129] sm:$0xff] }
 0x24e   : > { %1731 = vst.msk [vmem:[#allocation3] sm:$0xff] %vm1730_vm9, %v1635_v10  ;;  %v1404_v10 = vld [vmem:[#allocation2 + $0x170] sm:$0xff] }
 0x251   : > { %1646 = vrot.lane.b32.xlu1 %v1576_v15, %s2537_s27  ;;  %v1784_v15 = vld [vmem:[#allocation2 + $0x12a] sm:$0xff] }
 0x252   : > { %1453 = vrot.lane.b32.xlu2 %v1383_v42, %s2539_s29 }
 0x253   : > { %1479 = vrot.lane.b32.xlu0 %v1396_v26, %s2539_s29  ;;  %v1828_v11 = vpop.permute.xlu1 %1827 }
 0x254   : > { %1924 = vst.msk [vmem:[#allocation3] sm:$0xff] %vm1923_vm10, %v1828_v11  ;;  %v1651_v18 = vpop.permute.xlu2 %1650 }
 0x255   : > { %v1637_v20 = vpop.permute.xlu0 %1636 }
 0x256   : > { %1732 = vst.msk [vmem:[#allocation3 + $0x8] sm:$0xff] %vm1730_vm9, %v1637_v20  ;;  %v1790_v20 = vld [vmem:[#allocation2 + $0x172] sm:$0xff] }
 0x259   : > { %1491 = vrot.lane.b32.xlu1 %v1402_v32, %s2539_s29  ;;  %v1597_v32 = vld [vmem:[#allocation2 + $0x171] sm:$0xff] }
 0x25a   : > { %1658 = vrot.lane.b32.xlu2 %v1582_v47, %s2537_s27  ;;  %v1585_v47 = vld [vmem:[#allocation2 + $0xe1] sm:$0xff] }
 0x25b   : > { %1851 = vrot.lane.b32.xlu0 %v1775_v25, %s2538_s28  ;;  %v1830_v27 = vpop.permute.xlu1 %1829  ;;  %v1956_v38 = vld [vmem:[#allocation3] sm:$0xff] }
 0x25c   : > { %1925 = vst.msk [vmem:[#allocation3 + $0x8] sm:$0xff] %vm1923_vm10, %v1830_v27  ;;  %2443 = vmatmul.msk.f32.vlgmr.msra.gmra.mxu0 %vm1997_vm11, %v1956_v38  ;;  %v1448_v31 = vpop.permute.xlu2 %1447 }
 0x25d   : > { %v1458_v33 = vpop.permute.xlu0 %1457  ;;  %1541 = vst.msk [vmem:[#allocation3 + $0x18] sm:$0xff] %vm1537_vm8, %v1448_v31 }
 0x25e   : > { %1546 = vst.msk [vmem:[#allocation3 + $0x40] sm:$0xff] %vm1537_vm8, %v1458_v33  ;;  %v1399_v33 = vld [vmem:[#allocation2 + $0x138] sm:$0xff] }
 0x25f   : > { %1739 = vst.msk [vmem:[#allocation3 + $0x40] sm:$0xff] %vm1730_vm9, %v1651_v18 }
 0x261   : > { %1672 = vrot.lane.b32.xlu1 %v1589_v44, %s2537_s27  ;;  %v1392_v44 = vld [vmem:[#allocation2 + $0xe0] sm:$0xff] }
 0x262   : > { %1839 = vrot.lane.b32.xlu2 %v1769_v37, %s2538_s28  ;;  %v1778_v37 = vld [vmem:[#allocation2 + $0xe2] sm:$0xff] }
 0x263   : > { %1865 = vrot.lane.b32.xlu0 %v1782_v39, %s2538_s28  ;;  %v1639_v49 = vpop.permute.xlu1 %1638  ;;  %v1957_v43 = vld [vmem:[#allocation3 + $0x8] sm:$0xff] }
 0x264   : > { %1733 = vst.msk [vmem:[#allocation3 + $0x10] sm:$0xff] %vm1730_vm9, %v1639_v49  ;;  %2444 = vmatmul.msk.f32.gmra.mxu0 %vm1997_vm11, %v1957_v43  ;;  %v1653_v45 = vpop.permute.xlu2 %1652 }
 0x265   : > { %v1832_v53 = vpop.permute.xlu0 %1831 }
 0x266   : > { %1926 = vst.msk [vmem:[#allocation3 + $0x10] sm:$0xff] %vm1923_vm10, %v1832_v53  ;;  %v1592_v53 = vld [vmem:[#allocation2 + $0x139] sm:$0xff] }
 0x269   : > { %1877 = vrot.lane.b32.xlu1 %v1788_v48, %s2538_s28  ;;  %v1405_v48 = vld [vmem:[#allocation2 + $0x180] sm:$0xff] }
 0x26a   : > { %1684 = vrot.lane.b32.xlu2 %v1595_v50, %s2537_s27  ;;  %v1785_v50 = vld [vmem:[#allocation2 + $0x13a] sm:$0xff] }
 0x26b   : > { %1467 = vrot.lane.b32.xlu0 %v1390_v56, %s2539_s29  ;;  %v1844_v52 = vpop.permute.xlu1 %1843 }
 0x26c   : > { %1932 = vst.msk [vmem:[#allocation3 + $0x40] sm:$0xff] %vm1923_vm10, %v1844_v52  ;;  %v1846_v36 = vpop.permute.xlu2 %1845 }
 0x26d   : > { %v1460_v54 = vpop.permute.xlu0 %1459  ;;  %v1958_v59 = vld [vmem:[#allocation3 + $0x10] sm:$0xff] }
 0x26e   : > { %1547 = vst.msk [vmem:[#allocation3 + $0x48] sm:$0xff] %vm1537_vm8, %v1460_v54  ;;  %2445 = vmatmul.msk.f32.gmra.mxu0 %vm1997_vm11, %v1958_v59  ;;  %v1791_v59 = vld [vmem:[#allocation2 + $0x182] sm:$0xff] }
 0x26f   : > { %1740 = vst.msk [vmem:[#allocation3 + $0x48] sm:$0xff] %vm1730_vm9, %v1653_v45 }
 0x270   : > { %1933 = vst.msk [vmem:[#allocation3 + $0x48] sm:$0xff] %vm1923_vm10, %v1846_v36 }
 0x271   : > { %1648 = vrot.lane.b32.xlu1 %v1577_v12, %s2537_s27  ;;  %v1598_v12 = vld [vmem:[#allocation2 + $0x181] sm:$0xff] }
 0x272   : > { %1455 = vrot.lane.b32.xlu2 %v1384_v57, %s2539_s29  ;;  %v1406_v57 = vld [vmem:[#allocation2 + $0x188] sm:$0xff] }
 0x273   : > { %1481 = vrot.lane.b32.xlu0 %v1397_v55, %s2539_s29  ;;  %v1641_v0 = vpop.permute.xlu1 %1640  ;;  %v1964_v17 = vld [vmem:[#allocation3 + $0x40] sm:$0xff] }
 0x274   : > { %1734 = vst.msk [vmem:[#allocation3 + $0x18] sm:$0xff] %vm1730_vm9, %v1641_v0  ;;  %2451 = vmatmul.msk.f32.vlgmr.msra.gmra.mxu1 %vm1997_vm11, %v1964_v17  ;;  %v1450_v21 = vpop.permute.xlu2 %1449 }
 0x275   : > { %v1474_v22 = vpop.permute.xlu0 %1473  ;;  %1542 = vst.msk [vmem:[#allocation3 + $0x20] sm:$0xff] %vm1537_vm8, %v1450_v21 }
 0x276   : > { %1554 = vst.msk [vmem:[#allocation3 + $0x80] sm:$0xff] %vm1537_vm8, %v1474_v22  ;;  %v1593_v22 = vld [vmem:[#allocation2 + $0x141] sm:$0xff] }
 0x277   : > { %v1965_v8 = vld [vmem:[#allocation3 + $0x48] sm:$0xff] }
 0x279   : > { %1493 = vrot.lane.b32.xlu1 %v1403_v60, %s2539_s29  ;;  %v1400_v60 = vld [vmem:[#allocation2 + $0x140] sm:$0xff] }
 0x27a   : > { %1660 = vrot.lane.b32.xlu2 %v1583_v29, %s2537_s27  ;;  %v1786_v29 = vld [vmem:[#allocation2 + $0x142] sm:$0xff] }
 0x27b   : > { %1853 = vrot.lane.b32.xlu0 %v1776_v16, %s2538_s28  ;;  %v1834_v34 = vpop.permute.xlu1 %1833 }
 0x27c   : > { %1927 = vst.msk [vmem:[#allocation3 + $0x18] sm:$0xff] %vm1923_vm10, %v1834_v34  ;;  %v1655_v19 = vpop.permute.xlu2 %1654  ;;  %2452 = vmatmul.msk.f32.gmra.mxu1 %vm1997_vm11, %v1965_v8 }
 0x27d   : > { %v1667_v62 = vpop.permute.xlu0 %1666 }
 0x27e   : > { %1747 = vst.msk [vmem:[#allocation3 + $0x80] sm:$0xff] %vm1730_vm9, %v1667_v62  ;;  %v1792_v62 = vld [vmem:[#allocation2 + $0x18a] sm:$0xff] }
 0x281   : > { %1674 = vrot.lane.b32.xlu1 %v1590_v51, %s2537_s27  ;;  %v1599_v51 = vld [vmem:[#allocation2 + $0x189] sm:$0xff] }
 0x282   : > { %1841 = vrot.lane.b32.xlu2 %v1770_v1, %s2538_s28  ;;  %v1407_v1 = vld [vmem:[#allocation2 + $0x198] sm:$0xff] }
 0x283   : > { %1867 = vrot.lane.b32.xlu0 %v1783_v30, %s2538_s28  ;;  %v1860_v63 = vpop.permute.xlu1 %1859  ;;  %v1959_v2 = vld [vmem:[#allocation3 + $0x18] sm:$0xff] }
 0x284   : > { %1940 = vst.msk [vmem:[#allocation3 + $0x80] sm:$0xff] %vm1923_vm10, %v1860_v63  ;;  %2446 = vmatmul.msk.f32.gmra.mxu0 %vm1997_vm11, %v1959_v2  ;;  %v1848_v46 = vpop.permute.xlu2 %1847 }
 0x285   : > { %v1462_v58 = vpop.permute.xlu0 %1461 }
 0x286   : > { %1548 = vst.msk [vmem:[#allocation3 + $0x50] sm:$0xff] %vm1537_vm8, %v1462_v58  ;;  %v1600_v58 = vld [vmem:[#allocation2 + $0x199] sm:$0xff] }
 0x287   : > { %1741 = vst.msk [vmem:[#allocation3 + $0x50] sm:$0xff] %vm1730_vm9, %v1655_v19 }
 0x288   : > { %1934 = vst.msk [vmem:[#allocation3 + $0x50] sm:$0xff] %vm1923_vm10, %v1848_v46 }
 0x289   : > { %1879 = vrot.lane.b32.xlu1 %v1789_v5, %s2538_s28 }
 0x28a   : > { %1686 = vrot.lane.b32.xlu2 %v1596_v23, %s2537_s27 }
 0x28b   : > { %1662 = vrot.lane.b32.xlu0 %v1584_v61, %s2537_s27  ;;  %v1643_v40 = vpop.permute.xlu1 %1642  ;;  %v1972_v13 = vld [vmem:[#allocation3 + $0x80] sm:$0xff] }
 0x28c   : > { %1735 = vst.msk [vmem:[#allocation3 + $0x20] sm:$0xff] %vm1730_vm9, %v1643_v40  ;;  %2459 = vmatmul.msk.f32.vlgmr.msra.gmra.mxu2 %vm1997_vm11, %v1972_v13  ;;  %v1452_v41 = vpop.permute.xlu2 %1451  ;;  %v1408_v13 = vld [vmem:[#allocation2 + $0x1a0] sm:$0xff] }
 0x28d   : > { %v1476_v3 = vpop.permute.xlu0 %1475  ;;  %1543 = vst.msk [vmem:[#allocation3 + $0x28] sm:$0xff] %vm1537_vm8, %v1452_v41  ;;  %v1793_v41 = vld [vmem:[#allocation2 + $0x19a] sm:$0xff] }
 0x28e   : > { %1555 = vst.msk [vmem:[#allocation3 + $0x88] sm:$0xff] %vm1537_vm8, %v1476_v3  ;;  %v1794_v3 = vld [vmem:[#allocation2 + $0x1a2] sm:$0xff] }
 0x28f   : > { %v1966_v4 = vld [vmem:[#allocation3 + $0x50] sm:$0xff] }
 0x290   : > { %2453 = vmatmul.msk.f32.gmra.mxu1 %vm1997_vm11, %v1966_v4 }
 0x291   : > { %1483 = vrot.lane.b32.xlu1 %v1398_v35, %s2539_s29 }
 0x292   : > { %1469 = vrot.lane.b32.xlu2 %v1391_v24, %s2539_s29 }
 0x293   : > { %1855 = vrot.lane.b32.xlu0 %v1777_v28, %s2538_s28  ;;  %v1836_v6 = vpop.permute.xlu1 %1835 }
 0x294   : > { %1928 = vst.msk [vmem:[#allocation3 + $0x20] sm:$0xff] %vm1923_vm10, %v1836_v6  ;;  %v1657_v9 = vpop.permute.xlu2 %1656 }
 0x295   : > { %v1669_v14 = vpop.permute.xlu0 %1668 }
 0x296   : > { %1748 = vst.msk [vmem:[#allocation3 + $0x88] sm:$0xff] %vm1730_vm9, %v1669_v14 }
 0x299   : > { %1676 = vrot.lane.b32.xlu1 %v1591_v7, %s2537_s27 }
 0x29a   : > { %1495 = vrot.lane.b32.xlu2 %v1404_v10, %s2539_s29 }
 0x29b   : > { %1869 = vrot.lane.b32.xlu0 %v1784_v15, %s2538_s28  ;;  %v1862_v42 = vpop.permute.xlu1 %1861  ;;  %v1960_v26 = vld [vmem:[#allocation3 + $0x20] sm:$0xff] }
 0x29c   : > { %1941 = vst.msk [vmem:[#allocation3 + $0x88] sm:$0xff] %vm1923_vm10, %v1862_v42  ;;  %2447 = vmatmul.msk.f32.gmra.mxu0 %vm1997_vm11, %v1960_v26  ;;  %v1838_v11 = vpop.permute.xlu2 %1837 }
 0x29d   : > { %v1464_v18 = vpop.permute.xlu0 %1463 }
 0x29e   : > { %1549 = vst.msk [vmem:[#allocation3 + $0x58] sm:$0xff] %vm1537_vm8, %v1464_v18 }
 0x29f   : > { %1742 = vst.msk [vmem:[#allocation3 + $0x58] sm:$0xff] %vm1730_vm9, %v1657_v9  ;;  %v1601_v9 = vld [vmem:[#allocation2 + $0x1a1] sm:$0xff] }
 0x2a1   : > { %1881 = vrot.lane.b32.xlu1 %v1790_v20, %s2538_s28 }
 0x2a2   : > { %1688 = vrot.lane.b32.xlu2 %v1597_v32, %s2537_s27 }
 0x2a3   : > { %1664 = vrot.lane.b32.xlu0 %v1585_v47, %s2537_s27  ;;  %v1645_v25 = vpop.permute.xlu1 %1644  ;;  %v1973_v27 = vld [vmem:[#allocation3 + $0x88] sm:$0xff] }
 0x2a4   : > { %1736 = vst.msk [vmem:[#allocation3 + $0x28] sm:$0xff] %vm1730_vm9, %v1645_v25  ;;  %2460 = vmatmul.msk.f32.gmra.mxu2 %vm1997_vm11, %v1973_v27  ;;  %v1683_v38 = vpop.permute.xlu2 %1682 }
 0x2a5   : > { %1929 = vst.msk [vmem:[#allocation3 + $0x28] sm:$0xff] %vm1923_vm10, %v1838_v11  ;;  %v1478_v31 = vpop.permute.xlu0 %1477 }
 0x2a6   : > { %1556 = vst.msk [vmem:[#allocation3 + $0x90] sm:$0xff] %vm1537_vm8, %v1478_v31 }
 0x2a9   : > { %1485 = vrot.lane.b32.xlu1 %v1399_v33, %s2539_s29 }
 0x2aa   : > { %1471 = vrot.lane.b32.xlu2 %v1392_v44, %s2539_s29 }
 0x2ab   : > { %1857 = vrot.lane.b32.xlu0 %v1778_v37, %s2538_s28  ;;  %v1490_v39 = vpop.permute.xlu1 %1489 }
 0x2ac   : > { %1562 = vst.msk [vmem:[#allocation3 + $0xc0] sm:$0xff] %vm1537_vm8, %v1490_v39  ;;  %v1961_v49 = vld [vmem:[#allocation3 + $0x28] sm:$0xff]  ;;  %v1454_v43 = vpop.permute.xlu2 %1453 }
 0x2ad   : > { %1755 = vst.msk [vmem:[#allocation3 + $0xc0] sm:$0xff] %vm1730_vm9, %v1683_v38  ;;  %v1850_v45 = vpop.permute.xlu0 %1849  ;;  %2448 = vmatmul.msk.f32.gmra.mxu0 %vm1997_vm11, %v1961_v49 }
 0x2ae   : > { %1935 = vst.msk [vmem:[#allocation3 + $0x58] sm:$0xff] %vm1923_vm10, %v1850_v45 }
 0x2af   : > { %1544 = vst.msk [vmem:[#allocation3 + $0x30] sm:$0xff] %vm1537_vm8, %v1454_v43 }
 0x2b1   : > { %1678 = vrot.lane.b32.xlu1 %v1592_v53, %s2537_s27 }
 0x2b2   : > { %1497 = vrot.lane.b32.xlu2 %v1405_v48, %s2539_s29 }
 0x2b3   : > { %1871 = vrot.lane.b32.xlu0 %v1785_v50, %s2538_s28  ;;  %v1671_v56 = vpop.permute.xlu1 %1670 }
 0x2b4   : > { %1749 = vst.msk [vmem:[#allocation3 + $0x90] sm:$0xff] %vm1730_vm9, %v1671_v56  ;;  %v1659_v52 = vpop.permute.xlu2 %1658 }
 0x2b5   : > { %v1864_v36 = vpop.permute.xlu0 %1863  ;;  %v1967_v54 = vld [vmem:[#allocation3 + $0x58] sm:$0xff] }
 0x2b6   : > { %1942 = vst.msk [vmem:[#allocation3 + $0x90] sm:$0xff] %vm1923_vm10, %v1864_v36  ;;  %2454 = vmatmul.msk.f32.gmra.mxu1 %vm1997_vm11, %v1967_v54 }
 0x2b9   : > { %1883 = vrot.lane.b32.xlu1 %v1791_v59, %s2538_s28 }
 0x2ba   : > { %1690 = vrot.lane.b32.xlu2 %v1598_v12, %s2537_s27 }
 0x2bb   : > { %1499 = vrot.lane.b32.xlu0 %v1406_v57, %s2539_s29  ;;  %v1876_v55 = vpop.permute.xlu1 %1875 }
 0x2bc   : > { %1948 = vst.msk [vmem:[#allocation3 + $0xc0] sm:$0xff] %vm1923_vm10, %v1876_v55  ;;  %v1840_v0 = vpop.permute.xlu2 %1839 }
 0x2bd   : > { %v1466_v17 = vpop.permute.xlu0 %1465  ;;  %v1974_v21 = vld [vmem:[#allocation3 + $0x90] sm:$0xff] }
 0x2be   : > { %1550 = vst.msk [vmem:[#allocation3 + $0x60] sm:$0xff] %vm1537_vm8, %v1466_v17  ;;  %2461 = vmatmul.msk.f32.gmra.mxu2 %vm1997_vm11, %v1974_v21 }
 0x2bf   : > { %1743 = vst.msk [vmem:[#allocation3 + $0x60] sm:$0xff] %vm1730_vm9, %v1659_v52 }
 0x2c1   : > { %1680 = vrot.lane.b32.xlu1 %v1593_v22, %s2537_s27 }
 0x2c2   : > { %1487 = vrot.lane.b32.xlu2 %v1400_v60, %s2539_s29 }
 0x2c3   : > { %1873 = vrot.lane.b32.xlu0 %v1786_v29, %s2538_s28  ;;  %v1647_v16 = vpop.permute.xlu1 %1646  ;;  %v1980_v8 = vld [vmem:[#allocation3 + $0xc0] sm:$0xff] }
 0x2c4   : > { %1737 = vst.msk [vmem:[#allocation3 + $0x30] sm:$0xff] %vm1730_vm9, %v1647_v16  ;;  %2467 = vmatmul.msk.f32.vlgmr.msra.gmra.mxu3 %vm1997_vm11, %v1980_v8  ;;  %v1685_v34 = vpop.permute.xlu2 %1684 }
 0x2c5   : > { %1930 = vst.msk [vmem:[#allocation3 + $0x30] sm:$0xff] %vm1923_vm10, %v1840_v0  ;;  %v1480_v19 = vpop.permute.xlu0 %1479 }
 0x2c6   : > { %1557 = vst.msk [vmem:[#allocation3 + $0x98] sm:$0xff] %vm1537_vm8, %v1480_v19 }
 0x2c9   : > { %1885 = vrot.lane.b32.xlu1 %v1792_v62, %s2538_s28 }
 0x2ca   : > { %1692 = vrot.lane.b32.xlu2 %v1599_v51, %s2537_s27 }
 0x2cb   : > { %1501 = vrot.lane.b32.xlu0 %v1407_v1, %s2539_s29  ;;  %v1492_v30 = vpop.permute.xlu1 %1491 }
 0x2cc   : > { %1563 = vst.msk [vmem:[#allocation3 + $0xc8] sm:$0xff] %vm1537_vm8, %v1492_v30  ;;  %v1962_v63 = vld [vmem:[#allocation3 + $0x30] sm:$0xff]  ;;  %v1456_v2 = vpop.permute.xlu2 %1455 }
 0x2cd   : > { %1756 = vst.msk [vmem:[#allocation3 + $0xc8] sm:$0xff] %vm1730_vm9, %v1685_v34  ;;  %v1852_v46 = vpop.permute.xlu0 %1851  ;;  %2449 = vmatmul.msk.f32.gmra.mxu0 %vm1997_vm11, %v1962_v63 }
 0x2ce   : > { %1936 = vst.msk [vmem:[#allocation3 + $0x60] sm:$0xff] %vm1923_vm10, %v1852_v46 }
 0x2cf   : > { %1545 = vst.msk [vmem:[#allocation3 + $0x38] sm:$0xff] %vm1537_vm8, %v1456_v2 }
 0x2d1   : > { %1694 = vrot.lane.b32.xlu1 %v1600_v58, %s2537_s27 }
 0x2d2   : > { %1307 = vrot.lane.b32.xlu2 %v1791_v59, %s2536_s26 }
 0x2d3   : > { %1309 = vrot.lane.b32.xlu0 %v1792_v62, %s2536_s26  ;;  %v1673_v5 = vpop.permute.xlu1 %1672 }
 0x2d4   : > { %1750 = vst.msk [vmem:[#allocation3 + $0x98] sm:$0xff] %vm1730_vm9, %v1673_v5  ;;  %v1661_v23 = vpop.permute.xlu2 %1660 }
 0x2d5   : > { %v1866_v61 = vpop.permute.xlu0 %1865  ;;  %v1968_v40 = vld [vmem:[#allocation3 + $0x60] sm:$0xff] }
 0x2d6   : > { %1943 = vst.msk [vmem:[#allocation3 + $0x98] sm:$0xff] %vm1923_vm10, %v1866_v61  ;;  %2455 = vmatmul.msk.f32.gmra.mxu1 %vm1997_vm11, %v1968_v40 }
 0x2d9   : > { %1503 = vrot.lane.b32.xlu1 %v1408_v13, %s2539_s29  ;;  %v2111_v35 = vpop.f32.mrf.mxu0 }
 0x2da   : > { %2207 = vst [vmem:[%s3605_s30] sm:$0xff] %v2111_v35  ;;  %1887 = vrot.lane.b32.xlu2 %v1793_v41, %s2538_s28  ;;  %v2277_v7 = vmul.f32 %v2111_v35, %v2111_v35 }
 0x2db   : > { %1889 = vrot.lane.b32.xlu0 %v1794_v3, %s2538_s28  ;;  %v1878_v4 = vpop.permute.xlu1 %1877  ;;  %s235_s28 = scalar_lea.vmem %s3769_s5, %s2442_s19 }
 0x2dc   : > { %1949 = vst.msk [vmem:[#allocation3 + $0xc8] sm:$0xff] %vm1923_vm10, %v1878_v4  ;;  %v1842_v24 = vpop.permute.xlu2 %1841 }
 0x2dd   : > { %v1468_v28 = vpop.permute.xlu0 %1467  ;;  %v1975_v6 = vld [vmem:[#allocation3 + $0x98] sm:$0xff] }
 0x2de   : > { %1551 = vst.msk [vmem:[#allocation3 + $0x68] sm:$0xff] %vm1537_vm8, %v1468_v28  ;;  %2462 = vmatmul.msk.f32.gmra.mxu2 %vm1997_vm11, %v1975_v6 }
 0x2df   : > { %1744 = vst.msk [vmem:[#allocation3 + $0x68] sm:$0xff] %vm1730_vm9, %v1661_v23 }
 0x2e1   : > { %v2114_v14 = vpop.f32.mrf.mxu0 }
 0x2e2   : > { %2208 = vst [vmem:[%s3605_s30 + $0x8] sm:$0xff] %v2114_v14  ;;  %v2239_v10 = vadd.f32 %v2114_v14, %v2111_v35  ;;  %v2278_v15 = vmul.f32 %v2114_v14, %v2114_v14  ;;  %1696 = vrot.lane.b32.xlu2 %v1601_v9, %s2537_s27 }
 0x2e3   : > { %v1649_v42 = vpop.permute.xlu1 %1648  ;;  %v1981_v26 = vld [vmem:[#allocation3 + $0xc8] sm:$0xff] }
 0x2e4   : > { %v2309_v11 = vadd.f32 %v2278_v15, %v2277_v7  ;;  %1738 = vst.msk [vmem:[#allocation3 + $0x38] sm:$0xff] %vm1730_vm9, %v1649_v42  ;;  %2468 = vmatmul.msk.f32.gmra.mxu3 %vm1997_vm11, %v1981_v26  ;;  %v1687_v18 = vpop.permute.xlu2 %1686 }
 0x2e5   : > { %1931 = vst.msk [vmem:[#allocation3 + $0x38] sm:$0xff] %vm1923_vm10, %v1842_v24  ;;  %v1482_v20 = vpop.permute.xlu0 %1481 }
 0x2e6   : > { %1558 = vst.msk [vmem:[#allocation3 + $0xa0] sm:$0xff] %vm1537_vm8, %v1482_v20 }
 0x2eb   : > { %v1494_v32 = vpop.permute.xlu1 %1493  ;;  %v2117_v47 = vpop.f32.mrf.mxu0 }
 0x2ec   : > { %1564 = vst.msk [vmem:[#allocation3 + $0xd0] sm:$0xff] %vm1537_vm8, %v1494_v32  ;;  %v2240_v25 = vadd.f32 %v2239_v10, %v2117_v47  ;;  %v2279_v27 = vmul.f32 %v2117_v47, %v2117_v47  ;;  %v1963_v38 = vld [vmem:[#allocation3 + $0x38] sm:$0xff]  ;;  %v1470_v31 = vpop.permute.xlu2 %1469 }
 0x2ed   : > { %2209 = vst [vmem:[%s3605_s30 + $0x10] sm:$0xff] %v2117_v47  ;;  %v1854_v33 = vpop.permute.xlu0 %1853  ;;  %2450 = vmatmul.msk.f32.gmra.mxu0 %vm1997_vm11, %v1963_v38 }
 0x2ee   : > { %v2310_v44 = vadd.f32 %v2309_v11, %v2279_v27  ;;  %1937 = vst.msk [vmem:[#allocation3 + $0x68] sm:$0xff] %vm1923_vm10, %v1854_v33 }
 0x2ef   : > { %1757 = vst.msk [vmem:[#allocation3 + $0xd0] sm:$0xff] %vm1730_vm9, %v1687_v18 }
 0x2f0   : > { %1552 = vst.msk [vmem:[#allocation3 + $0x70] sm:$0xff] %vm1537_vm8, %v1470_v31 }
 0x2f1   : > { %v3627_v37 = vpop.f32.mrf.mxu1 }
 0x2f2   : > { %2215 = vst [vmem:[%s3605_s30 + $0x40] sm:$0xff] %v3627_v37 }
 0x2f3   : > { %v1675_v39 = vpop.permute.xlu1 %1674 }
 0x2f4   : > { %1751 = vst.msk [vmem:[#allocation3 + $0xa0] sm:$0xff] %vm1730_vm9, %v1675_v39  ;;  %v1496_v49 = vpop.permute.xlu2 %1495 }
 0x2f5   : > { %v1868_v43 = vpop.permute.xlu0 %1867  ;;  %v1969_v45 = vld [vmem:[#allocation3 + $0x68] sm:$0xff]  ;;  %1565 = vst.msk [vmem:[#allocation3 + $0xd8] sm:$0xff] %vm1537_vm8, %v1496_v49 }
 0x2f6   : > { %1944 = vst.msk [vmem:[#allocation3 + $0xa0] sm:$0xff] %vm1923_vm10, %v1868_v43  ;;  %2456 = vmatmul.msk.f32.gmra.mxu1 %vm1997_vm11, %v1969_v45 }
 0x2f9   : > { %v3635_v53 = vpop.f32.mrf.mxu1 }
 0x2fa   : > { %2216 = vst [vmem:[%s3605_s30 + $0x48] sm:$0xff] %v3635_v53 }
 0x2fb   : > { %v1880_v48 = vpop.permute.xlu1 %1879 }
 0x2fc   : > { %1950 = vst.msk [vmem:[#allocation3 + $0xd0] sm:$0xff] %vm1923_vm10, %v1880_v48  ;;  %v1689_v50 = vpop.permute.xlu2 %1688 }
 0x2fd   : > { %v1663_v56 = vpop.permute.xlu0 %1662  ;;  %v1976_v52 = vld [vmem:[#allocation3 + $0xa0] sm:$0xff]  ;;  %1758 = vst.msk [vmem:[#allocation3 + $0xd8] sm:$0xff] %vm1730_vm9, %v1689_v50 }
 0x2fe   : > { %1745 = vst.msk [vmem:[#allocation3 + $0x70] sm:$0xff] %vm1730_vm9, %v1663_v56  ;;  %2463 = vmatmul.msk.f32.gmra.mxu2 %vm1997_vm11, %v1976_v52 }
 0x301   : > { %v2120_v36 = vpop.f32.mrf.mxu0 }
 0x302   : > { %2210 = vst [vmem:[%s3605_s30 + $0x18] sm:$0xff] %v2120_v36  ;;  %v2241_v54 = vadd.f32 %v2240_v25, %v2120_v36  ;;  %v2280_v59 = vmul.f32 %v2120_v36, %v2120_v36 }
 0x303   : > { %v1484_v12 = vpop.permute.xlu1 %1483  ;;  %v1982_v57 = vld [vmem:[#allocation3 + $0xd0] sm:$0xff] }
 0x304   : > { %v2311_v55 = vadd.f32 %v2310_v44, %v2280_v59  ;;  %1559 = vst.msk [vmem:[#allocation3 + $0xa8] sm:$0xff] %vm1537_vm8, %v1484_v12  ;;  %2469 = vmatmul.msk.f32.gmra.mxu3 %vm1997_vm11, %v1982_v57  ;;  %v1472_v0 = vpop.permute.xlu2 %1471 }
 0x305   : > { %v1856_v17 = vpop.permute.xlu0 %1855  ;;  %1553 = vst.msk [vmem:[#allocation3 + $0x78] sm:$0xff] %vm1537_vm8, %v1472_v0 }
 0x306   : > { %1938 = vst.msk [vmem:[#allocation3 + $0x70] sm:$0xff] %vm1923_vm10, %v1856_v17 }
 0x30b   : > { %v1677_v21 = vpop.permute.xlu1 %1676 }
 0x30c   : > { %1752 = vst.msk [vmem:[#allocation3 + $0xa8] sm:$0xff] %vm1730_vm9, %v1677_v21  ;;  %v1498_v22 = vpop.permute.xlu2 %1497  ;;  %v2286_v21 = vmul.f32 %v3635_v53, %v3635_v53 }
 0x30d   : > { %v1870_v60 = vpop.permute.xlu0 %1869  ;;  %v1970_v29 = vld [vmem:[#allocation3 + $0x70] sm:$0xff]  ;;  %v3649_v16 = vpop.f32.mrf.mxu1  ;;  %1566 = vst.msk [vmem:[#allocation3 + $0xe0] sm:$0xff] %vm1537_vm8, %v1498_v22 }
 0x30e   : > { %1945 = vst.msk [vmem:[#allocation3 + $0xa8] sm:$0xff] %vm1923_vm10, %v1870_v60  ;;  %2457 = vmatmul.msk.f32.gmra.mxu1 %vm1997_vm11, %v1970_v29  ;;  %v2287_v29 = vmul.f32 %v3649_v16, %v3649_v16 }
 0x30f   : > { %v3654_v8 = vpop.f32.mrf.mxu2  ;;  %2217 = vst [vmem:[%s3605_s30 + $0x50] sm:$0xff] %v3649_v16 }
 0x310   : > { %2223 = vst [vmem:[%s3605_s30 + $0x80] sm:$0xff] %v3654_v8 }
 0x313   : > { %v1882_v34 = vpop.permute.xlu1 %1881 }
 0x314   : > { %1951 = vst.msk [vmem:[#allocation3 + $0xd8] sm:$0xff] %vm1923_vm10, %v1882_v34  ;;  %v1691_v19 = vpop.permute.xlu2 %1690 }
 0x315   : > { %v1665_v62 = vpop.permute.xlu0 %1664  ;;  %v1977_v51 = vld [vmem:[#allocation3 + $0xa8] sm:$0xff]  ;;  %1759 = vst.msk [vmem:[#allocation3 + $0xe0] sm:$0xff] %vm1730_vm9, %v1691_v19 }
 0x316   : > { %1746 = vst.msk [vmem:[#allocation3 + $0x78] sm:$0xff] %vm1730_vm9, %v1665_v62  ;;  %2464 = vmatmul.msk.f32.gmra.mxu2 %vm1997_vm11, %v1977_v51 }
 0x319   : > { %v2123_v1 = vpop.f32.mrf.mxu0 }
 0x31a   : > { %2211 = vst [vmem:[%s3605_s30 + $0x20] sm:$0xff] %v2123_v1  ;;  %v2242_v30 = vadd.f32 %v2241_v54, %v2123_v1  ;;  %v2281_v63 = vmul.f32 %v2123_v1, %v2123_v1 }
 0x31b   : > { %v1486_v2 = vpop.permute.xlu1 %1485  ;;  %v1983_v46 = vld [vmem:[#allocation3 + $0xd8] sm:$0xff] }
 0x31c   : > { %v2312_v58 = vadd.f32 %v2311_v55, %v2281_v63  ;;  %1560 = vst.msk [vmem:[#allocation3 + $0xb0] sm:$0xff] %vm1537_vm8, %v1486_v2  ;;  %2470 = vmatmul.msk.f32.gmra.mxu3 %vm1997_vm11, %v1983_v46  ;;  %v1488_v5 = vpop.permute.xlu2 %1487  ;;  %v2285_v55 = vmul.f32 %v3627_v37, %v3627_v37 }
 0x31d   : > { %v1858_v23 = vpop.permute.xlu0 %1857  ;;  %1561 = vst.msk [vmem:[#allocation3 + $0xb8] sm:$0xff] %vm1537_vm8, %v1488_v5 }
 0x31e   : > { %1939 = vst.msk [vmem:[#allocation3 + $0x78] sm:$0xff] %vm1923_vm10, %v1858_v23 }
 0x323   : > { %v1679_v61 = vpop.permute.xlu1 %1678 }
 0x324   : > { %1753 = vst.msk [vmem:[#allocation3 + $0xb0] sm:$0xff] %vm1730_vm9, %v1679_v61  ;;  %v1693_v40 = vpop.permute.xlu2 %1692 }
 0x325   : > { %v1872_v13 = vpop.permute.xlu0 %1871  ;;  %v1971_v41 = vld [vmem:[#allocation3 + $0x78] sm:$0xff] }
 0x326   : > { %1946 = vst.msk [vmem:[#allocation3 + $0xb0] sm:$0xff] %vm1923_vm10, %v1872_v13  ;;  %2458 = vmatmul.msk.f32.gmra.mxu1 %vm1997_vm11, %v1971_v41 }
 0x327   : > { %v3672_v3 = vpop.f32.mrf.mxu2 }
 0x328   : > { %2224 = vst [vmem:[%s3605_s30 + $0x88] sm:$0xff] %v3672_v3 }
 0x32a   : > { %v2126_v35 = vpop.f32.mrf.mxu0 }
 0x32b   : > { %2212 = vst [vmem:[%s3605_s30 + $0x28] sm:$0xff] %v2126_v35  ;;  %v2243_v4 = vadd.f32 %v2242_v30, %v2126_v35  ;;  %v2282_v24 = vmul.f32 %v2126_v35, %v2126_v35  ;;  %v1884_v28 = vpop.permute.xlu1 %1883 }
 0x32c   : > { %1952 = vst.msk [vmem:[#allocation3 + $0xe0] sm:$0xff] %vm1923_vm10, %v1884_v28  ;;  %v1308_v6 = vpop.permute.xlu2 %1307 }
 0x32d   : > { %v2313_v9 = vadd.f32 %v2312_v58, %v2282_v24  ;;  %v1500_v14 = vpop.permute.xlu0 %1499  ;;  %v1978_v7 = vld [vmem:[#allocation3 + $0xb0] sm:$0xff]  ;;  %1374 = vst.msk [vmem:[#allocation3 + $0xf0] sm:$0xff] %vm1343_vm7, %v1308_v6 }
 0x32e   : > { %1567 = vst.msk [vmem:[#allocation3 + $0xe8] sm:$0xff] %vm1537_vm8, %v1500_v14  ;;  %2465 = vmatmul.msk.f32.gmra.mxu2 %vm1997_vm11, %v1978_v7 }
 0x32f   : > { %1760 = vst.msk [vmem:[#allocation3 + $0xe8] sm:$0xff] %vm1730_vm9, %v1693_v40 }
 0x333   : > { %v3682_v10 = vpop.f32.mrf.mxu1  ;;  %v1681_v15 = vpop.permute.xlu1 %1680  ;;  %v1984_v42 = vld [vmem:[#allocation3 + $0xe0] sm:$0xff] }
 0x334   : > { %2218 = vst [vmem:[%s3605_s30 + $0x58] sm:$0xff] %v3682_v10  ;;  %2471 = vmatmul.msk.f32.gmra.mxu3 %vm1997_vm11, %v1984_v42  ;;  %v1888_v32 = vpop.permute.xlu2 %1887  ;;  %v2288_v62 = vmul.f32 %v3682_v10, %v3682_v10 }
 0x335   : > { %1754 = vst.msk [vmem:[#allocation3 + $0xb8] sm:$0xff] %vm1730_vm9, %v1681_v15  ;;  %v1874_v26 = vpop.permute.xlu0 %1873 }
 0x336   : > { %1947 = vst.msk [vmem:[#allocation3 + $0xb8] sm:$0xff] %vm1923_vm10, %v1874_v26 }
 0x33b   : > { %v1886_v11 = vpop.permute.xlu1 %1885 }
 0x33c   : > { %1953 = vst.msk [vmem:[#allocation3 + $0xe8] sm:$0xff] %vm1923_vm10, %v1886_v11  ;;  %v1697_v44 = vpop.permute.xlu2 %1696 }
 0x33d   : > { %v1502_v18 = vpop.permute.xlu0 %1501  ;;  %v1979_v20 = vld [vmem:[#allocation3 + $0xb8] sm:$0xff] }
 0x33e   : > { %1568 = vst.msk [vmem:[#allocation3 + $0xf0] sm:$0xff] %vm1537_vm8, %v1502_v18  ;;  %2466 = vmatmul.msk.f32.gmra.mxu2 %vm1997_vm11, %v1979_v20 }
 0x341   : > { %v3692_v47 = vpop.f32.mrf.mxu2 }
 0x342   : > { %2225 = vst [vmem:[%s3605_s30 + $0x90] sm:$0xff] %v3692_v47  ;;  %v2295_v26 = vmul.f32 %v3692_v47, %v3692_v47 }
 0x343   : > { %v1695_v25 = vpop.permute.xlu1 %1694  ;;  %v1985_v27 = vld [vmem:[#allocation3 + $0xe8] sm:$0xff] }
 0x344   : > { %1761 = vst.msk [vmem:[#allocation3 + $0xf0] sm:$0xff] %vm1730_vm9, %v1695_v25  ;;  %2472 = vmatmul.msk.f32.gmra.mxu3 %vm1997_vm11, %v1985_v27 }
 0x345   : > { %1954 = vst.msk [vmem:[#allocation3 + $0xf0] sm:$0xff] %vm1923_vm10, %v1888_v32  ;;  %v1310_v38 = vpop.permute.xlu0 %1309 }
 0x346   : > { %1375 = vst.msk [vmem:[#allocation3 + $0xf8] sm:$0xff] %vm1343_vm7, %v1310_v38 }
 0x347   : > { %v3700_v31 = vpop.f32.mrf.mxu3 }
 0x348   : > { %2231 = vst [vmem:[%s3605_s30 + $0xc0] sm:$0xff] %v3700_v31 }
 0x34a   : > { %v2129_v33 = vpop.f32.mrf.mxu0 }
 0x34b   : > { %2213 = vst [vmem:[%s3605_s30 + $0x30] sm:$0xff] %v2129_v33  ;;  %v2244_v39 = vadd.f32 %v2243_v4, %v2129_v33  ;;  %v2283_v49 = vmul.f32 %v2129_v33, %v2129_v33  ;;  %v1504_v43 = vpop.permute.xlu1 %1503 }
 0x34c   : > { %1569 = vst.msk [vmem:[#allocation3 + $0xf8] sm:$0xff] %vm1537_vm8, %v1504_v43  ;;  %v1986_v45 = vld [vmem:[#allocation3 + $0xf0] sm:$0xff] }
 0x34d   : > { %v2314_v48 = vadd.f32 %v2313_v9, %v2283_v49  ;;  %1762 = vst.msk [vmem:[#allocation3 + $0xf8] sm:$0xff] %vm1730_vm9, %v1697_v44  ;;  %v1890_v50 = vpop.permute.xlu0 %1889  ;;  %2473 = vmatmul.msk.f32.gmra.mxu3 %vm1997_vm11, %v1986_v45  ;;  %v2293_v9 = vmul.f32 %v3654_v8, %v3654_v8 }
 0x34e   : > { %1955 = vst.msk [vmem:[#allocation3 + $0xf8] sm:$0xff] %vm1923_vm10, %v1890_v50 }
 0x353   : > { %v2147_v56 = vpop.f32.mrf.mxu1 }
 0x354   : > { %2219 = vst [vmem:[%s3605_s30 + $0x60] sm:$0xff] %v2147_v56 }
 0x355   : > { %v1987_v52 = vld [vmem:[#allocation3 + $0xf8] sm:$0xff] }
 0x356   : > { %2474 = vmatmul.msk.f32.gmra.mxu3 %vm1997_vm11, %v1987_v52 }
 0x361   : > { %v2168_v36 = vpop.f32.mrf.mxu2 }
 0x362   : > { %2226 = vst [vmem:[%s3605_s30 + $0x98] sm:$0xff] %v2168_v36  ;;  %v2296_v20 = vmul.f32 %v2168_v36, %v2168_v36 }
 0x367   : > { %v3712_v54 = vpop.f32.mrf.mxu3 }
 0x368   : > { %2232 = vst [vmem:[%s3605_s30 + $0xc8] sm:$0xff] %v3712_v54 }
 0x36a   : > { %v2132_v59 = vpop.f32.mrf.mxu0 }
 0x36b   : > { %2214 = vst [vmem:[%s3605_s30 + $0x38] sm:$0xff] %v2132_v59  ;;  %v2245_v12 = vadd.f32 %v2244_v39, %v2132_v59  ;;  %v2284_v57 = vmul.f32 %v2132_v59, %v2132_v59 }
 0x36d   : > { %v2246_v0 = vadd.f32 %v2245_v12, %v3627_v37  ;;  %v2315_v17 = vadd.f32 %v2314_v48, %v2284_v57  ;;  %v2302_v57 = vmul.f32 %v3712_v54, %v3712_v54 }
 0x36f   : > { %v2247_v22 = vadd.f32 %v2246_v0, %v3635_v53  ;;  %v2316_v60 = vadd.f32 %v2315_v17, %v2285_v55  ;;  %v2289_v53 = vmul.f32 %v2147_v56, %v2147_v56 }
 0x371   : > { %v2248_v34 = vadd.f32 %v2247_v22, %v3649_v16  ;;  %v2317_v19 = vadd.f32 %v2316_v60, %v2286_v21 }
 0x373   : > { %v2318_v51 = vadd.f32 %v2317_v19, %v2287_v29  ;;  %v2150_v37 = vpop.f32.mrf.mxu1  ;;  %v2249_v1 = vadd.f32 %v2248_v34, %v3682_v10  ;;  %v2294_v10 = vmul.f32 %v3672_v3, %v3672_v3 }
 0x374   : > { %2220 = vst [vmem:[%s3605_s30 + $0x68] sm:$0xff] %v2150_v37  ;;  %v2290_v46 = vmul.f32 %v2150_v37, %v2150_v37 }
 0x375   : > { %v2250_v30 = vadd.f32 %v2249_v1, %v2147_v56  ;;  %v2319_v63 = vadd.f32 %v2318_v51, %v2288_v62 }
 0x377   : > { %v2251_v2 = vadd.f32 %v2250_v30, %v2150_v37  ;;  %v2320_v58 = vadd.f32 %v2319_v63, %v2289_v53 }
 0x379   : > { %v2321_v16 = vadd.f32 %v2320_v58, %v2290_v46 }
 0x381   : > { %v2171_v5 = vpop.f32.mrf.mxu2 }
 0x382   : > { %2227 = vst [vmem:[%s3605_s30 + $0xa0] sm:$0xff] %v2171_v5 }
 0x387   : > { %v2189_v23 = vpop.f32.mrf.mxu3 }
 0x388   : > { %2233 = vst [vmem:[%s3605_s30 + $0xd0] sm:$0xff] %v2189_v23  ;;  %v2303_v21 = vmul.f32 %v2189_v23, %v2189_v23 }
 0x38b   : > { %v2153_v61 = vpop.f32.mrf.mxu1 }
 0x38c   : > { %2221 = vst [vmem:[%s3605_s30 + $0x70] sm:$0xff] %v2153_v61  ;;  %v2291_v41 = vmul.f32 %v2153_v61, %v2153_v61  ;;  %v2252_v35 = vadd.f32 %v2251_v2, %v2153_v61 }
 0x38e   : > { %v2322_v24 = vadd.f32 %v2321_v16, %v2291_v41 }
 0x399   : > { %v2174_v40 = vpop.f32.mrf.mxu2 }
 0x39a   : > { %2228 = vst [vmem:[%s3605_s30 + $0xa8] sm:$0xff] %v2174_v40 }
 0x39f   : > { %v2192_v13 = vpop.f32.mrf.mxu3 }
 0x3a0   : > { %2234 = vst [vmem:[%s3605_s30 + $0xd8] sm:$0xff] %v2192_v13  ;;  %v2304_v34 = vmul.f32 %v2192_v13, %v2192_v13 }
 0x3a3   : > { %v2156_v4 = vpop.f32.mrf.mxu1 }
 0x3a4   : > { %2222 = vst [vmem:[%s3605_s30 + $0x78] sm:$0xff] %v2156_v4  ;;  %v2253_v28 = vadd.f32 %v2252_v35, %v2156_v4  ;;  %v2292_v6 = vmul.f32 %v2156_v4, %v2156_v4 }
 0x3a6   : > { %v2254_v14 = vadd.f32 %v2253_v28, %v3654_v8  ;;  %v2323_v7 = vadd.f32 %v2322_v24, %v2292_v6  ;;  %v2297_v8 = vmul.f32 %v2171_v5, %v2171_v5 }
 0x3a8   : > { %v2255_v15 = vadd.f32 %v2254_v14, %v3672_v3  ;;  %v2324_v42 = vadd.f32 %v2323_v7, %v2293_v9  ;;  %v2298_v3 = vmul.f32 %v2174_v40, %v2174_v40 }
 0x3aa   : > { %v2256_v11 = vadd.f32 %v2255_v15, %v3692_v47  ;;  %v2325_v18 = vadd.f32 %v2324_v42, %v2294_v10 }
 0x3ac   : > { %v2326_v32 = vadd.f32 %v2325_v18, %v2295_v26  ;;  %v2257_v25 = vadd.f32 %v2256_v11, %v2168_v36  ;;  %v2301_v36 = vmul.f32 %v3700_v31, %v3700_v31 }
 0x3ae   : > { %v2258_v27 = vadd.f32 %v2257_v25, %v2171_v5  ;;  %v2327_v38 = vadd.f32 %v2326_v32, %v2296_v20 }
 0x3b0   : > { %v2328_v33 = vadd.f32 %v2327_v38, %v2297_v8  ;;  %v2259_v49 = vadd.f32 %v2258_v27, %v2174_v40 }
 0x3b1   : > { %v2177_v44 = vpop.f32.mrf.mxu2 }
 0x3b2   : > { %2229 = vst [vmem:[%s3605_s30 + $0xb0] sm:$0xff] %v2177_v44  ;;  %v2299_v43 = vmul.f32 %v2177_v44, %v2177_v44  ;;  %v2329_v45 = vadd.f32 %v2328_v33, %v2298_v3  ;;  %v2260_v48 = vadd.f32 %v2259_v49, %v2177_v44 }
 0x3b4   : > { %v2330_v50 = vadd.f32 %v2329_v45, %v2299_v43 }
 0x3b7   : > { %v2195_v39 = vpop.f32.mrf.mxu3 }
 0x3b8   : > { %2235 = vst [vmem:[%s3605_s30 + $0xe0] sm:$0xff] %v2195_v39  ;;  %v2305_v51 = vmul.f32 %v2195_v39, %v2195_v39 }
 0x3c1   : > { %v2180_v47 = vpop.f32.mrf.mxu2 }
 0x3c2   : > { %2230 = vst [vmem:[%s3605_s30 + $0xb8] sm:$0xff] %v2180_v47  ;;  %v2261_v56 = vadd.f32 %v2260_v48, %v2180_v47  ;;  %v2300_v52 = vmul.f32 %v2180_v47, %v2180_v47 }
 0x3c4   : > { %v2262_v59 = vadd.f32 %v2261_v56, %v3700_v31  ;;  %v2331_v12 = vadd.f32 %v2330_v50, %v2300_v52 }
 0x3c6   : > { %v2263_v55 = vadd.f32 %v2262_v59, %v3712_v54  ;;  %v2332_v0 = vadd.f32 %v2331_v12, %v2301_v36 }
 0x3c7   : > { %v2198_v17 = vpop.f32.mrf.mxu3 }
 0x3c8   : > { %v2264_v22 = vadd.f32 %v2263_v55, %v2189_v23  ;;  %v2333_v60 = vadd.f32 %v2332_v0, %v2302_v57  ;;  %2236 = vst [vmem:[%s3605_s30 + $0xe8] sm:$0xff] %v2198_v17  ;;  %v2306_v30 = vmul.f32 %v2198_v17, %v2198_v17 }
 0x3ca   : > { %v2334_v29 = vadd.f32 %v2333_v60, %v2303_v21  ;;  %v2265_v19 = vadd.f32 %v2264_v22, %v2192_v13 }
 0x3cc   : > { %v2335_v62 = vadd.f32 %v2334_v29, %v2304_v34  ;;  %v2266_v31 = vadd.f32 %v2265_v19, %v2195_v39 }
 0x3ce   : > { %v2336_v1 = vadd.f32 %v2335_v62, %v2305_v51  ;;  %v2267_v53 = vadd.f32 %v2266_v31, %v2198_v17 }
 0x3d0   : > { %v2201_v37 = vpop.f32.mrf.mxu3  ;;  %v2337_v54 = vadd.f32 %v2336_v1, %v2306_v30 }
 0x3d1   : > { %2237 = vst [vmem:[%s3605_s30 + $0xf0] sm:$0xff] %v2201_v37  ;;  %v2307_v63 = vmul.f32 %v2201_v37, %v2201_v37  ;;  %v2268_v2 = vadd.f32 %v2267_v53, %v2201_v37 }
 0x3d3   : > { %v2338_v58 = vadd.f32 %v2337_v54, %v2307_v63 }
 0x3d9   : > { %v2204_v46 = vpop.f32.mrf.mxu3 }
 0x3da   : > { %2238 = vst [vmem:[%s3605_s30 + $0xf8] sm:$0xff] %v2204_v46  ;;  %v2269_v16 = vadd.f32 %v2268_v2, %v2204_v46  ;;  %v2308_v5 = vmul.f32 %v2204_v46, %v2204_v46 }
 0x3dc   : > { %v2270_v23 = vrot.slane %v2269_v16, 4  ;;  %v2339_v61 = vadd.f32 %v2338_v58, %v2308_v5 }
 0x3de   : > { %v2271_v40 = vadd.f32 %v2270_v23, %v2269_v16  ;;  %v2340_v13 = vrot.slane %v2339_v61, 4 }
 0x3e0   : > { %v2272_v41 = vrot.slane %v2271_v40, 2  ;;  %v2341_v35 = vadd.f32 %v2340_v13, %v2339_v61 }
 0x3e2   : > { %v2273_v4 = vadd.f32 %v2272_v41, %v2271_v40  ;;  %v2342_v24 = vrot.slane %v2341_v35, 2 }
 0x3e4   : > { %v2274_v28 = vrot.slane %v2273_v4, 1  ;;  %v2343_v6 = vadd.f32 %v2342_v24, %v2341_v35 }
 0x3e6   : > { %v2275_v9 = vadd.f32 %v2274_v28, %v2273_v4  ;;  %v2344_v14 = vrot.slane %v2343_v6, 1 }
 0x3e8   : > { %2276 = vst [vmem:[%s235_s28] sm:$0x1] %v2275_v9  ;;  %v2345_v7 = vadd.f32 %v2344_v14, %v2343_v6 }
 0x3ea   : > { %2346 = vst [vmem:[%s235_s28 + $0x1] sm:$0x1] %v2345_v7 }
 0x3eb PF: > { %s16_s18 = sadd.s32 1, %s2529_s18  }
 0x3ec   : > { %p13_p4 = scmp.ge.s32.totalorder %s16_s18, 4  }
 0x3ee   :  { %15 = sbr.rel (!%p13_p4) target bundleno = 1 (0x1), region = 81 }

// kernel: up_forward.3
= control target key start
LH: loop header
LB: loop body
LE: loop exit
PB: predicated region body
PF: predicated region fallthrough
CT: control target
= control target key end

     0   :  { %s2815_s18 = smov 0   ;;  %s3848_s0 = inlined_call_operand.vmem [shape: f32[2,16,16,128], index: 0, kind: input, shape index: {}]   ;;  %s3849_s1 = inlined_call_operand.vmem [shape: f32[1,128], index: 1, kind: input, shape index: {}]   ;;  %s3850_s2 = inlined_call_operand.vmem [shape: f32[1,128], index: 2, kind: input, shape index: {}]   ;;  %s3851_s3 = inlined_call_operand.vmem [shape: f32[1152,128], index: 3, kind: input, shape index: {}]   ;;  %s3852_s4 = inlined_call_operand.vmem [shape: f32[2,16,16,128], index: 4, kind: output, shape index: {0}]   ;;  %s3853_s5 = inlined_call_operand.vmem [shape: f32[2,2,128], index: 5, kind: output, shape index: {1}]  }
   0x1 LB: > { %s2700_s19 = sadd.s32 4294967295, %s2782_s18   ;;  %p2704_p0 = scmp.ge.s32.totalorder %s2782_s18, 1  ;;  %s2782_s18 = sphi %s2815_s18, %s16_s18  }
   0x2   : > { %p190_p1 = scmp.lt.s32.totalorder %s2782_s18, 3 }
   0x4   : > { %p191_p2 = pnand %p2704_p0, %p190_p1 }
   0x5   : > { %p222_p3 = scmp.lt.s32.totalorder (!%p191_p2), %s2700_s19, 1 }
   0x6   : > { %194 = sbr.rel (%p191_p2) target bundleno = 785 (0x311), region = 36 }
   0xb   : > { %v1328_v0 = vld [vmem:[%s3851_s3 + $0x78] sm:$0xff]  ;;  %v1327_v1 = vld [vmem:[%s3851_s3 + $0x70] sm:$0xff]  ;;  %v2784_v2 = vmov 0.0   ;;  %v1326_v3 = vld [vmem:[%s3851_s3 + $0x68] sm:$0xff]  ;;  %s3855_s19 = smov (!%p222_p3, %s2700_s19), 1 }
   0xc   : > { %2714 = vmatpush.msra.mxu1 %v1328_v0  ;;  %2715 = vmatpush.msra.mxu2 %v1328_v0  ;;  %383 = vst [vmem:[#allocation2 + $0x60] sm:$0x1] %v2784_v2  ;;  %v1325_v4 = vld [vmem:[%s3851_s3 + $0x60] sm:$0xff]  ;;  %s2712_s28 = sshll.u32 %s3855_s19, 8  ;;  %v1324_v5 = vld [vmem:[%s3851_s3 + $0x58] sm:$0xff]  ;;  %v1323_v10 = vld [vmem:[%s3851_s3 + $0x50] sm:$0xff] }
   0xd   : > { %2716 = vmatpush.msra.mxu3 %v1328_v0  ;;  %1457 = vmatpush.msra.mxu0 %v1328_v0  ;;  %372 = vst [vmem:[#allocation2] sm:$0xff] %v2784_v2  ;;  %s2850_s8 = scalar_lea.vmem %s3848_s0, %s2712_s28  ;;  %v2855_v6 = vld [vmem:[%s3849_s1] ss:$0 sm:$0xff]  ;;  %v1322_v12 = vld [vmem:[%s3851_s3 + $0x48] sm:$0xff]  ;;  %v1320_v15 = vld [vmem:[%s3851_s3 + $0x38] sm:$0xff]  ;;  %s3776_s25 = scalar_lea.vmem %s3852_s4, %s2712_s28 }
   0xe   : > { %2717 = vmatpush.msra.mxu1 %v1327_v1  ;;  %2718 = vmatpush.msra.mxu2 %v1327_v1  ;;  %373 = vst [vmem:[#allocation2 + $0x8] sm:$0xff] %v2784_v2  ;;  %v242_v7 = vld [vmem:[%s2850_s8 + $0x30] sm:$0xff]  ;;  %v2862_v8 = vld [vmem:[%s3850_s2] ss:$0 sm:$0xff]  ;;  %v1318_v17 = vld [vmem:[%s3851_s3 + $0x28] sm:$0xff]  ;;  %s2709_s28 = sshll.u32 %s3855_s19, 1 }
   0xf   : > { %2719 = vmatpush.msra.mxu3 %v1327_v1  ;;  %1458 = vmatpush.msra.mxu0 %v1327_v1  ;;  %374 = vst [vmem:[#allocation2 + $0x10] sm:$0x3] %v2784_v2  ;;  %v278_v9 = vmul.f32 %v2855_v6, %v242_v7  ;;  %v1321_v14 = vld [vmem:[%s3851_s3 + $0x40] sm:$0xff]  ;;  %v1319_v16 = vld [vmem:[%s3851_s3 + $0x30] sm:$0xff]  ;;  %v1316_v19 = vld [vmem:[%s3851_s3 + $0x18] sm:$0xff]  ;;  %s235_s29 = scalar_lea.vmem %s3853_s5, %s2709_s28 }
  0x10   : > { %2720 = vmatpush.msra.mxu1 %v1326_v3  ;;  %2721 = vmatpush.msra.mxu2 %v1326_v3  ;;  %376 = vst [vmem:[#allocation2 + $0x198] sm:$0xff] %v2784_v2  ;;  %v1317_v18 = vld [vmem:[%s3851_s3 + $0x20] sm:$0xff]  ;;  %v1315_v20 = vld [vmem:[%s3851_s3 + $0x10] sm:$0xff]  ;;  %v1314_v22 = vld [vmem:[%s3851_s3 + $0x8] sm:$0xff] }
  0x11   : > { %2722 = vmatpush.msra.mxu3 %v1326_v3  ;;  %1459 = vmatpush.msra.mxu0 %v1326_v3  ;;  %377 = vst [vmem:[#allocation2 + $0x1a0] sm:$0xff] %v2784_v2  ;;  %v314_v11 = vadd.f32 %v2862_v8, %v278_v9  ;;  %v250_v21 = vld [vmem:[%s2850_s8 + $0x70] sm:$0xff]  ;;  %v1313_v23 = vld [vmem:[%s3851_s3] sm:$0xff]  ;;  %v1360_v26 = vld [vmem:[%s3851_s3 + $0x178] sm:$0xff] }
  0x12   : > { %2723 = vmatpush.msra.mxu1 %v1325_v4  ;;  %2724 = vmatpush.msra.mxu2 %v1325_v4  ;;  %378 = vst [vmem:[#allocation2 + $0x1a8] sm:$0x3] %v2784_v2  ;;  %v286_v24 = vmul.f32 %v2855_v6, %v250_v21  ;;  %v258_v27 = vld [vmem:[%s2850_s8 + $0xb0] sm:$0xff]  ;;  %v1344_v28 = vld [vmem:[%s3851_s3 + $0xf8] sm:$0xff]  ;;  %v1358_v37 = vld [vmem:[%s3851_s3 + $0x168] sm:$0xff] }
  0x13   : > { %2725 = vmatpush.msra.mxu3 %v1325_v4  ;;  %1460 = vmatpush.msra.mxu0 %v1325_v4  ;;  %380 = vst [vmem:[#allocation2 + $0x18] sm:$0x1] %v2784_v2  ;;  %v2877_v13 = vmax.f32 %v314_v11, 0.0  ;;  %v1376_v29 = vld [vmem:[%s3851_s3 + $0x1f8] sm:$0xff]  ;;  %v1359_v30 = vld [vmem:[%s3851_s3 + $0x170] sm:$0xff]  ;;  %v294_v35 = vmul.f32 %v2855_v6, %v258_v27  ;;  %v1342_v41 = vld [vmem:[%s3851_s3 + $0xe8] sm:$0xff] }
  0x14   : > { %2726 = vmatpush.msra.mxu1 %v1324_v5  ;;  %2727 = vmatpush.msra.mxu2 %v1324_v5  ;;  %381 = vst [vmem:[#allocation2 + $0x30] sm:$0x1] %v2784_v2  ;;  %v243_v31 = vld [vmem:[%s2850_s8 + $0x38] sm:$0xff]  ;;  %v322_v32 = vadd.f32 %v2862_v8, %v286_v24  ;;  %v1343_v34 = vld [vmem:[%s3851_s3 + $0xf0] sm:$0xff]  ;;  %v244_v42 = vld [vmem:[%s2850_s8 + $0x40] sm:$0xff] }
  0x15   : > { %2728 = vmatpush.msra.mxu3 %v1324_v5  ;;  %1461 = vmatpush.msra.mxu0 %v1324_v5  ;;  %382 = vst [vmem:[#allocation2 + $0x48] sm:$0x1] %v2784_v2  ;;  %v251_v33 = vld [vmem:[%s2850_s8 + $0x78] sm:$0xff]  ;;  %v1375_v36 = vld [vmem:[%s3851_s3 + $0x1f0] sm:$0xff]  ;;  %v279_v39 = vmul.f32 %v2855_v6, %v243_v31  ;;  %v1374_v44 = vld [vmem:[%s3851_s3 + $0x1e8] sm:$0xff]  ;;  %v2990_v52 = vadd.f32 %v2862_v8, %v294_v35 }
  0x16   : > { %2729 = vmatpush.msra.mxu1 %v1323_v10  ;;  %2730 = vmatpush.msra.mxu2 %v1323_v10  ;;  %384 = vst [vmem:[#allocation2 + $0x78] sm:$0x1] %v2784_v2  ;;  %v259_v38 = vld [vmem:[%s2850_s8 + $0xb8] sm:$0xff]  ;;  %v287_v43 = vmul.f32 %v2855_v6, %v251_v33  ;;  %v1357_v45 = vld [vmem:[%s3851_s3 + $0x160] sm:$0xff]  ;;  %v354_v47 = vmax.f32 %v322_v32, 0.0  ;;  %v1391_v49 = vld [vmem:[%s3851_s3 + $0x270] sm:$0xff]  ;;  %v280_v54 = vmul.f32 %v2855_v6, %v244_v42 }
  0x17   : > { %2731 = vmatpush.msra.mxu3 %v1323_v10  ;;  %1462 = vmatpush.msra.mxu0 %v1323_v10  ;;  %385 = vst [vmem:[#allocation2 + $0x90] sm:$0x1] %v2784_v2  ;;  %v1392_v40 = vld [vmem:[%s3851_s3 + $0x278] sm:$0xff]  ;;  %v252_v46 = vld [vmem:[%s2850_s8 + $0x80] sm:$0xff]  ;;  %v295_v48 = vmul.f32 %v2855_v6, %v259_v38  ;;  %v245_v56 = vld [vmem:[%s2850_s8 + $0x48] sm:$0xff]  ;;  %v315_v57 = vadd.f32 %v2862_v8, %v279_v39  ;;  %v362_v11 = vmax.f32 %v2990_v52, 0.0 }
  0x18   : > { %2732 = vmatpush.msra.mxu1 %v1322_v12  ;;  %2733 = vmatpush.msra.mxu2 %v1322_v12  ;;  %422 = vst [vmem:[#allocation2 + $0x61] sm:$0xff] %v2877_v13  ;;  %v1341_v50 = vld [vmem:[%s3851_s3 + $0xe0] sm:$0xff]  ;;  %v1356_v55 = vld [vmem:[%s3851_s3 + $0x158] sm:$0xff]  ;;  %v288_v58 = vmul.f32 %v2855_v6, %v252_v46  ;;  %v1390_v59 = vld [vmem:[%s3851_s3 + $0x268] sm:$0xff]  ;;  %v3012_v62 = vadd.f32 %v2862_v8, %v287_v43 }
  0x19   : > { %2734 = vmatpush.msra.mxu3 %v1322_v12  ;;  %1463 = vmatpush.msra.mxu0 %v1322_v12  ;;  %386 = vst [vmem:[#allocation2 + $0xa8] sm:$0x1] %v2784_v2  ;;  %v260_v51 = vld [vmem:[%s2850_s8 + $0xc0] sm:$0xff]  ;;  %v1340_v60 = vld [vmem:[%s3851_s3 + $0xd8] sm:$0xff]  ;;  %v253_v61 = vld [vmem:[%s2850_s8 + $0x88] sm:$0xff]  ;;  %v3023_v4 = vadd.f32 %v2862_v8, %v295_v48  ;;  %v281_v7 = vmul.f32 %v2855_v6, %v245_v56 }
  0x1a   : > { %2735 = vmatpush.msra.mxu1 %v1321_v14  ;;  %2736 = vmatpush.msra.mxu2 %v1321_v14  ;;  %387 = vst [vmem:[#allocation2 + $0xc0] sm:$0x1] %v2784_v2  ;;  %v1373_v53 = vld [vmem:[%s3851_s3 + $0x1e0] sm:$0xff]  ;;  %v296_v63 = vmul.f32 %v2855_v6, %v260_v51  ;;  %v1372_v0 = vld [vmem:[%s3851_s3 + $0x1d8] sm:$0xff]  ;;  %v1355_v1 = vld [vmem:[%s3851_s3 + $0x150] sm:$0xff]  ;;  %v316_v12 = vadd.f32 %v2862_v8, %v280_v54 }
  0x1b   : > { %2737 = vmatpush.msra.mxu3 %v1321_v14  ;;  %1464 = vmatpush.msra.mxu0 %v1321_v14  ;;  %388 = vst [vmem:[#allocation2 + $0xd8] sm:$0x1] %v2784_v2  ;;  %v236_v3 = vld [vmem:[%s2850_s8] sm:$0xff]  ;;  %v1339_v9 = vld [vmem:[%s3851_s3 + $0xd0] sm:$0xff]  ;;  %v261_v10 = vld [vmem:[%s2850_s8 + $0xc8] sm:$0xff]  ;;  %v363_v27 = vmax.f32 %v3023_v4, 0.0 }
  0x1c   : > { %2738 = vmatpush.msra.mxu1 %v1320_v15  ;;  %2739 = vmatpush.msra.mxu2 %v1320_v15  ;;  %389 = vst [vmem:[#allocation2 + $0xf0] sm:$0x1] %v2784_v2  ;;  %v1389_v5 = vld [vmem:[%s3851_s3 + $0x260] sm:$0xff]  ;;  %v1371_v14 = vld [vmem:[%s3851_s3 + $0x1d0] sm:$0xff]  ;;  %v297_v24 = vmul.f32 %v2855_v6, %v261_v10  ;;  %v247_v31 = vld [vmem:[%s2850_s8 + $0x58] sm:$0xff]  ;;  %v3062_v33 = vmax.f32 %v316_v12, 0.0 }
  0x1d   : > { %2740 = vmatpush.msra.mxu3 %v1320_v15  ;;  %1465 = vmatpush.msra.mxu0 %v1320_v15  ;;  %390 = vst [vmem:[#allocation2 + $0x108] sm:$0x1] %v2784_v2  ;;  %v289_v15 = vmul.f32 %v2855_v6, %v253_v61  ;;  %v254_v21 = vld [vmem:[%s2850_s8 + $0x90] sm:$0xff]  ;;  %v255_v32 = vld [vmem:[%s2850_s8 + $0x98] sm:$0xff]  ;;  %v1370_v35 = vld [vmem:[%s3851_s3 + $0x1c8] sm:$0xff]  ;;  %v283_v56 = vmul.f32 %v2855_v6, %v247_v31 }
  0x1e   : > { %2741 = vmatpush.msra.mxu1 %v1319_v16  ;;  %2742 = vmatpush.msra.mxu2 %v1319_v16  ;;  %391 = vst [vmem:[#allocation2 + $0x120] sm:$0x1] %v2784_v2  ;;  %v290_v38 = vmul.f32 %v2855_v6, %v254_v21  ;;  %v1369_v42 = vld [vmem:[%s3851_s3 + $0x1c0] sm:$0xff]  ;;  %v1387_v43 = vld [vmem:[%s3851_s3 + $0x250] sm:$0xff]  ;;  %v1368_v12 = vld [vmem:[%s3851_s3 + $0x1b8] sm:$0xff] }
  0x1f   : > { %2743 = vmatpush.msra.mxu3 %v1319_v16  ;;  %1466 = vmatpush.msra.mxu0 %v1319_v16  ;;  %392 = vst [vmem:[#allocation2 + $0x138] sm:$0x1] %v2784_v2  ;;  %v2926_v25 = vld [vmem:[#allocation2 + $0x60] sm:$0xff]  ;;  %v1354_v16 = vld [vmem:[%s3851_s3 + $0x148] sm:$0xff]  ;;  %v1336_v21 = vld [vmem:[%s3851_s3 + $0xb8] sm:$0xff] }
  0x20   : > { %2744 = vmatpush.msra.mxu1 %v1318_v17  ;;  %2745 = vmatpush.msra.mxu2 %v1318_v17  ;;  %393 = vst [vmem:[#allocation2 + $0x150] sm:$0x1] %v2784_v2  ;;  %v1337_v54 = vld [vmem:[%s3851_s3 + $0xc0] sm:$0xff]  ;;  %v1350_v31 = vld [vmem:[%s3851_s3 + $0x128] sm:$0xff] }
  0x21   : > { %2746 = vmatpush.msra.mxu3 %v1318_v17  ;;  %1467 = vmatpush.msra.mxu0 %v1318_v17  ;;  %394 = vst [vmem:[#allocation2 + $0x168] sm:$0x1] %v2784_v2  ;;  %v246_v17 = vld [vmem:[%s2850_s8 + $0x50] sm:$0xff] }
  0x22   : > { %2747 = vmatpush.msra.mxu1 %v1317_v18  ;;  %2748 = vmatpush.msra.mxu2 %v1317_v18  ;;  %395 = vst [vmem:[#allocation2 + $0x180] sm:$0x1] %v2784_v2 }
  0x23   : > { %2749 = vmatpush.msra.mxu3 %v1317_v18  ;;  %398 = vst [vmem:[#allocation2 + $0x29] sm:$0x1] %v2784_v2  ;;  %1468 = vmatpush.msra.mxu0 %v1317_v18  ;;  %v3045_v18 = vmax.f32 %v315_v57, 0.0 }
  0x24   : > { %2750 = vmatpush.msra.mxu1 %v1316_v19  ;;  %2751 = vmatpush.msra.mxu2 %v1316_v19  ;;  %399 = vst [vmem:[#allocation2 + $0x41] sm:$0x1] %v2784_v2 }
  0x25   : > { %2752 = vmatpush.msra.mxu3 %v1316_v19  ;;  %400 = vst [vmem:[#allocation2 + $0x59] sm:$0x1] %v2784_v2  ;;  %1469 = vmatpush.msra.mxu0 %v1316_v19  ;;  %v324_v19 = vadd.f32 %v2862_v8, %v288_v58  ;;  %v326_v58 = vadd.f32 %v2862_v8, %v290_v38 }
  0x26   : > { %2753 = vmatpush.msra.mxu1 %v1315_v20  ;;  %2754 = vmatpush.msra.mxu2 %v1315_v20  ;;  %401 = vst [vmem:[#allocation2 + $0x71] sm:$0x1] %v2784_v2 }
  0x27   : > { %2755 = vmatpush.msra.mxu3 %v1315_v20  ;;  %402 = vst [vmem:[#allocation2 + $0x89] sm:$0x1] %v2784_v2  ;;  %1470 = vmatpush.msra.mxu0 %v1315_v20  ;;  %v272_v20 = vmul.f32 %v2855_v6, %v236_v3  ;;  %v356_v39 = vmax.f32 %v324_v19, 0.0 }
  0x28   : > { %2756 = vmatpush.msra.mxu1 %v1314_v22  ;;  %2757 = vmatpush.msra.mxu2 %v1314_v22  ;;  %403 = vst [vmem:[#allocation2 + $0xa1] sm:$0x1] %v2784_v2 }
  0x29   : > { %2758 = vmatpush.msra.mxu3 %v1314_v22  ;;  %404 = vst [vmem:[#allocation2 + $0xb9] sm:$0x1] %v2784_v2  ;;  %1471 = vmatpush.msra.mxu0 %v1314_v22  ;;  %v355_v22 = vmax.f32 %v3012_v62, 0.0 }
  0x2a   : > { %2759 = vmatpush.msra.mxu1 %v1313_v23  ;;  %2760 = vmatpush.msra.mxu2 %v1313_v23  ;;  %405 = vst [vmem:[#allocation2 + $0xd1] sm:$0x1] %v2784_v2 }
  0x2b   : > { %1497 = vmatmul.f32.vlgmr.msra.gmra.mxu1 %v2926_v25  ;;  %406 = vst [vmem:[#allocation2 + $0xe9] sm:$0x1] %v2784_v2  ;;  %2761 = vmatpush.msra.mxu3 %v1313_v23 }
  0x2c   : > { %1683 = vmatpush.msrb.mxu2 %v1360_v26  ;;  %407 = vst [vmem:[#allocation2 + $0x101] sm:$0x1] %v2784_v2  ;;  %1570 = vmatpush.msrb.mxu1 %v1344_v28  ;;  %v237_v26 = vld [vmem:[%s2850_s8 + $0x8] sm:$0xff]  ;;  %v317_v28 = vadd.f32 %v2862_v8, %v281_v7  ;;  %v248_v7 = vld [vmem:[%s2850_s8 + $0x60] sm:$0xff] }
  0x2d   : > { %408 = vst [vmem:[#allocation2 + $0x119] sm:$0x1] %v2784_v2  ;;  %1796 = vmatpush.msrb.mxu3 %v1376_v29  ;;  %1472 = vmatpush.msra.mxu0 %v1313_v23  ;;  %v332_v23 = vadd.f32 %v2862_v8, %v296_v63  ;;  %v282_v29 = vmul.f32 %v2855_v6, %v246_v17 }
  0x2e   : > { %1684 = vmatpush.msrb.mxu2 %v1359_v30  ;;  %409 = vst [vmem:[#allocation2 + $0x131] sm:$0x1] %v2784_v2  ;;  %1571 = vmatpush.msrb.mxu1 %v1343_v34  ;;  %v262_v30 = vld [vmem:[%s2850_s8 + $0xd0] sm:$0xff]  ;;  %v325_v34 = vadd.f32 %v2862_v8, %v289_v15  ;;  %v3091_v52 = vmax.f32 %v317_v28, 0.0 }
  0x2f   : > { %410 = vst [vmem:[#allocation2 + $0x149] sm:$0x1] %v2784_v2  ;;  %1797 = vmatpush.msrb.mxu3 %v1375_v36  ;;  %1909 = vmatpush.msrb.mxu0 %v1392_v40  ;;  %v1388_v36 = vld [vmem:[%s3851_s3 + $0x258] sm:$0xff]  ;;  %v308_v40 = vadd.f32 %v2862_v8, %v272_v20  ;;  %v364_v46 = vmax.f32 %v332_v23, 0.0  ;;  %v298_v48 = vmul.f32 %v2855_v6, %v262_v30  ;;  %v1335_v30 = vld [vmem:[%s3851_s3 + $0xb0] sm:$0xff] }
  0x30   : > { %1685 = vmatpush.msrb.mxu2 %v1358_v37  ;;  %411 = vst [vmem:[#allocation2 + $0x161] sm:$0x1] %v2784_v2  ;;  %1572 = vmatpush.msrb.mxu1 %v1342_v41  ;;  %v1338_v37 = vld [vmem:[%s3851_s3 + $0xc8] sm:$0xff]  ;;  %v1353_v41 = vld [vmem:[%s3851_s3 + $0x140] sm:$0xff]  ;;  %v3102_v57 = vmax.f32 %v325_v34, 0.0 }
  0x31   : > { %412 = vst [vmem:[#allocation2 + $0x179] sm:$0x1] %v2784_v2  ;;  %1798 = vmatpush.msrb.mxu3 %v1374_v44  ;;  %1910 = vmatpush.msrb.mxu0 %v1391_v49  ;;  %v273_v44 = vmul.f32 %v2855_v6, %v237_v26  ;;  %v238_v49 = vld [vmem:[%s2850_s8 + $0x10] sm:$0xff] }
  0x32   : > { %1686 = vmatpush.msrb.mxu2 %v1357_v45  ;;  %413 = vst [vmem:[#allocation2 + $0x191] sm:$0x1] %v2784_v2  ;;  %1573 = vmatpush.msrb.mxu1 %v1341_v50  ;;  %v263_v50 = vld [vmem:[%s2850_s8 + $0xd8] sm:$0xff]  ;;  %v274_v62 = vmul.f32 %v2855_v6, %v238_v49  ;;  %v1367_v26 = vld [vmem:[%s3851_s3 + $0x1b0] sm:$0xff]  ;;  %v1366_v49 = vld [vmem:[%s3851_s3 + $0x1a8] sm:$0xff] }
  0x33   : > { %430 = vst [vmem:[#allocation2 + $0xc1] sm:$0xff] %v354_v47  ;;  %1799 = vmatpush.msrb.mxu3 %v1373_v53  ;;  %1911 = vmatpush.msrb.mxu0 %v1390_v59  ;;  %v333_v47 = vadd.f32 %v2862_v8, %v297_v24  ;;  %v318_v53 = vadd.f32 %v2862_v8, %v282_v29 }
  0x34   : > { %1687 = vmatpush.msrb.mxu2 %v1356_v55  ;;  %379 = vst [vmem:[#allocation2] sm:$0x1] %v2784_v2  ;;  %1574 = vmatpush.msrb.mxu1 %v1340_v60  ;;  %v1352_v55 = vld [vmem:[%s3851_s3 + $0x138] sm:$0xff]  ;;  %v291_v59 = vmul.f32 %v2855_v6, %v255_v32  ;;  %v3106_v60 = vmax.f32 %v308_v40, 0.0  ;;  %v309_v61 = vadd.f32 %v2862_v8, %v273_v44 }
  0x35   : > { %396 = vst [vmem:[#allocation2 + $0x198] sm:$0x1] %v2784_v2  ;;  %1800 = vmatpush.msrb.mxu3 %v1372_v0  ;;  %1912 = vmatpush.msrb.mxu0 %v1389_v5  ;;  %v365_v63 = vmax.f32 %v333_v47, 0.0  ;;  %v334_v0 = vadd.f32 %v2862_v8, %v298_v48  ;;  %v3113_v4 = vmax.f32 %v318_v53, 0.0  ;;  %v319_v5 = vadd.f32 %v2862_v8, %v283_v56  ;;  %v257_v47 = vld [vmem:[%s2850_s8 + $0xa8] sm:$0xff] }
  0x36   : > { %1688 = vmatpush.msrb.mxu2 %v1355_v1  ;;  %397 = vst [vmem:[#allocation2 + $0x11] sm:$0x1] %v2784_v2  ;;  %1575 = vmatpush.msrb.mxu1 %v1339_v9  ;;  %v299_v1 = vmul.f32 %v2855_v6, %v263_v50  ;;  %v256_v9 = vld [vmem:[%s2850_s8 + $0xa0] sm:$0xff]  ;;  %v327_v15 = vadd.f32 %v2862_v8, %v291_v59  ;;  %v3134_v20 = vmax.f32 %v309_v61, 0.0  ;;  %v1384_v50 = vld [vmem:[%s3851_s3 + $0x238] sm:$0xff]  ;;  %v1334_v56 = vld [vmem:[%s3851_s3 + $0xa8] sm:$0xff] }
  0x37   : > { %414 = vst [vmem:[#allocation2 + $0x1a9] sm:$0x1] %v2784_v2  ;;  %1801 = vmatpush.msrb.mxu3 %v1371_v14  ;;  %1913 = vmatpush.msrb.mxu0 %v1388_v36  ;;  %v1386_v14 = vld [vmem:[%s3851_s3 + $0x248] sm:$0xff]  ;;  %v292_v17 = vmul.f32 %v2855_v6, %v256_v9  ;;  %v310_v23 = vadd.f32 %v2862_v8, %v274_v62  ;;  %v366_v24 = vmax.f32 %v334_v0, 0.0  ;;  %v3151_v29 = vmax.f32 %v319_v5, 0.0  ;;  %v239_v36 = vld [vmem:[%s2850_s8 + $0x18] sm:$0xff] }
  0x38   : > { %1689 = vmatpush.msrb.mxu2 %v1354_v16  ;;  %438 = vst [vmem:[#allocation2 + $0x121] sm:$0xff] %v362_v11  ;;  %1576 = vmatpush.msrb.mxu1 %v1338_v37  ;;  %v3121_v11 = vmax.f32 %v326_v58, 0.0  ;;  %v284_v16 = vmul.f32 %v2855_v6, %v248_v7  ;;  %v335_v28 = vadd.f32 %v2862_v8, %v299_v1  ;;  %v3162_v34 = vmax.f32 %v327_v15, 0.0  ;;  %v264_v37 = vld [vmem:[%s2850_s8 + $0xe0] sm:$0xff]  ;;  %v1383_v62 = vld [vmem:[%s3851_s3 + $0x230] sm:$0xff]  ;;  %v1348_v5 = vld [vmem:[%s3851_s3 + $0x118] sm:$0xff] }
  0x39   : > { %423 = vst [vmem:[#allocation2 + $0x69] sm:$0xff] %v3045_v18  ;;  %1802 = vmatpush.msrb.mxu3 %v1370_v35  ;;  %1914 = vmatpush.msrb.mxu0 %v1387_v43  ;;  %v328_v35 = vadd.f32 %v2862_v8, %v292_v17  ;;  %v300_v40 = vmul.f32 %v2855_v6, %v264_v37  ;;  %v1349_v58 = vld [vmem:[%s3851_s3 + $0x120] sm:$0xff]  ;;  %v1331_v37 = vld [vmem:[%s3851_s3 + $0x90] sm:$0xff] }
  0x3a   : > { %v464_v45 = vld [vmem:[#allocation2 + $0xc0] sm:$0xff]  ;;  %431 = vst [vmem:[#allocation2 + $0xc9] sm:$0xff] %v355_v22  ;;  %1690 = vmatpush.msrb.mxu2 %v1353_v41  ;;  %1577 = vmatpush.msrb.mxu1 %v1337_v54  ;;  %v1351_v22 = vld [vmem:[%s3851_s3 + $0x130] sm:$0xff]  ;;  %v320_v32 = vadd.f32 %v2862_v8, %v284_v16  ;;  %v293_v54 = vmul.f32 %v2855_v6, %v257_v47  ;;  %v1362_v47 = vld [vmem:[%s3851_s3 + $0x188] sm:$0xff] }
  0x3b   : > { %1521 = vmatmul.f32.vlgmr.msra.gmra.mxu2 %v464_v45  ;;  %v448_v51 = vld [vmem:[#allocation2] sm:$0xff]  ;;  %439 = vst [vmem:[#allocation2 + $0x129] sm:$0xff] %v363_v27  ;;  %1803 = vmatpush.msrb.mxu3 %v1369_v42  ;;  %v367_v42 = vmax.f32 %v335_v28, 0.0  ;;  %v336_v45 = vadd.f32 %v2862_v8, %v300_v40  ;;  %v1332_v28 = vld [vmem:[%s3851_s3 + $0x98] sm:$0xff] }
  0x3c   : > { %1473 = vmatmul.f32.vlgmr.msra.gmra.mxu0 %v448_v51  ;;  %424 = vst [vmem:[#allocation2 + $0x79] sm:$0xff] %v3062_v33  ;;  %1691 = vmatpush.msrb.mxu2 %v1352_v55  ;;  %v1385_v27 = vld [vmem:[%s3851_s3 + $0x240] sm:$0xff]  ;;  %v3175_v43 = vmax.f32 %v320_v32, 0.0  ;;  %v3190_v51 = vmax.f32 %v328_v35, 0.0  ;;  %v329_v1 = vadd.f32 %v2862_v8, %v293_v54  ;;  %v1363_v35 = vld [vmem:[%s3851_s3 + $0x190] sm:$0xff] }
  0x3d   : > { %432 = vst [vmem:[#allocation2 + $0xd9] sm:$0xff] %v356_v39  ;;  %1804 = vmatpush.msrb.mxu3 %v1368_v12  ;;  %1915 = vmatpush.msrb.mxu0 %v1386_v14  ;;  %v3168_v39 = vmax.f32 %v310_v23, 0.0  ;;  %v1365_v61 = vld [vmem:[%s3851_s3 + $0x1a0] sm:$0xff]  ;;  %v265_v14 = vld [vmem:[%s2850_s8 + $0xe8] sm:$0xff] }
  0x3e   : > { %440 = vst [vmem:[#allocation2 + $0x139] sm:$0xff] %v364_v46  ;;  %1578 = vmatpush.msrb.mxu1 %v1336_v21  ;;  %1692 = vmatpush.msrb.mxu2 %v1351_v22  ;;  %v249_v46 = vld [vmem:[%s2850_s8 + $0x68] sm:$0xff]  ;;  %v3226_v9 = vmax.f32 %v329_v1, 0.0  ;;  %v240_v12 = vld [vmem:[%s2850_s8 + $0x20] sm:$0xff]  ;;  %v301_v17 = vmul.f32 %v2855_v6, %v265_v14 }
  0x3f   : > { %v472_v3 = vld [vmem:[#allocation2 + $0x120] sm:$0xff]  ;;  %425 = vst [vmem:[#allocation2 + $0x81] sm:$0xff] %v3091_v52  ;;  %1805 = vmatpush.msrb.mxu3 %v1367_v26  ;;  %1916 = vmatpush.msrb.mxu0 %v1385_v27  ;;  %v285_v53 = vmul.f32 %v2855_v6, %v249_v46  ;;  %v276_v16 = vmul.f32 %v2855_v6, %v240_v12  ;;  %v1382_v26 = vld [vmem:[%s3851_s3 + $0x228] sm:$0xff] }
  0x40   : > { %1545 = vmatmul.f32.vlgmr.msra.gmra.mxu3 %v472_v3  ;;  %v3118_v10 = vld [vmem:[#allocation2 + $0x68] sm:$0xff]  ;;  %433 = vst [vmem:[#allocation2 + $0xe1] sm:$0xff] %v3102_v57  ;;  %1579 = vmatpush.msrb.mxu1 %v1335_v30  ;;  %v1333_v3 = vld [vmem:[%s3851_s3 + $0xa0] sm:$0xff]  ;;  %v337_v22 = vadd.f32 %v2862_v8, %v301_v17  ;;  %v1347_v30 = vld [vmem:[%s3851_s3 + $0x110] sm:$0xff] }
  0x41   : > { %1500 = vmatmul.f32.gmra.mxu1 %v3118_v10  ;;  %v465_v19 = vld [vmem:[#allocation2 + $0xc8] sm:$0xff]  ;;  %416 = vst [vmem:[#allocation2 + $0x19] sm:$0xff] %v3106_v60  ;;  %1693 = vmatpush.msrb.mxu2 %v1350_v31  ;;  %v321_v0 = vadd.f32 %v2862_v8, %v285_v53  ;;  %v312_v21 = vadd.f32 %v2862_v8, %v276_v16  ;;  %v1361_v53 = vld [vmem:[%s3851_s3 + $0x180] sm:$0xff] }
  0x42   : > { %441 = vst [vmem:[#allocation2 + $0x141] sm:$0xff] %v365_v63  ;;  %v473_v38 = vld [vmem:[#allocation2 + $0x128] sm:$0xff]  ;;  %1806 = vmatpush.msrb.mxu3 %v1366_v49  ;;  %1917 = vmatpush.msrb.mxu0 %v1384_v50  ;;  %v368_v63 = vmax.f32 %v336_v45, 0.0  ;;  %v369_v32 = vmax.f32 %v337_v22, 0.0  ;;  %v1380_v49 = vld [vmem:[%s3851_s3 + $0x218] sm:$0xff]  ;;  %v1377_v14 = vld [vmem:[%s3851_s3 + $0x200] sm:$0xff] }
  0x43   : > { %1524 = vmatmul.f32.gmra.mxu2 %v465_v19  ;;  %426 = vst [vmem:[#allocation2 + $0x91] sm:$0xff] %v3113_v4  ;;  %v3172_v41 = vld [vmem:[#allocation2 + $0x78] sm:$0xff]  ;;  %1580 = vmatpush.msrb.mxu1 %v1334_v56  ;;  %v3224_v7 = vmax.f32 %v321_v0, 0.0  ;;  %v3256_v31 = vmax.f32 %v312_v21, 0.0  ;;  %v1379_v56 = vld [vmem:[%s3851_s3 + $0x210] sm:$0xff]  ;;  %v1378_v1 = vld [vmem:[%s3851_s3 + $0x208] sm:$0xff] }
  0x44   : > { %1476 = vmatmul.f32.gmra.mxu0 %v2784_v2  ;;  %434 = vst [vmem:[#allocation2 + $0xf1] sm:$0xff] %v3121_v11  ;;  %v275_v2 = vmul.f32 %v2855_v6, %v239_v36  ;;  %v3181_v48 = vld [vmem:[#allocation2 + $0xd8] sm:$0xff]  ;;  %1807 = vmatpush.msrb.mxu3 %v1365_v61  ;;  %v1381_v36 = vld [vmem:[%s3851_s3 + $0x220] sm:$0xff] }
  0x45   : > { %417 = vst [vmem:[#allocation2 + $0x21] sm:$0xff] %v3134_v20  ;;  %1694 = vmatpush.msrb.mxu2 %v1349_v58  ;;  %v474_v15 = vld [vmem:[#allocation2 + $0x138] sm:$0xff]  ;;  %1918 = vmatpush.msrb.mxu0 %v1383_v62  ;;  %v1329_v58 = vld [vmem:[%s3851_s3 + $0x80] sm:$0xff] }
  0x46   : > { %442 = vst [vmem:[#allocation2 + $0x151] sm:$0xff] %v366_v24  ;;  %v311_v44 = vadd.f32 %v2862_v8, %v275_v2  ;;  %1581 = vmatpush.msrb.mxu1 %v1333_v3  ;;  %v3233_v19 = vld [vmem:[#allocation2 + $0x80] sm:$0xff]  ;;  %v1364_v24 = vld [vmem:[%s3851_s3 + $0x198] sm:$0xff]  ;;  %v241_v2 = vld [vmem:[%s2850_s8 + $0x28] sm:$0xff] }
  0x47   : > { %427 = vst [vmem:[#allocation2 + $0x99] sm:$0xff] %v3151_v29  ;;  %1695 = vmatpush.msrb.mxu2 %v1348_v5  ;;  %v3238_v23 = vld [vmem:[#allocation2 + $0xe0] sm:$0xff]  ;;  %1808 = vmatpush.msrb.mxu3 %v1364_v24  ;;  %v1424_v61 = vld [vmem:[%s3851_s3 + $0x378] sm:$0xff]  ;;  %v1423_v24 = vld [vmem:[%s3851_s3 + $0x370] sm:$0xff] }
  0x48   : > { %1548 = vmatmul.f32.gmra.mxu3 %v473_v38  ;;  %435 = vst [vmem:[#allocation2 + $0xf9] sm:$0xff] %v3162_v34  ;;  %v3195_v55 = vld [vmem:[#allocation2 + $0x18] sm:$0xff]  ;;  %v3204_v59 = vmax.f32 %v311_v44, 0.0  ;;  %1919 = vmatpush.msrb.mxu0 %v1382_v26  ;;  %v1346_v38 = vld [vmem:[%s3851_s3 + $0x108] sm:$0xff] }
  0x49   : > { %1503 = vmatmul.f32.gmra.mxu1 %v3172_v41  ;;  %418 = vst [vmem:[#allocation2 + $0x31] sm:$0xff] %v3168_v39  ;;  %1809 = vmatpush.msrb.mxu3 %v1363_v35  ;;  %v475_v40 = vld [vmem:[#allocation2 + $0x140] sm:$0xff]  ;;  %v1440_v3 = vld [vmem:[%s3851_s3 + $0x3f8] sm:$0xff]  ;;  %v1407_v35 = vld [vmem:[%s3851_s3 + $0x2f0] sm:$0xff] }
  0x4a   : > { %443 = vst [vmem:[#allocation2 + $0x159] sm:$0xff] %v367_v42  ;;  %1582 = vmatpush.msrb.mxu1 %v1332_v28  ;;  %1696 = vmatpush.msrb.mxu2 %v1347_v30  ;;  %v277_v42 = vmul.f32 %v2855_v6, %v241_v2  ;;  %v3275_v44 = vld [vmem:[#allocation2 + $0x90] sm:$0xff]  ;;  %v1330_v6 = vld [vmem:[%s3851_s3 + $0x88] sm:$0xff]  ;;  %v1408_v5 = vld [vmem:[%s3851_s3 + $0x2f8] sm:$0xff] }
  0x4b   : > { %1527 = vmatmul.f32.gmra.mxu2 %v3181_v48  ;;  %428 = vst [vmem:[#allocation2 + $0xa9] sm:$0xff] %v3175_v43  ;;  %1920 = vmatpush.msrb.mxu0 %v1381_v36  ;;  %v3277_v45 = vld [vmem:[#allocation2 + $0xf0] sm:$0xff]  ;;  %v1456_v21 = vld [vmem:[%s3851_s3 + $0x478] sm:$0xff]  ;;  %v576_v2 = vld [vmem:[#allocation2 + $0x2] sm:$0xff] }
  0x4c   : > { %1479 = vmatmul.f32.gmra.mxu0 %v3195_v55  ;;  %436 = vst [vmem:[#allocation2 + $0x109] sm:$0xff] %v3190_v51  ;;  %v3248_v27 = vld [vmem:[#allocation2 + $0x20] sm:$0xff]  ;;  %1583 = vmatpush.msrb.mxu1 %v1331_v37  ;;  %v313_v46 = vadd.f32 %v2862_v8, %v277_v42  ;;  %v1422_v42 = vld [vmem:[%s3851_s3 + $0x368] sm:$0xff] }
  0x4d   : > { %419 = vst [vmem:[#allocation2 + $0x39] sm:$0xff] %v3204_v59  ;;  %1697 = vmatpush.msrb.mxu2 %v1346_v38  ;;  %1810 = vmatpush.msrb.mxu3 %v1362_v47  ;;  %v1345_v8 = vld [vmem:[%s3851_s3 + $0x100] sm:$0xff]  ;;  %v476_v62 = vld [vmem:[#allocation2 + $0x150] sm:$0xff] }
  0x4e   : > { %444 = vst [vmem:[#allocation2 + $0x169] sm:$0xff] %v368_v63  ;;  %v3298_v54 = vmax.f32 %v313_v46, 0.0  ;;  %1921 = vmatpush.msrb.mxu0 %v1380_v49  ;;  %1584 = vmatpush.msrb.mxu1 %v1330_v6  ;;  %v3312_v63 = vld [vmem:[#allocation2 + $0x98] sm:$0xff]  ;;  %v512_v38 = vld [vmem:[#allocation2 + $0x1] sm:$0xff]  ;;  %v513_v46 = vld [vmem:[#allocation2 + $0x9] sm:$0xff] }
  0x4f   : > { %429 = vst [vmem:[#allocation2 + $0xb1] sm:$0xff] %v3224_v7  ;;  %1811 = vmatpush.msrb.mxu3 %v1361_v53  ;;  %1698 = vmatpush.msrb.mxu2 %v1345_v8  ;;  %v3314_v0 = vld [vmem:[#allocation2 + $0xf8] sm:$0xff]  ;;  %v577_v47 = vld [vmem:[#allocation2 + $0xa] sm:$0xff]  ;;  %v1421_v53 = vld [vmem:[%s3851_s3 + $0x360] sm:$0xff] }
  0x50   : > { %1551 = vmatmul.f32.gmra.mxu3 %v474_v15  ;;  %437 = vst [vmem:[#allocation2 + $0x111] sm:$0xff] %v3226_v9  ;;  %v3290_v50 = vld [vmem:[#allocation2 + $0x30] sm:$0xff]  ;;  %1922 = vmatpush.msrb.mxu0 %v1379_v56  ;;  %v1438_v49 = vld [vmem:[%s3851_s3 + $0x3e8] sm:$0xff]  ;;  %v578_v8 = vld [vmem:[#allocation2 + $0x1a] sm:$0xff] }
  0x51   : > { %1506 = vmatmul.f32.gmra.mxu1 %v3233_v19  ;;  %420 = vst [vmem:[#allocation2 + $0x49] sm:$0xff] %v3256_v31  ;;  %2135 = vmatpush.msra.mxu2 %v1424_v61  ;;  %v477_v15 = vld [vmem:[#allocation2 + $0x158] sm:$0xff]  ;;  %v1406_v6 = vld [vmem:[%s3851_s3 + $0x2e8] sm:$0xff] }
  0x52   : > { %445 = vst [vmem:[#allocation2 + $0x171] sm:$0xff] %v369_v32  ;;  %1585 = vmatpush.msrb.mxu1 %v1329_v58  ;;  %1923 = vmatpush.msrb.mxu0 %v1378_v1  ;;  %v3333_v16 = vld [vmem:[#allocation2 + $0xa8] sm:$0xff]  ;;  %v1439_v32 = vld [vmem:[%s3851_s3 + $0x3f0] sm:$0xff] }
  0x53   : > { %1530 = vmatmul.f32.gmra.mxu2 %v3238_v23  ;;  %421 = vst [vmem:[#allocation2 + $0x51] sm:$0xff] %v3298_v54  ;;  %2248 = vmatpush.msra.mxu3 %v1440_v3  ;;  %v3335_v17 = vld [vmem:[#allocation2 + $0x108] sm:$0xff]  ;;  %v1452_v3 = vld [vmem:[%s3851_s3 + $0x458] sm:$0xff] }
  0x54   : > { %1482 = vmatmul.f32.gmra.mxu0 %v3248_v27  ;;  %v3326_v12 = vld [vmem:[#allocation2 + $0x38] sm:$0xff]  ;;  %2022 = vmatpush.msra.mxu1 %v1408_v5  ;;  %v579_v56 = vld [vmem:[#allocation2 + $0x22] sm:$0xff]  ;;  %v1419_v5 = vld [vmem:[%s3851_s3 + $0x350] sm:$0xff] }
  0x55   : > { %1924 = vmatpush.msrb.mxu0 %v1377_v14  ;;  %2136 = vmatpush.msra.mxu2 %v1423_v24  ;;  %v478_v26 = vld [vmem:[#allocation2 + $0x168] sm:$0xff]  ;;  %v580_v58 = vld [vmem:[#allocation2 + $0x32] sm:$0xff]  ;;  %v581_v61 = vld [vmem:[#allocation2 + $0x3a] sm:$0xff] }
  0x56   : > { %v3348_v28 = vld [vmem:[#allocation2 + $0xb0] sm:$0xff]  ;;  %2249 = vmatpush.msra.mxu3 %v1439_v32  ;;  %2023 = vmatpush.msra.mxu1 %v1407_v35 }
  0x57   : > { %2361 = vmatpush.msra.mxu0 %v1456_v21  ;;  %v3350_v30 = vld [vmem:[#allocation2 + $0x110] sm:$0xff]  ;;  %2137 = vmatpush.msra.mxu2 %v1422_v42 }
  0x58   : > { %1554 = vmatmul.f32.gmra.mxu3 %v475_v40  ;;  %v3341_v22 = vld [vmem:[#allocation2 + $0x48] sm:$0xff]  ;;  %v1455_v40 = vld [vmem:[%s3851_s3 + $0x470] sm:$0xff]  ;;  %2024 = vmatpush.msra.mxu1 %v1406_v6 }
  0x59   : > { %1509 = vmatmul.f32.gmra.mxu1 %v3275_v44  ;;  %v479_v37 = vld [vmem:[#allocation2 + $0x170] sm:$0xff]  ;;  %2362 = vmatpush.msra.mxu0 %v1455_v40  ;;  %v1417_v40 = vld [vmem:[%s3851_s3 + $0x340] sm:$0xff] }
  0x5a   : > { %v455_v36 = vld [vmem:[#allocation2 + $0x50] sm:$0xff]  ;;  %2250 = vmatpush.msra.mxu3 %v1438_v49  ;;  %2138 = vmatpush.msra.mxu2 %v1421_v53 }
  0x5b   : > { %1533 = vmatmul.f32.gmra.mxu2 %v3277_v45  ;;  %v582_v1 = vld [vmem:[#allocation2 + $0x4a] sm:$0xff] }
  0x5c   : > { %1485 = vmatmul.f32.gmra.mxu0 %v3290_v50  ;;  %v585_v24 = vld [vmem:[#allocation2 + $0x6a] sm:$0xff] }
  0x60   : > { %1557 = vmatmul.f32.gmra.mxu3 %v476_v62  ;;  %v1436_v62 = vld [vmem:[%s3851_s3 + $0x3d8] sm:$0xff] }
  0x61   : > { %1512 = vmatmul.f32.gmra.mxu1 %v3312_v63 }
  0x63   : > { %1536 = vmatmul.f32.gmra.mxu2 %v3314_v0 }
  0x64   : > { %1488 = vmatmul.f32.gmra.mxu0 %v3326_v12 }
  0x68   : > { %1560 = vmatmul.f32.gmra.mxu3 %v477_v15  ;;  %v1451_v15 = vld [vmem:[%s3851_s3 + $0x450] sm:$0xff] }
  0x69   : > { %1515 = vmatmul.f32.gmra.mxu1 %v3333_v16 }
  0x6b   : > { %1539 = vmatmul.f32.gmra.mxu2 %v3335_v17 }
  0x6c   : > { %1491 = vmatmul.f32.gmra.mxu0 %v3341_v22 }
  0x70   : > { %1563 = vmatmul.f32.gmra.mxu3 %v478_v26  ;;  %v1402_v26 = vld [vmem:[%s3851_s3 + $0x2c8] sm:$0xff] }
  0x71   : > { %1518 = vmatmul.f32.gmra.mxu1 %v3348_v28 }
  0x73   : > { %1542 = vmatmul.f32.gmra.mxu2 %v3350_v30 }
  0x74   : > { %1494 = vmatmul.f32.gmra.mxu0 %v455_v36 }
  0x78   : > { %1566 = vmatmul.f32.gmra.mxu3 %v479_v37  ;;  %v586_v37 = vld [vmem:[#allocation2 + $0x7a] sm:$0xff] }
  0x79   : > { %1586 = vmatmul.f32.vlgmr.msrb.gmra.mxu1 %v512_v38 }
  0x7b   : > { %1699 = vmatmul.f32.vlgmr.msrb.gmra.mxu2 %v576_v2 }
  0x7c   : > { %1925 = vmatmul.f32.vlgmr.msrb.gmra.mxu0 %v3106_v60 }
  0x80   : > { %1812 = vmatmul.f32.vlgmr.msrb.gmra.mxu3 %v3195_v55  ;;  %v1454_v55 = vld [vmem:[%s3851_s3 + $0x468] sm:$0xff] }
  0x81   : > { %1589 = vmatmul.f32.gmra.mxu1 %v513_v46  ;;  %2363 = vmatpush.msra.mxu0 %v1454_v55  ;;  %v1433_v46 = vld [vmem:[%s3851_s3 + $0x3c0] sm:$0xff]  ;;  %v588_v55 = vld [vmem:[#allocation2 + $0x92] sm:$0xff] }
  0x83   : > { %1702 = vmatmul.f32.gmra.mxu2 %v577_v47  ;;  %v1401_v47 = vld [vmem:[%s3851_s3 + $0x2c0] sm:$0xff] }
  0x84   : > { %1928 = vmatmul.f32.gmra.mxu0 %v3134_v20 }
  0x88   : > { %1815 = vmatmul.f32.gmra.mxu3 %v3248_v27  ;;  %v1437_v27 = vld [vmem:[%s3851_s3 + $0x3e0] sm:$0xff] }
  0x89   : > { %1592 = vmatmul.f32.gmra.mxu1 %v3106_v60  ;;  %v1405_v60 = vld [vmem:[%s3851_s3 + $0x2e0] sm:$0xff]  ;;  %2251 = vmatpush.msra.mxu3 %v1437_v27  ;;  %v1416_v27 = vld [vmem:[%s3851_s3 + $0x338] sm:$0xff] }
  0x8a   : > { %2025 = vmatpush.msra.mxu1 %v1405_v60 }
  0x8b   : > { %1705 = vmatmul.f32.gmra.mxu2 %v578_v8  ;;  %2252 = vmatpush.msra.mxu3 %v1436_v62 }
  0x8c   : > { %1931 = vmatmul.f32.gmra.mxu0 %v3168_v39 }
  0x90   : > { %1818 = vmatmul.f32.gmra.mxu3 %v3290_v50  ;;  %v1453_v50 = vld [vmem:[%s3851_s3 + $0x460] sm:$0xff] }
  0x91   : > { %1595 = vmatmul.f32.gmra.mxu1 %v3134_v20  ;;  %2364 = vmatpush.msra.mxu0 %v1453_v50  ;;  %v1420_v20 = vld [vmem:[%s3851_s3 + $0x358] sm:$0xff] }
  0x92   : > { %2139 = vmatpush.msra.mxu2 %v1420_v20  ;;  %v1400_v50 = vld [vmem:[%s3851_s3 + $0x2b8] sm:$0xff] }
  0x93   : > { %1708 = vmatmul.f32.gmra.mxu2 %v579_v56  ;;  %2365 = vmatpush.msra.mxu0 %v1452_v3  ;;  %v718_v3 = vld [vmem:[#allocation2 + $0xc1] sm:$0xff] }
  0x94   : > { %1934 = vmatmul.f32.gmra.mxu0 %v3204_v59  ;;  %2140 = vmatpush.msra.mxu2 %v1419_v5 }
  0x95   : > { %2366 = vmatpush.msra.mxu0 %v1451_v15  ;;  %v1399_v15 = vld [vmem:[%s3851_s3 + $0x2b0] sm:$0xff] }
  0x98   : > { %1821 = vmatmul.f32.gmra.mxu3 %v3326_v12  ;;  %v1435_v12 = vld [vmem:[%s3851_s3 + $0x3d0] sm:$0xff] }
  0x99   : > { %1598 = vmatmul.f32.gmra.mxu1 %v3168_v39  ;;  %v1404_v39 = vld [vmem:[%s3851_s3 + $0x2d8] sm:$0xff]  ;;  %2253 = vmatpush.msra.mxu3 %v1435_v12 }
  0x9a   : > { %2026 = vmatpush.msra.mxu1 %v1404_v39  ;;  %v590_v39 = vld [vmem:[#allocation2 + $0xaa] sm:$0xff] }
  0x9b   : > { %1711 = vmatmul.f32.gmra.mxu2 %v580_v58  ;;  %v1432_v58 = vld [vmem:[%s3851_s3 + $0x3b8] sm:$0xff] }
  0x9c   : > { %1937 = vmatmul.f32.gmra.mxu0 %v3256_v31 }
  0xa0   : > { %1824 = vmatmul.f32.gmra.mxu3 %v3341_v22 }
  0xa1   : > { %1601 = vmatmul.f32.gmra.mxu1 %v3204_v59  ;;  %v583_v59 = vld [vmem:[#allocation2 + $0x52] sm:$0xff] }
  0xa3   : > { %1714 = vmatmul.f32.gmra.mxu2 %v581_v61 }
  0xa4   : > { %1940 = vmatmul.f32.gmra.mxu0 %v3298_v54 }
  0xa8   : > { %1827 = vmatmul.f32.gmra.mxu3 %v455_v36  ;;  %v3427_v14 = vpop.f32.mrf.mxu1 }
  0xa9   : > { %1604 = vmatmul.f32.gmra.mxu1 %v3256_v31  ;;  %v1403_v31 = vld [vmem:[%s3851_s3 + $0x2d0] sm:$0xff] }
  0xaa   : > { %2027 = vmatpush.msra.mxu1 %v1403_v31 }
  0xab   : > { %1717 = vmatmul.f32.gmra.mxu2 %v582_v1 }
  0xac   : > { %1943 = vmatmul.f32.gmra.mxu0 %v2877_v13  ;;  %2028 = vmatpush.msra.mxu1 %v1402_v26  ;;  %v655_v26 = vld [vmem:[#allocation2 + $0xc8] sm:$0xff] }
  0xae   : > { %2029 = vmatpush.msra.mxu1 %v1401_v47 }
  0xb0   : > { %1830 = vmatmul.f32.gmra.mxu3 %v2926_v25  ;;  %v584_v25 = vld [vmem:[#allocation2 + $0x62] sm:$0xff]  ;;  %2030 = vmatpush.msra.mxu1 %v1400_v50  ;;  %v593_v50 = vld [vmem:[#allocation2 + $0xca] sm:$0xff] }
  0xb1   : > { %1607 = vmatmul.f32.gmra.mxu1 %v3298_v54  ;;  %v1418_v54 = vld [vmem:[%s3851_s3 + $0x348] sm:$0xff] }
  0xb2   : > { %2141 = vmatpush.msra.mxu2 %v1418_v54  ;;  %2031 = vmatpush.msra.mxu1 %v1399_v15 }
  0xb3   : > { %1720 = vmatmul.f32.gmra.mxu2 %v583_v59  ;;  %v654_v59 = vld [vmem:[#allocation2 + $0xc0] sm:$0xff] }
  0xb4   : > { %1946 = vmatmul.f32.gmra.mxu0 %v3045_v18  ;;  %2142 = vmatpush.msra.mxu2 %v1417_v40  ;;  %v592_v40 = vld [vmem:[#allocation2 + $0xc2] sm:$0xff] }
  0xb6   : > { %2143 = vmatpush.msra.mxu2 %v1416_v27 }
  0xb8   : > { %1833 = vmatmul.f32.gmra.mxu3 %v3118_v10 }
  0xb9   : > { %1610 = vmatmul.f32.gmra.mxu1 %v2877_v13  ;;  %v3435_v21 = vpop.f32.mrf.mxu0  ;;  %v1434_v13 = vld [vmem:[%s3851_s3 + $0x3c8] sm:$0xff] }
  0xba   : > { %2254 = vmatpush.msra.mxu3 %v1434_v13 }
  0xbb   : > { %1723 = vmatmul.f32.gmra.mxu2 %v584_v25  ;;  %v1431_v25 = vld [vmem:[%s3851_s3 + $0x3b0] sm:$0xff] }
  0xbc   : > { %1949 = vmatmul.f32.gmra.mxu0 %v3062_v33  ;;  %2255 = vmatpush.msra.mxu3 %v1433_v46  ;;  %v720_v46 = vld [vmem:[#allocation2 + $0xd9] sm:$0xff] }
  0xbe   : > { %v3441_v22 = vpop.f32.mrf.mxu2  ;;  %v3443_v10 = vpop.f32.mrf.mxu1  ;;  %2256 = vmatpush.msra.mxu3 %v1432_v58 }
  0xc0   : > { %1836 = vmatmul.f32.gmra.mxu3 %v3172_v41 }
  0xc1   : > { %1613 = vmatmul.f32.gmra.mxu1 %v3045_v18  ;;  %v3453_v32 = vpop.f32.mrf.mxu0  ;;  %v1450_v18 = vld [vmem:[%s3851_s3 + $0x448] sm:$0xff]  ;;  %2257 = vmatpush.msra.mxu3 %v1431_v25 }
  0xc2   : > { %2367 = vmatpush.msra.mxu0 %v1450_v18 }
  0xc3   : > { %v3455_v35 = vpop.f32.mrf.mxu3  ;;  %1726 = vmatmul.f32.gmra.mxu2 %v585_v24  ;;  %v719_v24 = vld [vmem:[#allocation2 + $0xc9] sm:$0xff] }
  0xc4   : > { %1952 = vmatmul.f32.gmra.mxu0 %v3091_v52 }
  0xc6   : > { %v3458_v41 = vpop.f32.mrf.mxu2  ;;  %v3460_v36 = vpop.f32.mrf.mxu1 }
  0xc8   : > { %1839 = vmatmul.f32.gmra.mxu3 %v3233_v19 }
  0xc9   : > { %1616 = vmatmul.f32.gmra.mxu1 %v3062_v33  ;;  %v3467_v38 = vpop.f32.mrf.mxu0  ;;  %v587_v33 = vld [vmem:[#allocation2 + $0x82] sm:$0xff] }
  0xcb   : > { %v3469_v2 = vpop.f32.mrf.mxu3  ;;  %1729 = vmatmul.f32.gmra.mxu2 %v586_v37 }
  0xcc   : > { %1955 = vmatmul.f32.gmra.mxu0 %v3113_v4 }
  0xce   : > { %v3475_v19 = vpop.f32.mrf.mxu2  ;;  %v3477_v42 = vpop.f32.mrf.mxu1 }
  0xd0   : > { %1842 = vmatmul.f32.gmra.mxu3 %v3275_v44 }
  0xd1   : > { %1619 = vmatmul.f32.gmra.mxu1 %v3091_v52  ;;  %v3487_v49 = vpop.f32.mrf.mxu0  ;;  %v1449_v52 = vld [vmem:[%s3851_s3 + $0x440] sm:$0xff] }
  0xd2   : > { %2368 = vmatpush.msra.mxu0 %v1449_v52 }
  0xd3   : > { %v3489_v6 = vpop.f32.mrf.mxu3  ;;  %1732 = vmatmul.f32.gmra.mxu2 %v587_v33  ;;  %v1447_v33 = vld [vmem:[%s3851_s3 + $0x430] sm:$0xff] }
  0xd4   : > { %1958 = vmatmul.f32.gmra.mxu0 %v3151_v29 }
  0xd6   : > { %v3492_v44 = vpop.f32.mrf.mxu2  ;;  %v3494_v8 = vpop.f32.mrf.mxu1 }
  0xd8   : > { %1845 = vmatmul.f32.gmra.mxu3 %v3312_v63 }
  0xd9   : > { %1622 = vmatmul.f32.gmra.mxu1 %v3113_v4  ;;  %v3501_v53 = vpop.f32.mrf.mxu0  ;;  %v589_v4 = vld [vmem:[#allocation2 + $0x9a] sm:$0xff] }
  0xdb   : > { %v3503_v56 = vpop.f32.mrf.mxu3  ;;  %1735 = vmatmul.f32.gmra.mxu2 %v588_v55 }
  0xdc   : > { %1961 = vmatmul.f32.gmra.mxu0 %v3175_v43 }
  0xde   : > { %v3509_v63 = vpop.f32.mrf.mxu2  ;;  %v3511_v60 = vpop.f32.mrf.mxu1 }
  0xe0   : > { %1848 = vmatmul.f32.gmra.mxu3 %v3333_v16 }
  0xe1   : > { %1625 = vmatmul.f32.gmra.mxu1 %v3151_v29  ;;  %v3521_v20 = vpop.f32.mrf.mxu0  ;;  %v1448_v29 = vld [vmem:[%s3851_s3 + $0x438] sm:$0xff] }
  0xe2   : > { %2369 = vmatpush.msra.mxu0 %v1448_v29  ;;  %v1398_v29 = vld [vmem:[%s3851_s3 + $0x2a8] sm:$0xff] }
  0xe3   : > { %v3523_v61 = vpop.f32.mrf.mxu3  ;;  %1738 = vmatmul.f32.gmra.mxu2 %v589_v4  ;;  %v1414_v4 = vld [vmem:[%s3851_s3 + $0x328] sm:$0xff]  ;;  %2032 = vmatpush.msra.mxu1 %v1398_v29 }
  0xe4   : > { %1964 = vmatmul.f32.gmra.mxu0 %v3224_v7 }
  0xe5   : > { %2370 = vmatpush.msra.mxu0 %v1447_v33 }
  0xe6   : > { %v3526_v16 = vpop.f32.mrf.mxu2  ;;  %v3528_v62 = vpop.f32.mrf.mxu1 }
  0xe8   : > { %1851 = vmatmul.f32.gmra.mxu3 %v3348_v28  ;;  %v1415_v28 = vld [vmem:[%s3851_s3 + $0x330] sm:$0xff] }
  0xe9   : > { %1628 = vmatmul.f32.gmra.mxu1 %v3175_v43  ;;  %v3535_v1 = vpop.f32.mrf.mxu0  ;;  %2144 = vmatpush.msra.mxu2 %v1415_v28  ;;  %v591_v43 = vld [vmem:[#allocation2 + $0xb2] sm:$0xff] }
  0xeb   : > { %v3537_v5 = vpop.f32.mrf.mxu3  ;;  %1741 = vmatmul.f32.gmra.mxu2 %v590_v39  ;;  %v1430_v39 = vld [vmem:[%s3851_s3 + $0x3a8] sm:$0xff] }
  0xec   : > { %1967 = vmatmul.f32.gmra.mxu0 %v718_v3  ;;  %2145 = vmatpush.msra.mxu2 %v1414_v4  ;;  %v1429_v4 = vld [vmem:[%s3851_s3 + $0x3a0] sm:$0xff] }
  0xed   : > { %2258 = vmatpush.msra.mxu3 %v1430_v39 }
  0xee   : > { %v3539_v12 = vpop.f32.mrf.mxu2  ;;  %v3541_v31 = vpop.f32.mrf.mxu1 }
  0xef   : > { %2259 = vmatpush.msra.mxu3 %v1429_v4 }
  0xf0   : > { %1854 = vmatmul.f32.gmra.mxu3 %v654_v59 }
  0xf1   : > { %1631 = vmatmul.f32.gmra.mxu1 %v3224_v7  ;;  %v3553_v54 = vpop.f32.mrf.mxu0 }
  0xf3   : > { %v3555_v13 = vpop.f32.mrf.mxu3  ;;  %1744 = vmatmul.f32.gmra.mxu2 %v591_v43 }
  0xf4   : > { %1970 = vmatmul.f32.gmra.mxu0 %v719_v24 }
  0xf6   : > { %v3557_v37 = vpop.f32.mrf.mxu2  ;;  %v1587_v18 = vpop.f32.mrf.mxu1 }
  0xf7   : > { %v1588_v55 = vadd.f32 %v1587_v18, %v3435_v21 }
  0xf8   : > { %1857 = vmatmul.f32.gmra.mxu3 %v655_v26  ;;  %v594_v26 = vld [vmem:[#allocation2 + $0xda] sm:$0xff] }
  0xf9   : > { %1634 = vmatmul.f32.gmra.mxu1 %v718_v3  ;;  %v1926_v7 = vpop.f32.mrf.mxu0 }
  0xfb   : > { %v3562_v47 = vpop.f32.mrf.mxu3  ;;  %1747 = vmatmul.f32.gmra.mxu2 %v592_v40 }
  0xfc   : > { %1973 = vmatmul.f32.gmra.mxu0 %v720_v46 }
  0xfe   : > { %v1700_v52 = vpop.f32.mrf.mxu2  ;;  %v1590_v27 = vpop.f32.mrf.mxu1 }
  0xff   : > { %v1701_v58 = vadd.f32 %v1700_v52, %v1588_v55 }
 0x100   : > { %1860 = vmatmul.f32.gmra.mxu3 %v3181_v48  ;;  %v1591_v48 = vadd.f32 %v1590_v27, %v3453_v32 }
 0x101   : > { %1637 = vmatmul.f32.gmra.mxu1 %v719_v24  ;;  %v1929_v21 = vpop.f32.mrf.mxu0  ;;  %v1446_v24 = vld [vmem:[%s3851_s3 + $0x428] sm:$0xff] }
 0x102   : > { %2371 = vmatpush.msra.mxu0 %v1446_v24 }
 0x103   : > { %v1813_v3 = vpop.f32.mrf.mxu3  ;;  %1750 = vmatmul.f32.gmra.mxu2 %v593_v50 }
 0x104   : > { %v1814_v59 = vadd.f32 %v1813_v3, %v1701_v58  ;;  %1976 = vmatmul.f32.gmra.mxu0 %v3102_v57 }
 0x106   : > { %v3577_v28 = vadd.f32 %v1926_v7, %v1814_v59  ;;  %v1703_v43 = vpop.f32.mrf.mxu2  ;;  %v1593_v25 = vpop.f32.mrf.mxu1 }
 0x107   : > { %v1704_v15 = vadd.f32 %v1703_v43, %v1591_v48  ;;  %v1594_v32 = vadd.f32 %v1593_v25, %v3467_v38  ;;  %v1397_v38 = vld [vmem:[%s3851_s3 + $0x2a0] sm:$0xff]  ;;  %v596_v48 = vld [vmem:[#allocation2 + $0xf2] sm:$0xff] }
 0x108   : > { %1863 = vmatmul.f32.gmra.mxu3 %v3238_v23  ;;  %v1413_v23 = vld [vmem:[%s3851_s3 + $0x320] sm:$0xff]  ;;  %2033 = vmatpush.msra.mxu1 %v1397_v38  ;;  %v598_v38 = vld [vmem:[#allocation2 + $0x10a] sm:$0xff] }
 0x109   : > { %1640 = vmatmul.f32.gmra.mxu1 %v720_v46  ;;  %v1932_v18 = vpop.f32.mrf.mxu0  ;;  %2146 = vmatpush.msra.mxu2 %v1413_v23  ;;  %v595_v46 = vld [vmem:[#allocation2 + $0xe2] sm:$0xff] }
 0x10b   : > { %v1816_v40 = vpop.f32.mrf.mxu3  ;;  %1753 = vmatmul.f32.gmra.mxu2 %v594_v26 }
 0x10c   : > { %v1817_v33 = vadd.f32 %v1816_v40, %v1704_v15  ;;  %1979 = vmatmul.f32.gmra.mxu0 %v3121_v11 }
 0x10e   : > { %v3585_v7 = vadd.f32 %v1929_v21, %v1817_v33  ;;  %v1706_v55 = vpop.f32.mrf.mxu2  ;;  %v1596_v52 = vpop.f32.mrf.mxu1  ;;  %v1428_v33 = vld [vmem:[%s3851_s3 + $0x398] sm:$0xff] }
 0x10f   : > { %v1707_v27 = vadd.f32 %v1706_v55, %v1594_v32  ;;  %2260 = vmatpush.msra.mxu3 %v1428_v33 }
 0x110   : > { %1866 = vmatmul.f32.gmra.mxu3 %v3277_v45  ;;  %v1597_v45 = vadd.f32 %v1596_v52, %v3487_v49 }
 0x111   : > { %1643 = vmatmul.f32.gmra.mxu1 %v3102_v57  ;;  %v1935_v58 = vpop.f32.mrf.mxu0  ;;  %v1445_v57 = vld [vmem:[%s3851_s3 + $0x420] sm:$0xff] }
 0x112   : > { %2372 = vmatpush.msra.mxu0 %v1445_v57 }
 0x113   : > { %v1819_v50 = vpop.f32.mrf.mxu3  ;;  %1756 = vmatmul.f32.gmra.mxu2 %v595_v46 }
 0x114   : > { %v1820_v39 = vadd.f32 %v1819_v50, %v1707_v27  ;;  %1982 = vmatmul.f32.gmra.mxu0 %v3162_v34  ;;  %v726_v50 = vld [vmem:[#allocation2 + $0x121] sm:$0xff] }
 0x116   : > { %v3600_v29 = vadd.f32 %v1932_v18, %v1820_v39  ;;  %v1709_v21 = vpop.f32.mrf.mxu2  ;;  %v1599_v3 = vpop.f32.mrf.mxu1  ;;  %v1412_v18 = vld [vmem:[%s3851_s3 + $0x318] sm:$0xff] }
 0x117   : > { %v1710_v59 = vadd.f32 %v1709_v21, %v1597_v45  ;;  %v1600_v49 = vadd.f32 %v1599_v3, %v3501_v53  ;;  %2147 = vmatpush.msra.mxu2 %v1412_v18  ;;  %v1396_v53 = vld [vmem:[%s3851_s3 + $0x298] sm:$0xff]  ;;  %v662_v21 = vld [vmem:[#allocation2 + $0x120] sm:$0xff]  ;;  %v663_v18 = vld [vmem:[#allocation2 + $0x128] sm:$0xff] }
 0x118   : > { %1869 = vmatmul.f32.gmra.mxu3 %v3314_v0  ;;  %2034 = vmatpush.msra.mxu1 %v1396_v53 }
 0x119   : > { %1646 = vmatmul.f32.gmra.mxu1 %v3121_v11  ;;  %v1938_v43 = vpop.f32.mrf.mxu0  ;;  %v597_v11 = vld [vmem:[#allocation2 + $0xfa] sm:$0xff] }
 0x11b   : > { %v1822_v25 = vpop.f32.mrf.mxu3  ;;  %1759 = vmatmul.f32.gmra.mxu2 %v596_v48  ;;  %v1411_v48 = vld [vmem:[%s3851_s3 + $0x310] sm:$0xff] }
 0x11c   : > { %v1823_v15 = vadd.f32 %v1822_v25, %v1710_v59  ;;  %1985 = vmatmul.f32.gmra.mxu0 %v3190_v51  ;;  %2148 = vmatpush.msra.mxu2 %v1411_v48 }
 0x11e   : > { %v3609_v26 = vadd.f32 %v1935_v58, %v1823_v15  ;;  %v1712_v24 = vpop.f32.mrf.mxu2  ;;  %v1602_v0 = vpop.f32.mrf.mxu1  ;;  %v727_v15 = vld [vmem:[#allocation2 + $0x129] sm:$0xff] }
 0x11f   : > { %v1713_v40 = vadd.f32 %v1712_v24, %v1600_v49 }
 0x120   : > { %1872 = vmatmul.f32.gmra.mxu3 %v3335_v17  ;;  %v1603_v17 = vadd.f32 %v1602_v0, %v3521_v20 }
 0x121   : > { %1649 = vmatmul.f32.gmra.mxu1 %v3162_v34  ;;  %v1941_v32 = vpop.f32.mrf.mxu0  ;;  %v1444_v34 = vld [vmem:[%s3851_s3 + $0x418] sm:$0xff] }
 0x122   : > { %2373 = vmatpush.msra.mxu0 %v1444_v34 }
 0x123   : > { %v1825_v55 = vpop.f32.mrf.mxu3  ;;  %1762 = vmatmul.f32.gmra.mxu2 %v597_v11 }
 0x124   : > { %v1826_v52 = vadd.f32 %v1825_v55, %v1713_v40  ;;  %1988 = vmatmul.f32.gmra.mxu0 %v3226_v9 }
 0x126   : > { %v3624_v23 = vadd.f32 %v1938_v43, %v1826_v52  ;;  %v1715_v27 = vpop.f32.mrf.mxu2  ;;  %v1605_v46 = vpop.f32.mrf.mxu1  ;;  %v1427_v43 = vld [vmem:[%s3851_s3 + $0x390] sm:$0xff]  ;;  %v728_v52 = vld [vmem:[#allocation2 + $0x139] sm:$0xff] }
 0x127   : > { %v1716_v4 = vadd.f32 %v1715_v27, %v1603_v17  ;;  %v1606_v45 = vadd.f32 %v1605_v46, %v3535_v1  ;;  %v1395_v1 = vld [vmem:[%s3851_s3 + $0x290] sm:$0xff]  ;;  %2261 = vmatpush.msra.mxu3 %v1427_v43  ;;  %v2774_v43 = vld [vmem:[%s3850_s2] ss:$0 sm:$0xff] }
 0x128   : > { %1875 = vmatmul.f32.gmra.mxu3 %v3350_v30  ;;  %2035 = vmatpush.msra.mxu1 %v1395_v1 }
 0x129   : > { %1652 = vmatmul.f32.gmra.mxu1 %v3190_v51  ;;  %v1944_v58 = vpop.f32.mrf.mxu0  ;;  %v599_v51 = vld [vmem:[#allocation2 + $0x112] sm:$0xff] }
 0x12b   : > { %v1828_v39 = vpop.f32.mrf.mxu3  ;;  %1765 = vmatmul.f32.gmra.mxu2 %v598_v38 }
 0x12c   : > { %v1829_v20 = vadd.f32 %v1828_v39, %v1716_v4  ;;  %1991 = vmatmul.f32.gmra.mxu0 %v726_v50  ;;  %v601_v39 = vld [vmem:[#allocation2 + $0x12a] sm:$0xff] }
 0x12e   : > { %v3632_v3 = vadd.f32 %v1941_v32, %v1829_v20  ;;  %v1718_v30 = vpop.f32.mrf.mxu2  ;;  %v1608_v59 = vpop.f32.mrf.mxu1  ;;  %v600_v32 = vld [vmem:[#allocation2 + $0x122] sm:$0xff] }
 0x12f   : > { %v1719_v57 = vadd.f32 %v1718_v30, %v1606_v45  ;;  %v1609_v0 = vadd.f32 %v1608_v59, %v3553_v54  ;;  %v664_v54 = vld [vmem:[#allocation2 + $0x138] sm:$0xff]  ;;  %v1426_v20 = vld [vmem:[%s3851_s3 + $0x388] sm:$0xff]  ;;  %v266_v30 = vld [vmem:[%s2850_s8 + $0xf0] sm:$0xff] }
 0x130   : > { %1878 = vmatmul.f32.gmra.mxu3 %v662_v21  ;;  %v729_v21 = vld [vmem:[#allocation2 + $0x141] sm:$0xff]  ;;  %v2773_v59 = vld [vmem:[%s3849_s1] ss:$0 sm:$0xff] }
 0x131   : > { %1655 = vmatmul.f32.gmra.mxu1 %v3226_v9  ;;  %v1947_v25 = vpop.f32.mrf.mxu0  ;;  %v1443_v9 = vld [vmem:[%s3851_s3 + $0x410] sm:$0xff]  ;;  %2262 = vmatpush.msra.mxu3 %v1426_v20  ;;  %v302_v48 = vmul.f32 %v2773_v59, %v266_v30  ;;  %v1425_v30 = vld [vmem:[%s3851_s3 + $0x380] sm:$0xff] }
 0x132   : > { %2374 = vmatpush.msra.mxu0 %v1443_v9  ;;  %v730_v9 = vld [vmem:[#allocation2 + $0x151] sm:$0xff] }
 0x133   : > { %v1831_v49 = vpop.f32.mrf.mxu3  ;;  %1768 = vmatmul.f32.gmra.mxu2 %v599_v51  ;;  %v3669_v1 = vadd.f32 %v2774_v43, %v302_v48  ;;  %2263 = vmatpush.msra.mxu3 %v1425_v30 }
 0x134   : > { %v1832_v24 = vadd.f32 %v1831_v49, %v1719_v57  ;;  %1994 = vmatmul.f32.gmra.mxu0 %v727_v15 }
 0x136   : > { %v3645_v40 = vadd.f32 %v1944_v58, %v1832_v24  ;;  %v1721_v11 = vpop.f32.mrf.mxu2  ;;  %v1611_v33 = vpop.f32.mrf.mxu1  ;;  %v1410_v58 = vld [vmem:[%s3851_s3 + $0x308] sm:$0xff] }
 0x137   : > { %v1722_v53 = vadd.f32 %v1721_v11, %v1609_v0  ;;  %v1612_v46 = vadd.f32 %v1611_v33, %v3427_v14  ;;  %2149 = vmatpush.msra.mxu2 %v1410_v58  ;;  %v1394_v14 = vld [vmem:[%s3851_s3 + $0x288] sm:$0xff]  ;;  %v602_v33 = vld [vmem:[#allocation2 + $0x13a] sm:$0xff] }
 0x138   : > { %1881 = vmatmul.f32.gmra.mxu3 %v663_v18  ;;  %2036 = vmatpush.msra.mxu1 %v1394_v14  ;;  %v370_v18 = vmax.f32 %v3669_v1, 0.0  ;;  %v603_v14 = vld [vmem:[#allocation2 + $0x142] sm:$0xff] }
 0x139   : > { %1658 = vmatmul.f32.gmra.mxu1 %v726_v50  ;;  %v1950_v55 = vpop.f32.mrf.mxu0 }
 0x13a   : > { %446 = vst [vmem:[#allocation2 + $0x181] sm:$0xff] %v370_v18 }
 0x13b   : > { %v1834_v17 = vpop.f32.mrf.mxu3  ;;  %1771 = vmatmul.f32.gmra.mxu2 %v600_v32 }
 0x13c   : > { %v1835_v27 = vadd.f32 %v1834_v17, %v1722_v53  ;;  %1997 = vmatmul.f32.gmra.mxu0 %v728_v52  ;;  %v1442_v53 = vld [vmem:[%s3851_s3 + $0x408] sm:$0xff] }
 0x13d   : > { %2375 = vmatpush.msra.mxu0 %v1442_v53  ;;  %v732_v53 = vld [vmem:[#allocation2 + $0x169] sm:$0xff] }
 0x13e   : > { %v3651_v4 = vadd.f32 %v1947_v25, %v1835_v27  ;;  %v1724_v38 = vpop.f32.mrf.mxu2  ;;  %v1614_v34 = vpop.f32.mrf.mxu1  ;;  %v665_v25 = vld [vmem:[#allocation2 + $0x140] sm:$0xff] }
 0x13f   : > { %v1725_v50 = vadd.f32 %v1724_v38, %v1612_v46  ;;  %v666_v46 = vld [vmem:[#allocation2 + $0x150] sm:$0xff] }
 0x140   : > { %1884 = vmatmul.f32.gmra.mxu3 %v664_v54 }
 0x141   : > { %1661 = vmatmul.f32.gmra.mxu1 %v727_v15  ;;  %v1953_v45 = vpop.f32.mrf.mxu0  ;;  %v1615_v15 = vadd.f32 %v1614_v34, %v3443_v10  ;;  %v267_v10 = vld [vmem:[%s2850_s8 + $0xf8] sm:$0xff] }
 0x143   : > { %v1837_v57 = vpop.f32.mrf.mxu3  ;;  %1774 = vmatmul.f32.gmra.mxu2 %v601_v39 }
 0x144   : > { %v1838_v51 = vadd.f32 %v1837_v57, %v1725_v50  ;;  %2000 = vmatmul.f32.gmra.mxu0 %v729_v21 }
 0x146   : > { %v3672_v49 = vadd.f32 %v1950_v55, %v1838_v51  ;;  %v1727_v24 = vpop.f32.mrf.mxu2  ;;  %v1617_v0 = vpop.f32.mrf.mxu1  ;;  %v303_v55 = vmul.f32 %v2773_v59, %v267_v10  ;;  %v731_v59 = vld [vmem:[#allocation2 + $0x159] sm:$0xff] }
 0x147   : > { %v1728_v11 = vadd.f32 %v1727_v24, %v1615_v15  ;;  %v1618_v38 = vadd.f32 %v1617_v0, %v3460_v36  ;;  %v1393_v36 = vld [vmem:[%s3851_s3 + $0x280] sm:$0xff]  ;;  %v667_v51 = vld [vmem:[#allocation2 + $0x158] sm:$0xff] }
 0x148   : > { %1887 = vmatmul.f32.gmra.mxu3 %v665_v25  ;;  %v3681_v54 = vadd.f32 %v2774_v43, %v303_v55  ;;  %2037 = vmatpush.msra.mxu1 %v1393_v36 }
 0x149   : > { %1664 = vmatmul.f32.gmra.mxu1 %v728_v52  ;;  %v1956_v32 = vpop.f32.mrf.mxu0  ;;  %v1409_v52 = vld [vmem:[%s3851_s3 + $0x300] sm:$0xff] }
 0x14a   : > { %v371_v39 = vmax.f32 %v3681_v54, 0.0  ;;  %2150 = vmatpush.msra.mxu2 %v1409_v52  ;;  %v897_v54 = vld [vmem:[#allocation2 + $0x31] sm:$0xff] }
 0x14b   : > { %v1840_v17 = vpop.f32.mrf.mxu3  ;;  %1777 = vmatmul.f32.gmra.mxu2 %v602_v33 }
 0x14c   : > { %v1841_v27 = vadd.f32 %v1840_v17, %v1728_v11  ;;  %2003 = vmatmul.f32.gmra.mxu0 %v730_v9  ;;  %447 = vst [vmem:[#allocation2 + $0x189] sm:$0xff] %v371_v39  ;;  %v604_v11 = vld [vmem:[#allocation2 + $0x152] sm:$0xff] }
 0x14e   : > { %v3684_v34 = vadd.f32 %v1953_v45, %v1841_v27  ;;  %v1730_v58 = vpop.f32.mrf.mxu2  ;;  %v1620_v50 = vpop.f32.mrf.mxu1 }
 0x14f   : > { %v1731_v20 = vadd.f32 %v1730_v58, %v1618_v38  ;;  %v1621_v43 = vadd.f32 %v1620_v50, %v3477_v42  ;;  %v668_v42 = vld [vmem:[#allocation2 + $0x168] sm:$0xff]  ;;  %v605_v58 = vld [vmem:[#allocation2 + $0x15a] sm:$0xff] }
 0x150   : > { %1890 = vmatmul.f32.gmra.mxu3 %v666_v46 }
 0x151   : > { %1667 = vmatmul.f32.gmra.mxu1 %v729_v21  ;;  %v1959_v45 = vpop.f32.mrf.mxu0  ;;  %v1441_v21 = vld [vmem:[%s3851_s3 + $0x400] sm:$0xff] }
 0x152   : > { %2376 = vmatpush.msra.mxu0 %v1441_v21 }
 0x153   : > { %v1843_v48 = vpop.f32.mrf.mxu3  ;;  %1780 = vmatmul.f32.gmra.mxu2 %v603_v14  ;;  %v669_v14 = vld [vmem:[#allocation2 + $0x170] sm:$0xff]  ;;  %v671_v1 = vld [vmem:[#allocation2 + $0x188] sm:$0xff] }
 0x154   : > { %v1844_v57 = vadd.f32 %v1843_v48, %v1731_v20  ;;  %2006 = vmatmul.f32.gmra.mxu0 %v731_v59 }
 0x156   : > { %v3699_v25 = vadd.f32 %v1956_v32, %v1844_v57  ;;  %v1733_v15 = vpop.f32.mrf.mxu2  ;;  %v1623_v24 = vpop.f32.mrf.mxu1  ;;  %v606_v57 = vld [vmem:[#allocation2 + $0x16a] sm:$0xff] }
 0x157   : > { %v1734_v0 = vadd.f32 %v1733_v15, %v1621_v43  ;;  %v1624_v32 = vadd.f32 %v1623_v24, %v3494_v8  ;;  %v670_v15 = vld [vmem:[#allocation2 + $0x180] sm:$0xff] }
 0x158   : > { %1893 = vmatmul.f32.gmra.mxu3 %v667_v51 }
 0x159   : > { %1670 = vmatmul.f32.gmra.mxu1 %v730_v9  ;;  %v1962_v33 = vpop.f32.mrf.mxu0  ;;  %v733_v9 = vld [vmem:[#allocation2 + $0x171] sm:$0xff] }
 0x15b   : > { %v1846_v10 = vpop.f32.mrf.mxu3  ;;  %1783 = vmatmul.f32.gmra.mxu2 %v604_v11 }
 0x15c   : > { %v1847_v55 = vadd.f32 %v1846_v10, %v1734_v0  ;;  %2009 = vmatmul.f32.gmra.mxu0 %v732_v53 }
 0x15e   : > { %v3705_v17 = vadd.f32 %v1959_v45, %v1847_v55  ;;  %v1736_v27 = vpop.f32.mrf.mxu2  ;;  %v1626_v46 = vpop.f32.mrf.mxu1 }
 0x15f   : > { %v1737_v38 = vadd.f32 %v1736_v27, %v1624_v32  ;;  %v1627_v30 = vadd.f32 %v1626_v46, %v3511_v60  ;;  %v768_v27 = vld [vmem:[#allocation2 + $0x1a] sm:$0xff] }
 0x160   : > { %1896 = vmatmul.f32.gmra.mxu3 %v668_v42 }
 0x161   : > { %1673 = vmatmul.f32.gmra.mxu1 %v731_v59  ;;  %v1965_v50 = vpop.f32.mrf.mxu0 }
 0x163   : > { %v1849_v52 = vpop.f32.mrf.mxu3  ;;  %1786 = vmatmul.f32.gmra.mxu2 %v605_v58 }
 0x164   : > { %v1850_v20 = vadd.f32 %v1849_v52, %v1737_v38  ;;  %2012 = vmatmul.f32.gmra.mxu0 %v733_v9  ;;  %v833_v38 = vld [vmem:[#allocation2 + $0x30] sm:$0xff] }
 0x166   : > { %v3708_v36 = vadd.f32 %v1962_v33, %v1850_v20  ;;  %v1739_v8 = vpop.f32.mrf.mxu2  ;;  %v1629_v45 = vpop.f32.mrf.mxu1  ;;  %v607_v33 = vld [vmem:[#allocation2 + $0x172] sm:$0xff] }
 0x167   : > { %v1740_v48 = vadd.f32 %v1739_v8, %v1627_v30  ;;  %v1630_v24 = vadd.f32 %v1629_v45, %v3528_v62  ;;  %v769_v30 = vld [vmem:[#allocation2 + $0x22] sm:$0xff]  ;;  %v834_v45 = vld [vmem:[#allocation2 + $0x38] sm:$0xff] }
 0x168   : > { %1899 = vmatmul.f32.gmra.mxu3 %v669_v14 }
 0x169   : > { %1676 = vmatmul.f32.gmra.mxu1 %v732_v53  ;;  %v1968_v51 = vpop.f32.mrf.mxu0 }
 0x16b   : > { %v1852_v43 = vpop.f32.mrf.mxu3  ;;  %1789 = vmatmul.f32.gmra.mxu2 %v606_v57  ;;  %v962_v57 = vld [vmem:[#allocation2 + $0x3a] sm:$0xff] }
 0x16c   : > { %v1853_v59 = vadd.f32 %v1852_v43, %v1740_v48  ;;  %2015 = vmatmul.f32.gmra.mxu0 %v370_v18 }
 0x16e   : > { %v3713_v0 = vadd.f32 %v1965_v50, %v1853_v59  ;;  %v1742_v60 = vpop.f32.mrf.mxu2  ;;  %v1632_v11 = vpop.f32.mrf.mxu1  ;;  %v961_v50 = vld [vmem:[#allocation2 + $0x32] sm:$0xff] }
 0x16f   : > { %v1743_v21 = vadd.f32 %v1742_v60, %v1630_v24  ;;  %v1633_v18 = vadd.f32 %v1632_v11, %v3541_v31  ;;  %v898_v59 = vld [vmem:[#allocation2 + $0x39] sm:$0xff] }
 0x170   : > { %1902 = vmatmul.f32.gmra.mxu3 %v670_v15 }
 0x171   : > { %1679 = vmatmul.f32.gmra.mxu1 %v733_v9  ;;  %v1971_v10 = vpop.f32.mrf.mxu0 }
 0x173   : > { %v1855_v53 = vpop.f32.mrf.mxu3  ;;  %1792 = vmatmul.f32.gmra.mxu2 %v607_v33 }
 0x174   : > { %v1856_v55 = vadd.f32 %v1855_v53, %v1743_v21  ;;  %2018 = vmatmul.f32.gmra.mxu0 %v371_v39  ;;  %v835_v21 = vld [vmem:[#allocation2 + $0x48] sm:$0xff] }
 0x176   : > { %v3718_v42 = vadd.f32 %v1968_v51, %v1856_v55  ;;  %v1745_v62 = vpop.f32.mrf.mxu2  ;;  %v1635_v32 = vpop.f32.mrf.mxu1 }
 0x177   : > { %v1746_v46 = vadd.f32 %v1745_v62, %v1633_v18  ;;  %v1636_v39 = vadd.f32 %v1635_v32, %v3441_v22 }
 0x178   : > { %1905 = vmatmul.f32.gmra.mxu3 %v671_v1  ;;  %v899_v1 = vld [vmem:[#allocation2 + $0x49] sm:$0xff] }
 0x179   : > { %2038 = vmatmul.f32.vlgmr.msra.gmra.mxu1 %v768_v27  ;;  %v1974_v58 = vpop.f32.mrf.mxu0 }
 0x17b   : > { %v1858_v9 = vpop.f32.mrf.mxu3  ;;  %2151 = vmatmul.f32.vlgmr.msra.gmra.mxu2 %v833_v38 }
 0x17c   : > { %v1859_v52 = vadd.f32 %v1858_v9, %v1746_v46  ;;  %2377 = vmatmul.f32.vlgmr.msra.gmra.mxu0 %v961_v50  ;;  %v836_v46 = vld [vmem:[#allocation2 + $0x50] sm:$0xff] }
 0x17e   : > { %v3721_v20 = vadd.f32 %v1971_v10, %v1859_v52  ;;  %v1748_v31 = vpop.f32.mrf.mxu2  ;;  %v1638_v14 = vpop.f32.mrf.mxu1  ;;  %v963_v10 = vld [vmem:[#allocation2 + $0x4a] sm:$0xff] }
 0x17f   : > { %v1749_v8 = vadd.f32 %v1748_v31, %v1636_v39  ;;  %v1639_v15 = vadd.f32 %v1638_v14, %v3458_v41  ;;  %v900_v52 = vld [vmem:[#allocation2 + $0x51] sm:$0xff] }
 0x180   : > { %2264 = vmatmul.f32.vlgmr.msra.gmra.mxu3 %v897_v54 }
 0x181   : > { %2041 = vmatmul.f32.gmra.mxu1 %v769_v30  ;;  %v1977_v48 = vpop.f32.mrf.mxu0  ;;  %v837_v30 = vld [vmem:[#allocation2 + $0x60] sm:$0xff] }
 0x183   : > { %v1861_v51 = vpop.f32.mrf.mxu3  ;;  %2154 = vmatmul.f32.gmra.mxu2 %v834_v45  ;;  %v965_v45 = vld [vmem:[#allocation2 + $0x62] sm:$0xff] }
 0x184   : > { %v1862_v43 = vadd.f32 %v1861_v51, %v1749_v8  ;;  %2380 = vmatmul.f32.gmra.mxu0 %v962_v57  ;;  %v901_v51 = vld [vmem:[#allocation2 + $0x61] sm:$0xff] }
 0x186   : > { %v3724_v24 = vadd.f32 %v1974_v58, %v1862_v43  ;;  %v1751_v22 = vpop.f32.mrf.mxu2  ;;  %v1641_v60 = vpop.f32.mrf.mxu1  ;;  %v964_v58 = vld [vmem:[#allocation2 + $0x52] sm:$0xff] }
 0x187   : > { %v1752_v11 = vadd.f32 %v1751_v22, %v1639_v15  ;;  %v1642_v18 = vadd.f32 %v1641_v60, %v3475_v19  ;;  %v838_v60 = vld [vmem:[#allocation2 + $0x68] sm:$0xff] }
 0x188   : > { %2267 = vmatmul.f32.gmra.mxu3 %v898_v59 }
 0x189   : > { %2044 = vmatmul.f32.gmra.mxu1 %v961_v50  ;;  %v1980_v33 = vpop.f32.mrf.mxu0 }
 0x18b   : > { %v1864_v53 = vpop.f32.mrf.mxu3  ;;  %2157 = vmatmul.f32.gmra.mxu2 %v835_v21  ;;  %v966_v21 = vld [vmem:[#allocation2 + $0x6a] sm:$0xff] }
 0x18c   : > { %v1865_v55 = vadd.f32 %v1864_v53, %v1752_v11  ;;  %2383 = vmatmul.f32.gmra.mxu0 %v963_v10  ;;  %v902_v53 = vld [vmem:[#allocation2 + $0x69] sm:$0xff] }
 0x18e   : > { %v3727_v62 = vadd.f32 %v1977_v48, %v1865_v55  ;;  %v1754_v41 = vpop.f32.mrf.mxu2  ;;  %v1644_v32 = vpop.f32.mrf.mxu1 }
 0x18f   : > { %v1755_v27 = vadd.f32 %v1754_v41, %v1642_v18  ;;  %v1645_v54 = vadd.f32 %v1644_v32, %v3492_v44  ;;  %v839_v32 = vld [vmem:[#allocation2 + $0x78] sm:$0xff] }
 0x190   : > { %2270 = vmatmul.f32.gmra.mxu3 %v899_v1 }
 0x191   : > { %2047 = vmatmul.f32.gmra.mxu1 %v962_v57  ;;  %v1983_v38 = vpop.f32.mrf.mxu0 }
 0x193   : > { %v1867_v50 = vpop.f32.mrf.mxu3  ;;  %2160 = vmatmul.f32.gmra.mxu2 %v836_v46  ;;  %v967_v46 = vld [vmem:[#allocation2 + $0x7a] sm:$0xff] }
 0x194   : > { %v1868_v9 = vadd.f32 %v1867_v50, %v1755_v27  ;;  %2386 = vmatmul.f32.gmra.mxu0 %v964_v58  ;;  %v903_v50 = vld [vmem:[#allocation2 + $0x79] sm:$0xff] }
 0x196   : > { %v3730_v39 = vadd.f32 %v1980_v33, %v1868_v9  ;;  %v1757_v19 = vpop.f32.mrf.mxu2  ;;  %v1647_v31 = vpop.f32.mrf.mxu1 }
 0x197   : > { %v1758_v14 = vadd.f32 %v1757_v19, %v1645_v54  ;;  %v1648_v43 = vadd.f32 %v1647_v31, %v3509_v63  ;;  %v840_v31 = vld [vmem:[#allocation2 + $0x80] sm:$0xff] }
 0x198   : > { %2273 = vmatmul.f32.gmra.mxu3 %v900_v52 }
 0x199   : > { %2050 = vmatmul.f32.gmra.mxu1 %v963_v10  ;;  %v1986_v8 = vpop.f32.mrf.mxu0 }
 0x19b   : > { %v1870_v48 = vpop.f32.mrf.mxu3  ;;  %2163 = vmatmul.f32.gmra.mxu2 %v837_v30  ;;  %v968_v30 = vld [vmem:[#allocation2 + $0x82] sm:$0xff] }
 0x19c   : > { %v1871_v57 = vadd.f32 %v1870_v48, %v1758_v14  ;;  %2389 = vmatmul.f32.gmra.mxu0 %v965_v45  ;;  %v904_v48 = vld [vmem:[#allocation2 + $0x81] sm:$0xff] }
 0x19e   : > { %v3733_v59 = vadd.f32 %v1983_v38, %v1871_v57  ;;  %v1760_v44 = vpop.f32.mrf.mxu2  ;;  %v1650_v15 = vpop.f32.mrf.mxu1 }
 0x19f   : > { %v1761_v22 = vadd.f32 %v1760_v44, %v1648_v43  ;;  %v1651_v55 = vadd.f32 %v1650_v15, %v3526_v16  ;;  %v841_v15 = vld [vmem:[#allocation2 + $0x90] sm:$0xff] }
 0x1a0   : > { %2276 = vmatmul.f32.gmra.mxu3 %v901_v51 }
 0x1a1   : > { %2053 = vmatmul.f32.gmra.mxu1 %v964_v58  ;;  %v1989_v11 = vpop.f32.mrf.mxu0 }
 0x1a3   : > { %v1873_v33 = vpop.f32.mrf.mxu3  ;;  %2166 = vmatmul.f32.gmra.mxu2 %v838_v60  ;;  %v969_v60 = vld [vmem:[#allocation2 + $0x92] sm:$0xff] }
 0x1a4   : > { %v1874_v10 = vadd.f32 %v1873_v33, %v1761_v22  ;;  %2392 = vmatmul.f32.gmra.mxu0 %v966_v21  ;;  %v905_v33 = vld [vmem:[#allocation2 + $0x91] sm:$0xff] }
 0x1a6   : > { %v3736_v1 = vadd.f32 %v1986_v8, %v1874_v10  ;;  %v1763_v63 = vpop.f32.mrf.mxu2  ;;  %v1653_v18 = vpop.f32.mrf.mxu1 }
 0x1a7   : > { %v1764_v41 = vadd.f32 %v1763_v63, %v1651_v55  ;;  %v1654_v9 = vadd.f32 %v1653_v18, %v3539_v12  ;;  %v842_v18 = vld [vmem:[#allocation2 + $0x98] sm:$0xff] }
 0x1a8   : > { %2279 = vmatmul.f32.gmra.mxu3 %v902_v53 }
 0x1a9   : > { %2056 = vmatmul.f32.gmra.mxu1 %v965_v45  ;;  %v1992_v27 = vpop.f32.mrf.mxu0 }
 0x1ab   : > { %v1876_v38 = vpop.f32.mrf.mxu3  ;;  %2169 = vmatmul.f32.gmra.mxu2 %v839_v32  ;;  %v970_v32 = vld [vmem:[#allocation2 + $0x9a] sm:$0xff] }
 0x1ac   : > { %v1877_v58 = vadd.f32 %v1876_v38, %v1764_v41  ;;  %2395 = vmatmul.f32.gmra.mxu0 %v967_v46  ;;  %v906_v38 = vld [vmem:[#allocation2 + $0x99] sm:$0xff] }
 0x1ae   : > { %v3739_v52 = vadd.f32 %v1989_v11, %v1877_v58  ;;  %v1766_v16 = vpop.f32.mrf.mxu2  ;;  %v1656_v54 = vpop.f32.mrf.mxu1 }
 0x1af   : > { %v1767_v19 = vadd.f32 %v1766_v16, %v1654_v9  ;;  %v1657_v57 = vadd.f32 %v1656_v54, %v3557_v37  ;;  %v843_v54 = vld [vmem:[#allocation2 + $0xa8] sm:$0xff] }
 0x1b0   : > { %2282 = vmatmul.f32.gmra.mxu3 %v903_v50 }
 0x1b1   : > { %2059 = vmatmul.f32.gmra.mxu1 %v966_v21  ;;  %v1995_v14 = vpop.f32.mrf.mxu0 }
 0x1b3   : > { %v1879_v8 = vpop.f32.mrf.mxu3  ;;  %2172 = vmatmul.f32.gmra.mxu2 %v840_v31  ;;  %v971_v31 = vld [vmem:[#allocation2 + $0xaa] sm:$0xff] }
 0x1b4   : > { %v1880_v45 = vadd.f32 %v1879_v8, %v1767_v19  ;;  %2398 = vmatmul.f32.gmra.mxu0 %v968_v30  ;;  %v907_v8 = vld [vmem:[#allocation2 + $0xa9] sm:$0xff] }
 0x1b6   : > { %v3742_v51 = vadd.f32 %v1992_v27, %v1880_v45  ;;  %v1769_v12 = vpop.f32.mrf.mxu2  ;;  %v1659_v43 = vpop.f32.mrf.mxu1 }
 0x1b7   : > { %v1770_v44 = vadd.f32 %v1769_v12, %v1657_v57  ;;  %v1660_v10 = vadd.f32 %v1659_v43, %v3455_v35  ;;  %v844_v43 = vld [vmem:[#allocation2 + $0xb0] sm:$0xff] }
 0x1b8   : > { %2285 = vmatmul.f32.gmra.mxu3 %v904_v48 }
 0x1b9   : > { %2062 = vmatmul.f32.gmra.mxu1 %v967_v46  ;;  %v1998_v22 = vpop.f32.mrf.mxu0 }
 0x1bb   : > { %v1882_v11 = vpop.f32.mrf.mxu3  ;;  %2175 = vmatmul.f32.gmra.mxu2 %v841_v15  ;;  %v972_v15 = vld [vmem:[#allocation2 + $0xb2] sm:$0xff] }
 0x1bc   : > { %v1883_v21 = vadd.f32 %v1882_v11, %v1770_v44  ;;  %2401 = vmatmul.f32.gmra.mxu0 %v969_v60  ;;  %v908_v11 = vld [vmem:[#allocation2 + $0xb1] sm:$0xff] }
 0x1be   : > { %v3745_v53 = vadd.f32 %v1995_v14, %v1883_v21  ;;  %v1772_v37 = vpop.f32.mrf.mxu2  ;;  %v1662_v55 = vpop.f32.mrf.mxu1 }
 0x1bf   : > { %v1773_v63 = vadd.f32 %v1772_v37, %v1660_v10  ;;  %v1663_v58 = vadd.f32 %v1662_v55, %v3469_v2  ;;  %v845_v55 = vld [vmem:[#allocation2 + $0xc0] sm:$0xff] }
 0x1c0   : > { %2288 = vmatmul.f32.gmra.mxu3 %v905_v33 }
 0x1c1   : > { %2065 = vmatmul.f32.gmra.mxu1 %v968_v30  ;;  %v2001_v41 = vpop.f32.mrf.mxu0 }
 0x1c3   : > { %v1885_v27 = vpop.f32.mrf.mxu3  ;;  %2178 = vmatmul.f32.gmra.mxu2 %v842_v18  ;;  %v973_v18 = vld [vmem:[#allocation2 + $0xc2] sm:$0xff] }
 0x1c4   : > { %v1886_v46 = vadd.f32 %v1885_v27, %v1773_v63  ;;  %2404 = vmatmul.f32.gmra.mxu0 %v970_v32  ;;  %v909_v27 = vld [vmem:[#allocation2 + $0xc1] sm:$0xff] }
 0x1c6   : > { %v3748_v50 = vadd.f32 %v1998_v22, %v1886_v46  ;;  %v1775_v35 = vpop.f32.mrf.mxu2  ;;  %v1665_v9 = vpop.f32.mrf.mxu1 }
 0x1c7   : > { %v1776_v16 = vadd.f32 %v1775_v35, %v1663_v58  ;;  %v1666_v45 = vadd.f32 %v1665_v9, %v3489_v6  ;;  %v846_v9 = vld [vmem:[#allocation2 + $0xc8] sm:$0xff] }
 0x1c8   : > { %2291 = vmatmul.f32.gmra.mxu3 %v906_v38 }
 0x1c9   : > { %2068 = vmatmul.f32.gmra.mxu1 %v969_v60  ;;  %v2004_v19 = vpop.f32.mrf.mxu0 }
 0x1cb   : > { %v1888_v14 = vpop.f32.mrf.mxu3  ;;  %2181 = vmatmul.f32.gmra.mxu2 %v843_v54  ;;  %v974_v54 = vld [vmem:[#allocation2 + $0xca] sm:$0xff] }
 0x1cc   : > { %v1889_v30 = vadd.f32 %v1888_v14, %v1776_v16  ;;  %2407 = vmatmul.f32.gmra.mxu0 %v971_v31  ;;  %v910_v14 = vld [vmem:[#allocation2 + $0xc9] sm:$0xff] }
 0x1ce   : > { %v3751_v48 = vadd.f32 %v2001_v41, %v1889_v30  ;;  %v1778_v2 = vpop.f32.mrf.mxu2  ;;  %v1668_v57 = vpop.f32.mrf.mxu1 }
 0x1cf   : > { %v1779_v12 = vadd.f32 %v1778_v2, %v1666_v45  ;;  %v1669_v21 = vadd.f32 %v1668_v57, %v3503_v56  ;;  %v847_v57 = vld [vmem:[#allocation2 + $0xd8] sm:$0xff] }
 0x1d0   : > { %2294 = vmatmul.f32.gmra.mxu3 %v907_v8 }
 0x1d1   : > { %2071 = vmatmul.f32.gmra.mxu1 %v970_v32  ;;  %v2007_v44 = vpop.f32.mrf.mxu0 }
 0x1d3   : > { %v1891_v22 = vpop.f32.mrf.mxu3  ;;  %2184 = vmatmul.f32.gmra.mxu2 %v844_v43  ;;  %v975_v43 = vld [vmem:[#allocation2 + $0xda] sm:$0xff] }
 0x1d4   : > { %v1892_v60 = vadd.f32 %v1891_v22, %v1779_v12  ;;  %2410 = vmatmul.f32.gmra.mxu0 %v972_v15  ;;  %v911_v22 = vld [vmem:[#allocation2 + $0xd9] sm:$0xff] }
 0x1d6   : > { %v3754_v33 = vadd.f32 %v2004_v19, %v1892_v60  ;;  %v1781_v6 = vpop.f32.mrf.mxu2  ;;  %v1671_v10 = vpop.f32.mrf.mxu1 }
 0x1d7   : > { %v1782_v37 = vadd.f32 %v1781_v6, %v1669_v21  ;;  %v1672_v46 = vadd.f32 %v1671_v10, %v3523_v61  ;;  %v848_v10 = vld [vmem:[#allocation2 + $0xe0] sm:$0xff] }
 0x1d8   : > { %2297 = vmatmul.f32.gmra.mxu3 %v908_v11 }
 0x1d9   : > { %2074 = vmatmul.f32.gmra.mxu1 %v971_v31  ;;  %v2010_v63 = vpop.f32.mrf.mxu0 }
 0x1db   : > { %v1894_v41 = vpop.f32.mrf.mxu3  ;;  %2187 = vmatmul.f32.gmra.mxu2 %v845_v55  ;;  %v976_v55 = vld [vmem:[#allocation2 + $0xe2] sm:$0xff] }
 0x1dc   : > { %v1895_v32 = vadd.f32 %v1894_v41, %v1782_v37  ;;  %2413 = vmatmul.f32.gmra.mxu0 %v973_v18  ;;  %v912_v41 = vld [vmem:[#allocation2 + $0xe1] sm:$0xff] }
 0x1de   : > { %v3757_v38 = vadd.f32 %v2007_v44, %v1895_v32  ;;  %v1784_v56 = vpop.f32.mrf.mxu2  ;;  %v1674_v58 = vpop.f32.mrf.mxu1 }
 0x1df   : > { %v1785_v35 = vadd.f32 %v1784_v56, %v1672_v46  ;;  %v1675_v30 = vadd.f32 %v1674_v58, %v3537_v5  ;;  %v849_v58 = vld [vmem:[#allocation2 + $0xf0] sm:$0xff] }
 0x1e0   : > { %2300 = vmatmul.f32.gmra.mxu3 %v909_v27 }
 0x1e1   : > { %2077 = vmatmul.f32.gmra.mxu1 %v972_v15  ;;  %v2013_v16 = vpop.f32.mrf.mxu0 }
 0x1e3   : > { %v1897_v19 = vpop.f32.mrf.mxu3  ;;  %2190 = vmatmul.f32.gmra.mxu2 %v846_v9  ;;  %v977_v9 = vld [vmem:[#allocation2 + $0xf2] sm:$0xff] }
 0x1e4   : > { %v1898_v31 = vadd.f32 %v1897_v19, %v1785_v35  ;;  %2416 = vmatmul.f32.gmra.mxu0 %v974_v54  ;;  %v913_v19 = vld [vmem:[#allocation2 + $0xf1] sm:$0xff] }
 0x1e6   : > { %v3760_v8 = vadd.f32 %v2010_v63, %v1898_v31  ;;  %v1787_v61 = vpop.f32.mrf.mxu2  ;;  %v1677_v45 = vpop.f32.mrf.mxu1 }
 0x1e7   : > { %v1788_v2 = vadd.f32 %v1787_v61, %v1675_v30  ;;  %v1678_v60 = vadd.f32 %v1677_v45, %v3555_v13  ;;  %v850_v45 = vld [vmem:[#allocation2 + $0xf8] sm:$0xff] }
 0x1e8   : > { %2303 = vmatmul.f32.gmra.mxu3 %v910_v14 }
 0x1e9   : > { %2080 = vmatmul.f32.gmra.mxu1 %v973_v18  ;;  %v2016_v12 = vpop.f32.mrf.mxu0 }
 0x1eb   : > { %v1900_v44 = vpop.f32.mrf.mxu3  ;;  %2193 = vmatmul.f32.gmra.mxu2 %v847_v57  ;;  %v978_v57 = vld [vmem:[#allocation2 + $0xfa] sm:$0xff] }
 0x1ec   : > { %v1901_v15 = vadd.f32 %v1900_v44, %v1788_v2  ;;  %2419 = vmatmul.f32.gmra.mxu0 %v975_v43 }
 0x1ee   : > { %v3763_v11 = vadd.f32 %v2013_v16, %v1901_v15  ;;  %v1790_v5 = vpop.f32.mrf.mxu2  ;;  %v1680_v21 = vpop.f32.mrf.mxu1 }
 0x1ef   : > { %v1791_v6 = vadd.f32 %v1790_v5, %v1678_v60  ;;  %v1681_v32 = vadd.f32 %v1680_v21, %v3562_v47  ;;  %v851_v21 = vld [vmem:[#allocation2 + $0x108] sm:$0xff] }
 0x1f0   : > { %2306 = vmatmul.f32.gmra.mxu3 %v911_v22 }
 0x1f1   : > { %2083 = vmatmul.f32.gmra.mxu1 %v974_v54  ;;  %v2019_v37 = vpop.f32.mrf.mxu0 }
 0x1f3   : > { %v1903_v63 = vpop.f32.mrf.mxu3  ;;  %2196 = vmatmul.f32.gmra.mxu2 %v848_v10  ;;  %v979_v10 = vld [vmem:[#allocation2 + $0x10a] sm:$0xff] }
 0x1f4   : > { %v1904_v18 = vadd.f32 %v1903_v63, %v1791_v6  ;;  %2422 = vmatmul.f32.gmra.mxu0 %v976_v55  ;;  %v915_v63 = vld [vmem:[#allocation2 + $0x109] sm:$0xff] }
 0x1f6   : > { %v3766_v27 = vadd.f32 %v2016_v12, %v1904_v18  ;;  %v1793_v13 = vpop.f32.mrf.mxu2  ;;  %v2039_v46 = vpop.f32.mrf.mxu1 }
 0x1f7   : > { %v1794_v56 = vadd.f32 %v1793_v13, %v1681_v32  ;;  %v2040_v31 = vadd.f32 %v2039_v46, %v3577_v28  ;;  %v914_v28 = vld [vmem:[#allocation2 + $0xf9] sm:$0xff] }
 0x1f8   : > { %2309 = vmatmul.f32.gmra.mxu3 %v912_v41 }
 0x1f9   : > { %2086 = vmatmul.f32.gmra.mxu1 %v975_v43  ;;  %v2378_v35 = vpop.f32.mrf.mxu0 }
 0x1fb   : > { %v1906_v16 = vpop.f32.mrf.mxu3  ;;  %2199 = vmatmul.f32.gmra.mxu2 %v849_v58 }
 0x1fc   : > { %v1907_v54 = vadd.f32 %v1906_v16, %v1794_v56  ;;  %2425 = vmatmul.f32.gmra.mxu0 %v977_v9  ;;  %v980_v16 = vld [vmem:[#allocation2 + $0x112] sm:$0xff] }
 0x1fe   : > { %v3769_v14 = vadd.f32 %v2019_v37, %v1907_v54  ;;  %v2152_v47 = vpop.f32.mrf.mxu2  ;;  %v2042_v30 = vpop.f32.mrf.mxu1 }
 0x1ff   : > { %v2153_v61 = vadd.f32 %v2152_v47, %v2040_v31  ;;  %v2043_v44 = vadd.f32 %v2042_v30, %v3585_v7 }
 0x200   : > { %2312 = vmatmul.f32.gmra.mxu3 %v913_v19 }
 0x201   : > { %2089 = vmatmul.f32.gmra.mxu1 %v976_v55  ;;  %v2381_v2 = vpop.f32.mrf.mxu0 }
 0x203   : > { %v2265_v12 = vpop.f32.mrf.mxu3  ;;  %2202 = vmatmul.f32.gmra.mxu2 %v850_v45 }
 0x204   : > { %v2266_v43 = vadd.f32 %v2265_v12, %v2153_v61  ;;  %2428 = vmatmul.f32.gmra.mxu0 %v978_v57 }
 0x206   : > { %v2379_v15 = vadd.f32 %v2378_v35, %v2266_v43  ;;  %v2155_v22 = vpop.f32.mrf.mxu2  ;;  %v2045_v60 = vpop.f32.mrf.mxu1  ;;  %v852_v35 = vld [vmem:[#allocation2 + $0x110] sm:$0xff] }
 0x207   : > { %v2156_v5 = vadd.f32 %v2155_v22, %v2043_v44  ;;  %v2046_v18 = vadd.f32 %v2045_v60, %v3600_v29  ;;  %v916_v29 = vld [vmem:[#allocation2 + $0x111] sm:$0xff]  ;;  %v981_v44 = vld [vmem:[#allocation2 + $0x122] sm:$0xff] }
 0x208   : > { %2474 = vst [vmem:[%s3776_s25] sm:$0xff] %v2379_v15  ;;  %2315 = vmatmul.f32.gmra.mxu3 %v914_v28  ;;  %v2544_v13 = vmul.f32 %v2379_v15, %v2379_v15 }
 0x209   : > { %2092 = vmatmul.f32.gmra.mxu1 %v977_v9  ;;  %v2384_v6 = vpop.f32.mrf.mxu0 }
 0x20b   : > { %v2268_v37 = vpop.f32.mrf.mxu3  ;;  %2205 = vmatmul.f32.gmra.mxu2 %v851_v21 }
 0x20c   : > { %v2269_v55 = vadd.f32 %v2268_v37, %v2156_v5  ;;  %2431 = vmatmul.f32.gmra.mxu0 %v979_v10  ;;  %v917_v5 = vld [vmem:[#allocation2 + $0x121] sm:$0xff] }
 0x20e   : > { %v2382_v41 = vadd.f32 %v2381_v2, %v2269_v55  ;;  %v2158_v7 = vpop.f32.mrf.mxu2  ;;  %v2048_v32 = vpop.f32.mrf.mxu1 }
 0x20f   : > { %v2159_v58 = vadd.f32 %v2158_v7, %v2046_v18  ;;  %v2049_v47 = vadd.f32 %v2048_v32, %v3609_v26  ;;  %v982_v7 = vld [vmem:[#allocation2 + $0x12a] sm:$0xff] }
 0x210   : > { %2475 = vst [vmem:[%s3776_s25 + $0x8] sm:$0xff] %v2382_v41  ;;  %v2506_v46 = vadd.f32 %v2382_v41, %v2379_v15  ;;  %v2545_v56 = vmul.f32 %v2382_v41, %v2382_v41  ;;  %2318 = vmatmul.f32.gmra.mxu3 %v915_v63 }
 0x211   : > { %2095 = vmatmul.f32.gmra.mxu1 %v978_v57  ;;  %v2387_v9 = vpop.f32.mrf.mxu0  ;;  %v853_v57 = vld [vmem:[#allocation2 + $0x120] sm:$0xff] }
 0x212   : > { %v2576_v54 = vadd.f32 %v2545_v56, %v2544_v13  ;;  %v918_v56 = vld [vmem:[#allocation2 + $0x129] sm:$0xff] }
 0x213   : > { %v2271_v19 = vpop.f32.mrf.mxu3  ;;  %2208 = vmatmul.f32.gmra.mxu2 %v852_v35 }
 0x214   : > { %v2272_v31 = vadd.f32 %v2271_v19, %v2159_v58  ;;  %2434 = vmatmul.f32.gmra.mxu0 %v980_v16 }
 0x216   : > { %v2385_v30 = vadd.f32 %v2384_v6, %v2272_v31  ;;  %v2161_v61 = vpop.f32.mrf.mxu2  ;;  %v2051_v45 = vpop.f32.mrf.mxu1 }
 0x217   : > { %v2162_v43 = vadd.f32 %v2161_v61, %v2049_v47  ;;  %v2052_v26 = vadd.f32 %v2051_v45, %v3624_v23  ;;  %v983_v47 = vld [vmem:[#allocation2 + $0x13a] sm:$0xff] }
 0x218   : > { %2476 = vst [vmem:[%s3776_s25 + $0x10] sm:$0xff] %v2385_v30  ;;  %v2507_v2 = vadd.f32 %v2506_v46, %v2385_v30  ;;  %v2546_v12 = vmul.f32 %v2385_v30, %v2385_v30  ;;  %2321 = vmatmul.f32.gmra.mxu3 %v916_v29 }
 0x219   : > { %2098 = vmatmul.f32.gmra.mxu1 %v979_v10  ;;  %v2390_v28 = vpop.f32.mrf.mxu0  ;;  %v854_v10 = vld [vmem:[#allocation2 + $0x128] sm:$0xff] }
 0x21a   : > { %v2577_v15 = vadd.f32 %v2576_v54, %v2546_v12 }
 0x21b   : > { %v2274_v22 = vpop.f32.mrf.mxu3  ;;  %2211 = vmatmul.f32.gmra.mxu2 %v853_v57 }
 0x21c   : > { %v2275_v60 = vadd.f32 %v2274_v22, %v2162_v43  ;;  %2437 = vmatmul.f32.gmra.mxu0 %v981_v44 }
 0x21e   : > { %v2388_v21 = vadd.f32 %v2387_v9, %v2275_v60  ;;  %v2164_v6 = vpop.f32.mrf.mxu2  ;;  %v2054_v37 = vpop.f32.mrf.mxu1 }
 0x21f   : > { %v2165_v18 = vadd.f32 %v2164_v6, %v2052_v26  ;;  %v2055_v23 = vadd.f32 %v2054_v37, %v3632_v3  ;;  %v920_v37 = vld [vmem:[#allocation2 + $0x141] sm:$0xff] }
 0x220   : > { %2477 = vst [vmem:[%s3776_s25 + $0x18] sm:$0xff] %v2388_v21  ;;  %v2508_v55 = vadd.f32 %v2507_v2, %v2388_v21  ;;  %v2547_v63 = vmul.f32 %v2388_v21, %v2388_v21  ;;  %2324 = vmatmul.f32.gmra.mxu3 %v917_v5  ;;  %v919_v2 = vld [vmem:[#allocation2 + $0x139] sm:$0xff]  ;;  %v984_v5 = vld [vmem:[#allocation2 + $0x142] sm:$0xff] }
 0x221   : > { %2101 = vmatmul.f32.gmra.mxu1 %v980_v16  ;;  %v2393_v41 = vpop.f32.mrf.mxu0  ;;  %v855_v16 = vld [vmem:[#allocation2 + $0x138] sm:$0xff] }
 0x222   : > { %v2578_v32 = vadd.f32 %v2577_v15, %v2547_v63 }
 0x223   : > { %v2277_v13 = vpop.f32.mrf.mxu3  ;;  %2214 = vmatmul.f32.gmra.mxu2 %v854_v10 }
 0x224   : > { %v2278_v46 = vadd.f32 %v2277_v13, %v2165_v18  ;;  %2440 = vmatmul.f32.gmra.mxu0 %v982_v7 }
 0x226   : > { %v2391_v58 = vadd.f32 %v2390_v28, %v2278_v46  ;;  %v2167_v35 = vpop.f32.mrf.mxu2  ;;  %v2057_v9 = vpop.f32.mrf.mxu1  ;;  %v985_v46 = vld [vmem:[#allocation2 + $0x152] sm:$0xff] }
 0x227   : > { %v2168_v31 = vadd.f32 %v2167_v35, %v2055_v23  ;;  %v2058_v3 = vadd.f32 %v2057_v9, %v3645_v40  ;;  %v921_v35 = vld [vmem:[#allocation2 + $0x151] sm:$0xff] }
 0x228   : > { %2478 = vst [vmem:[%s3776_s25 + $0x20] sm:$0xff] %v2391_v58  ;;  %v2509_v54 = vadd.f32 %v2508_v55, %v2391_v58  ;;  %v2548_v19 = vmul.f32 %v2391_v58, %v2391_v58  ;;  %2327 = vmatmul.f32.gmra.mxu3 %v918_v56 }
 0x229   : > { %2104 = vmatmul.f32.gmra.mxu1 %v981_v44  ;;  %v2396_v29 = vpop.f32.mrf.mxu0  ;;  %v856_v44 = vld [vmem:[#allocation2 + $0x140] sm:$0xff] }
 0x22a   : > { %v2579_v30 = vadd.f32 %v2578_v32, %v2548_v19 }
 0x22b   : > { %v2280_v61 = vpop.f32.mrf.mxu3  ;;  %2217 = vmatmul.f32.gmra.mxu2 %v855_v16 }
 0x22c   : > { %v2281_v45 = vadd.f32 %v2280_v61, %v2168_v31  ;;  %2443 = vmatmul.f32.gmra.mxu0 %v983_v47  ;;  %v986_v61 = vld [vmem:[#allocation2 + $0x15a] sm:$0xff] }
 0x22e   : > { %v2394_v12 = vadd.f32 %v2393_v41, %v2281_v45  ;;  %v2170_v43 = vpop.f32.mrf.mxu2  ;;  %v2060_v57 = vpop.f32.mrf.mxu1 }
 0x22f   : > { %v2171_v22 = vadd.f32 %v2170_v43, %v2058_v3  ;;  %v2061_v40 = vadd.f32 %v2060_v57, %v3651_v4 }
 0x230   : > { %2479 = vst [vmem:[%s3776_s25 + $0x28] sm:$0xff] %v2394_v12  ;;  %v2510_v28 = vadd.f32 %v2509_v54, %v2394_v12  ;;  %v2549_v15 = vmul.f32 %v2394_v12, %v2394_v12  ;;  %2330 = vmatmul.f32.gmra.mxu3 %v919_v2  ;;  %v922_v12 = vld [vmem:[#allocation2 + $0x159] sm:$0xff] }
 0x231   : > { %2107 = vmatmul.f32.gmra.mxu1 %v982_v7  ;;  %v2399_v60 = vpop.f32.mrf.mxu0  ;;  %v857_v7 = vld [vmem:[#allocation2 + $0x150] sm:$0xff] }
 0x232   : > { %v2580_v26 = vadd.f32 %v2579_v30, %v2549_v15 }
 0x233   : > { %v2283_v21 = vpop.f32.mrf.mxu3  ;;  %2220 = vmatmul.f32.gmra.mxu2 %v856_v44 }
 0x234   : > { %v2284_v6 = vadd.f32 %v2283_v21, %v2171_v22  ;;  %2446 = vmatmul.f32.gmra.mxu0 %v984_v5 }
 0x236   : > { %v2397_v55 = vadd.f32 %v2396_v29, %v2284_v6  ;;  %v2173_v63 = vpop.f32.mrf.mxu2  ;;  %v2063_v18 = vpop.f32.mrf.mxu1 }
 0x237   : > { %v2174_v32 = vadd.f32 %v2173_v63, %v2061_v40  ;;  %v2064_v4 = vadd.f32 %v2063_v18, %v3672_v49  ;;  %v923_v40 = vld [vmem:[#allocation2 + $0x169] sm:$0xff] }
 0x238   : > { %2480 = vst [vmem:[%s3776_s25 + $0x30] sm:$0xff] %v2397_v55  ;;  %v2511_v10 = vadd.f32 %v2510_v28, %v2397_v55  ;;  %v2550_v41 = vmul.f32 %v2397_v55, %v2397_v55  ;;  %2333 = vmatmul.f32.gmra.mxu3 %v920_v37 }
 0x239   : > { %2110 = vmatmul.f32.gmra.mxu1 %v983_v47  ;;  %v2402_v13 = vpop.f32.mrf.mxu0  ;;  %v858_v47 = vld [vmem:[#allocation2 + $0x158] sm:$0xff] }
 0x23a   : > { %v2581_v56 = vadd.f32 %v2580_v26, %v2550_v41  ;;  %v987_v26 = vld [vmem:[#allocation2 + $0x16a] sm:$0xff] }
 0x23b   : > { %v2286_v23 = vpop.f32.mrf.mxu3  ;;  %2223 = vmatmul.f32.gmra.mxu2 %v857_v7  ;;  %v860_v7 = vld [vmem:[#allocation2 + $0x170] sm:$0xff] }
 0x23c   : > { %v2287_v58 = vadd.f32 %v2286_v23, %v2174_v32  ;;  %2449 = vmatmul.f32.gmra.mxu0 %v985_v46 }
 0x23e   : > { %v2400_v9 = vadd.f32 %v2399_v60, %v2287_v58  ;;  %v2176_v54 = vpop.f32.mrf.mxu2  ;;  %v2066_v19 = vpop.f32.mrf.mxu1  ;;  %v859_v60 = vld [vmem:[#allocation2 + $0x168] sm:$0xff] }
 0x23f   : > { %v2177_v29 = vadd.f32 %v2176_v54, %v2064_v4  ;;  %v2067_v49 = vadd.f32 %v2066_v19, %v3684_v34 }
 0x240   : > { %2481 = vst [vmem:[%s3776_s25 + $0x38] sm:$0xff] %v2400_v9  ;;  %v2512_v31 = vadd.f32 %v2511_v10, %v2400_v9  ;;  %v2551_v16 = vmul.f32 %v2400_v9, %v2400_v9  ;;  %2336 = vmatmul.f32.gmra.mxu3 %v921_v35  ;;  %v924_v35 = vld [vmem:[#allocation2 + $0x171] sm:$0xff] }
 0x241   : > { %2113 = vmatmul.f32.gmra.mxu1 %v984_v5  ;;  %v2405_v30 = vpop.f32.mrf.mxu0 }
 0x242   : > { %v2582_v45 = vadd.f32 %v2581_v56, %v2551_v16 }
 0x243   : > { %v2289_v2 = vpop.f32.mrf.mxu3  ;;  %2226 = vmatmul.f32.gmra.mxu2 %v858_v47 }
 0x244   : > { %v2290_v3 = vadd.f32 %v2289_v2, %v2177_v29  ;;  %2452 = vmatmul.f32.gmra.mxu0 %v986_v61  ;;  %v861_v29 = vld [vmem:[#allocation2 + $0x180] sm:$0xff] }
 0x246   : > { %v2403_v43 = vadd.f32 %v2402_v13, %v2290_v3  ;;  %v2179_v57 = vpop.f32.mrf.mxu2  ;;  %v2069_v28 = vpop.f32.mrf.mxu1  ;;  %v925_v3 = vld [vmem:[#allocation2 + $0x181] sm:$0xff] }
 0x247   : > { %v2180_v44 = vadd.f32 %v2179_v57, %v2067_v49  ;;  %v2070_v34 = vadd.f32 %v2069_v28, %v3699_v25 }
 0x248   : > { %2482 = vst [vmem:[%s3776_s25 + $0x40] sm:$0xff] %v2403_v43  ;;  %v2513_v15 = vadd.f32 %v2512_v31, %v2403_v43  ;;  %v2552_v22 = vmul.f32 %v2403_v43, %v2403_v43  ;;  %2339 = vmatmul.f32.gmra.mxu3 %v922_v12 }
 0x249   : > { %2116 = vmatmul.f32.gmra.mxu1 %v985_v46  ;;  %v2408_v5 = vpop.f32.mrf.mxu0  ;;  %v988_v46 = vld [vmem:[#allocation2 + $0x172] sm:$0xff] }
 0x24a   : > { %v2583_v21 = vadd.f32 %v2582_v45, %v2552_v22  ;;  %v862_v22 = vld [vmem:[#allocation2 + $0x188] sm:$0xff] }
 0x24b   : > { %v2292_v6 = vpop.f32.mrf.mxu3  ;;  %2229 = vmatmul.f32.gmra.mxu2 %v859_v60  ;;  %v990_v60 = vld [vmem:[#allocation2 + $0x18a] sm:$0xff] }
 0x24c   : > { %v2293_v37 = vadd.f32 %v2292_v6, %v2180_v44  ;;  %2455 = vmatmul.f32.gmra.mxu0 %v987_v26  ;;  %v926_v6 = vld [vmem:[#allocation2 + $0x189] sm:$0xff] }
 0x24e   : > { %v2406_v55 = vadd.f32 %v2405_v30, %v2293_v37  ;;  %v2182_v63 = vpop.f32.mrf.mxu2  ;;  %v2072_v18 = vpop.f32.mrf.mxu1  ;;  %v989_v30 = vld [vmem:[#allocation2 + $0x182] sm:$0xff] }
 0x24f   : > { %v2183_v32 = vadd.f32 %v2182_v63, %v2070_v34  ;;  %v2073_v25 = vadd.f32 %v2072_v18, %v3705_v17 }
 0x250   : > { %2483 = vst [vmem:[%s3776_s25 + $0x48] sm:$0xff] %v2406_v55  ;;  %v2514_v10 = vadd.f32 %v2513_v15, %v2406_v55  ;;  %v2553_v41 = vmul.f32 %v2406_v55, %v2406_v55  ;;  %2342 = vmatmul.f32.gmra.mxu3 %v923_v40 }
 0x251   : > { %2119 = vmatmul.f32.gmra.mxu1 %v986_v61  ;;  %v2411_v13 = vpop.f32.mrf.mxu0 }
 0x252   : > { %v2584_v56 = vadd.f32 %v2583_v21, %v2553_v41 }
 0x253   : > { %v2295_v23 = vpop.f32.mrf.mxu3  ;;  %2232 = vmatmul.f32.gmra.mxu2 %v860_v7 }
 0x254   : > { %v2296_v58 = vadd.f32 %v2295_v23, %v2183_v32  ;;  %2458 = vmatmul.f32.gmra.mxu0 %v988_v46  ;;  %v991_v32 = vld [vmem:[#allocation2 + $0x19a] sm:$0xff] }
 0x256   : > { %v2409_v4 = vadd.f32 %v2408_v5, %v2296_v58  ;;  %v2185_v9 = vpop.f32.mrf.mxu2  ;;  %v2075_v54 = vpop.f32.mrf.mxu1 }
 0x257   : > { %v2186_v16 = vadd.f32 %v2185_v9, %v2073_v25  ;;  %v2076_v17 = vadd.f32 %v2075_v54, %v3708_v36 }
 0x258   : > { %2484 = vst [vmem:[%s3776_s25 + $0x50] sm:$0xff] %v2409_v4  ;;  %v2515_v19 = vadd.f32 %v2514_v10, %v2409_v4  ;;  %v2554_v31 = vmul.f32 %v2409_v4, %v2409_v4  ;;  %2345 = vmatmul.f32.gmra.mxu3 %v924_v35  ;;  %v863_v10 = vld [vmem:[#allocation2 + $0x198] sm:$0xff] }
 0x259   : > { %2122 = vmatmul.f32.gmra.mxu1 %v987_v26  ;;  %v2414_v47 = vpop.f32.mrf.mxu0 }
 0x25a   : > { %v2585_v61 = vadd.f32 %v2584_v56, %v2554_v31  ;;  %v927_v56 = vld [vmem:[#allocation2 + $0x199] sm:$0xff] }
 0x25b   : > { %v2298_v45 = vpop.f32.mrf.mxu3  ;;  %2235 = vmatmul.f32.gmra.mxu2 %v861_v29  ;;  %v2775_v29 = vld [vmem:[#allocation2 + $0x8] sm:$0xff] }
 0x25c   : > { %v2299_v2 = vadd.f32 %v2298_v45, %v2186_v16  ;;  %2461 = vmatmul.f32.gmra.mxu0 %v989_v30 }
 0x25e   : > { %v2412_v12 = vadd.f32 %v2411_v13, %v2299_v2  ;;  %v2188_v49 = vpop.f32.mrf.mxu2  ;;  %v2078_v43 = vpop.f32.mrf.mxu1 }
 0x25f   : > { %v2189_v15 = vadd.f32 %v2188_v49, %v2076_v17  ;;  %v2079_v36 = vadd.f32 %v2078_v43, %v3713_v0 }
 0x260   : > { %2485 = vst [vmem:[%s3776_s25 + $0x58] sm:$0xff] %v2412_v12  ;;  %v2516_v57 = vadd.f32 %v2515_v19, %v2412_v12  ;;  %v2555_v28 = vmul.f32 %v2412_v12, %v2412_v12  ;;  %2348 = vmatmul.f32.gmra.mxu3 %v925_v3  ;;  %v992_v19 = vld [vmem:[#allocation2 + $0x1a2] sm:$0xff] }
 0x261   : > { %2125 = vmatmul.f32.gmra.mxu1 %v988_v46  ;;  %v2417_v44 = vpop.f32.mrf.mxu0 }
 0x262   : > { %v2586_v5 = vadd.f32 %v2585_v61, %v2555_v28 }
 0x263   : > { %v2301_v26 = vpop.f32.mrf.mxu3  ;;  %2238 = vmatmul.f32.gmra.mxu2 %v862_v22 }
 0x264   : > { %v2302_v21 = vadd.f32 %v2301_v26, %v2189_v15  ;;  %2464 = vmatmul.f32.gmra.mxu0 %v990_v60 }
 0x266   : > { %v2415_v37 = vadd.f32 %v2414_v47, %v2302_v21  ;;  %v2191_v40 = vpop.f32.mrf.mxu2  ;;  %v2081_v34 = vpop.f32.mrf.mxu1 }
 0x267   : > { %v2192_v18 = vadd.f32 %v2191_v40, %v2079_v36  ;;  %v2082_v0 = vadd.f32 %v2081_v34, %v3718_v42 }
 0x268   : > { %2486 = vst [vmem:[%s3776_s25 + $0x60] sm:$0xff] %v2415_v37  ;;  %v2517_v55 = vadd.f32 %v2516_v57, %v2415_v37  ;;  %v2556_v63 = vmul.f32 %v2415_v37, %v2415_v37  ;;  %2351 = vmatmul.f32.gmra.mxu3 %v926_v6 }
 0x269   : > { %2128 = vmatmul.f32.gmra.mxu1 %v989_v30  ;;  %v2420_v41 = vpop.f32.mrf.mxu0  ;;  %v928_v30 = vld [vmem:[#allocation2 + $0x1a1] sm:$0xff] }
 0x26a   : > { %v2587_v7 = vadd.f32 %v2586_v5, %v2556_v63 }
 0x26b   : > { %v2304_v13 = vpop.f32.mrf.mxu3  ;;  %2241 = vmatmul.f32.gmra.mxu2 %v863_v10 }
 0x26c   : > { %v2305_v46 = vadd.f32 %v2304_v13, %v2192_v18  ;;  %2467 = vmatmul.f32.gmra.mxu0 %v991_v32 }
 0x26e   : > { %v2418_v23 = vadd.f32 %v2417_v44, %v2305_v46  ;;  %v2194_v58 = vpop.f32.mrf.mxu2  ;;  %v2084_v35 = vpop.f32.mrf.mxu1 }
 0x26f   : > { %v2195_v9 = vadd.f32 %v2194_v58, %v2082_v0  ;;  %v2085_v42 = vadd.f32 %v2084_v35, %v3721_v20 }
 0x270   : > { %2487 = vst [vmem:[%s3776_s25 + $0x68] sm:$0xff] %v2418_v23  ;;  %v2518_v25 = vadd.f32 %v2517_v55, %v2418_v23  ;;  %v2557_v4 = vmul.f32 %v2418_v23, %v2418_v23  ;;  %2354 = vmatmul.f32.gmra.mxu3 %v927_v56 }
 0x271   : > { %2131 = vmatmul.f32.gmra.mxu1 %v990_v60  ;;  %v2423_v54 = vpop.f32.mrf.mxu0 }
 0x272   : > { %v2588_v31 = vadd.f32 %v2587_v7, %v2557_v4 }
 0x273   : > { %v2307_v16 = vpop.f32.mrf.mxu3  ;;  %2244 = vmatmul.f32.gmra.mxu2 %v2775_v29 }
 0x274   : > { %v2308_v47 = vadd.f32 %v2307_v16, %v2195_v9  ;;  %2470 = vmatmul.f32.gmra.mxu0 %v992_v19 }
 0x276   : > { %v2421_v61 = vadd.f32 %v2420_v41, %v2308_v47  ;;  %v2197_v45 = vpop.f32.mrf.mxu2  ;;  %v2087_v2 = vpop.f32.mrf.mxu1 }
 0x277   : > { %v2198_v12 = vadd.f32 %v2197_v45, %v2085_v42  ;;  %v2088_v15 = vadd.f32 %v2087_v2, %v3724_v24 }
 0x278   : > { %2488 = vst [vmem:[%s3776_s25 + $0x70] sm:$0xff] %v2421_v61  ;;  %v2519_v3 = vadd.f32 %v2518_v25, %v2421_v61  ;;  %v2558_v17 = vmul.f32 %v2421_v61, %v2421_v61  ;;  %2357 = vmatmul.f32.gmra.mxu3 %v928_v30 }
 0x279   : > { %v2426_v49 = vpop.f32.mrf.mxu0 }
 0x27a   : > { %v2589_v43 = vadd.f32 %v2588_v31, %v2558_v17 }
 0x27b   : > { %v2310_v57 = vpop.f32.mrf.mxu3 }
 0x27c   : > { %v2311_v28 = vadd.f32 %v2310_v57, %v2198_v12 }
 0x27e   : > { %v2424_v22 = vadd.f32 %v2423_v54, %v2311_v28  ;;  %v2200_v44 = vpop.f32.mrf.mxu2  ;;  %v2090_v60 = vpop.f32.mrf.mxu1 }
 0x27f   : > { %v2201_v26 = vadd.f32 %v2200_v44, %v2088_v15  ;;  %v2091_v40 = vadd.f32 %v2090_v60, %v3727_v62 }
 0x280   : > { %2489 = vst [vmem:[%s3776_s25 + $0x78] sm:$0xff] %v2424_v22  ;;  %v2520_v20 = vadd.f32 %v2519_v3, %v2424_v22  ;;  %v2559_v5 = vmul.f32 %v2424_v22, %v2424_v22 }
 0x281   : > { %v2429_v21 = vpop.f32.mrf.mxu0 }
 0x282   : > { %v2590_v6 = vadd.f32 %v2589_v43, %v2559_v5 }
 0x283   : > { %v2313_v36 = vpop.f32.mrf.mxu3 }
 0x284   : > { %v2314_v37 = vadd.f32 %v2313_v36, %v2201_v26 }
 0x286   : > { %v2427_v34 = vadd.f32 %v2426_v49, %v2314_v37  ;;  %v2203_v55 = vpop.f32.mrf.mxu2  ;;  %v2093_v63 = vpop.f32.mrf.mxu1 }
 0x287   : > { %v2204_v10 = vadd.f32 %v2203_v55, %v2091_v40  ;;  %v2094_v46 = vadd.f32 %v2093_v63, %v3730_v39 }
 0x288   : > { %2490 = vst [vmem:[%s3776_s25 + $0x80] sm:$0xff] %v2427_v34  ;;  %v2521_v24 = vadd.f32 %v2520_v20, %v2427_v34  ;;  %v2560_v18 = vmul.f32 %v2427_v34, %v2427_v34 }
 0x289   : > { %v2432_v41 = vpop.f32.mrf.mxu0 }
 0x28a   : > { %v2591_v32 = vadd.f32 %v2590_v6, %v2560_v18 }
 0x28b   : > { %v2316_v7 = vpop.f32.mrf.mxu3 }
 0x28c   : > { %v2317_v13 = vadd.f32 %v2316_v7, %v2204_v10 }
 0x28e   : > { %v2430_v56 = vadd.f32 %v2429_v21, %v2317_v13  ;;  %v2206_v0 = vpop.f32.mrf.mxu2  ;;  %v2096_v23 = vpop.f32.mrf.mxu1 }
 0x28f   : > { %v2207_v35 = vadd.f32 %v2206_v0, %v2094_v46  ;;  %v2097_v19 = vadd.f32 %v2096_v23, %v3733_v59 }
 0x290   : > { %2491 = vst [vmem:[%s3776_s25 + $0x88] sm:$0xff] %v2430_v56  ;;  %v2522_v62 = vadd.f32 %v2521_v24, %v2430_v56  ;;  %v2561_v58 = vmul.f32 %v2430_v56, %v2430_v56 }
 0x291   : > { %v2435_v25 = vpop.f32.mrf.mxu0 }
 0x292   : > { %v2592_v4 = vadd.f32 %v2591_v32, %v2561_v58 }
 0x293   : > { %v2319_v9 = vpop.f32.mrf.mxu3 }
 0x294   : > { %v2320_v54 = vadd.f32 %v2319_v9, %v2207_v35 }
 0x296   : > { %v2433_v31 = vadd.f32 %v2432_v41, %v2320_v54  ;;  %v2209_v16 = vpop.f32.mrf.mxu2  ;;  %v2099_v29 = vpop.f32.mrf.mxu1 }
 0x297   : > { %v2210_v30 = vadd.f32 %v2209_v16, %v2097_v19  ;;  %v2100_v3 = vadd.f32 %v2099_v29, %v3736_v1 }
 0x298   : > { %2492 = vst [vmem:[%s3776_s25 + $0x90] sm:$0xff] %v2433_v31  ;;  %v2523_v39 = vadd.f32 %v2522_v62, %v2433_v31  ;;  %v2562_v47 = vmul.f32 %v2433_v31, %v2433_v31 }
 0x299   : > { %v2438_v42 = vpop.f32.mrf.mxu0 }
 0x29a   : > { %v2593_v61 = vadd.f32 %v2592_v4, %v2562_v47 }
 0x29b   : > { %v2322_v45 = vpop.f32.mrf.mxu3 }
 0x29c   : > { %v2323_v2 = vadd.f32 %v2322_v45, %v2210_v30 }
 0x29e   : > { %v2436_v17 = vadd.f32 %v2435_v25, %v2323_v2  ;;  %v2212_v12 = vpop.f32.mrf.mxu2  ;;  %v2102_v49 = vpop.f32.mrf.mxu1 }
 0x29f   : > { %v2213_v57 = vadd.f32 %v2212_v12, %v2100_v3  ;;  %v2103_v60 = vadd.f32 %v2102_v49, %v3739_v52 }
 0x2a0   : > { %2493 = vst [vmem:[%s3776_s25 + $0x98] sm:$0xff] %v2436_v17  ;;  %v2524_v59 = vadd.f32 %v2523_v39, %v2436_v17  ;;  %v2563_v43 = vmul.f32 %v2436_v17, %v2436_v17 }
 0x2a1   : > { %v2441_v28 = vpop.f32.mrf.mxu0 }
 0x2a2   : > { %v2594_v15 = vadd.f32 %v2593_v61, %v2563_v43 }
 0x2a3   : > { %v2325_v22 = vpop.f32.mrf.mxu3 }
 0x2a4   : > { %v2326_v44 = vadd.f32 %v2325_v22, %v2213_v57 }
 0x2a6   : > { %v2439_v20 = vadd.f32 %v2438_v42, %v2326_v44  ;;  %v2215_v5 = vpop.f32.mrf.mxu2  ;;  %v2105_v26 = vpop.f32.mrf.mxu1 }
 0x2a7   : > { %v2216_v6 = vadd.f32 %v2215_v5, %v2103_v60  ;;  %v2106_v55 = vadd.f32 %v2105_v26, %v3742_v51 }
 0x2a8   : > { %2494 = vst [vmem:[%s3776_s25 + $0xa0] sm:$0xff] %v2439_v20  ;;  %v2525_v1 = vadd.f32 %v2524_v59, %v2439_v20  ;;  %v2564_v21 = vmul.f32 %v2439_v20, %v2439_v20 }
 0x2a9   : > { %v2444_v36 = vpop.f32.mrf.mxu0 }
 0x2aa   : > { %v2595_v37 = vadd.f32 %v2594_v15, %v2564_v21 }
 0x2ab   : > { %v2328_v40 = vpop.f32.mrf.mxu3 }
 0x2ac   : > { %v2329_v34 = vadd.f32 %v2328_v40, %v2216_v6 }
 0x2ae   : > { %v2442_v63 = vadd.f32 %v2441_v28, %v2329_v34  ;;  %v2218_v24 = vpop.f32.mrf.mxu2  ;;  %v2108_v18 = vpop.f32.mrf.mxu1 }
 0x2af   : > { %v2219_v41 = vadd.f32 %v2218_v24, %v2106_v55  ;;  %v2109_v56 = vadd.f32 %v2108_v18, %v3745_v53 }
 0x2b0   : > { %2495 = vst [vmem:[%s3776_s25 + $0xa8] sm:$0xff] %v2442_v63  ;;  %v2526_v52 = vadd.f32 %v2525_v1, %v2442_v63  ;;  %v2565_v10 = vmul.f32 %v2442_v63, %v2442_v63 }
 0x2b1   : > { %v2447_v32 = vpop.f32.mrf.mxu0 }
 0x2b2   : > { %v2596_v7 = vadd.f32 %v2595_v37, %v2565_v10 }
 0x2b3   : > { %v2331_v13 = vpop.f32.mrf.mxu3 }
 0x2b4   : > { %v2332_v46 = vadd.f32 %v2331_v13, %v2219_v41 }
 0x2b6   : > { %v2445_v0 = vadd.f32 %v2444_v36, %v2332_v46  ;;  %v2221_v23 = vpop.f32.mrf.mxu2  ;;  %v2111_v62 = vpop.f32.mrf.mxu1 }
 0x2b7   : > { %v2222_v35 = vadd.f32 %v2221_v23, %v2109_v56  ;;  %v2112_v19 = vadd.f32 %v2111_v62, %v3748_v50 }
 0x2b8   : > { %2496 = vst [vmem:[%s3776_s25 + $0xb0] sm:$0xff] %v2445_v0  ;;  %v2527_v51 = vadd.f32 %v2526_v52, %v2445_v0  ;;  %v2566_v58 = vmul.f32 %v2445_v0, %v2445_v0 }
 0x2b9   : > { %v2450_v25 = vpop.f32.mrf.mxu0 }
 0x2ba   : > { %v2597_v4 = vadd.f32 %v2596_v7, %v2566_v58 }
 0x2bb   : > { %v2334_v9 = vpop.f32.mrf.mxu3 }
 0x2bc   : > { %v2335_v54 = vadd.f32 %v2334_v9, %v2222_v35 }
 0x2be   : > { %v2448_v31 = vadd.f32 %v2447_v32, %v2335_v54  ;;  %v2224_v16 = vpop.f32.mrf.mxu2  ;;  %v2114_v29 = vpop.f32.mrf.mxu1 }
 0x2bf   : > { %v2225_v47 = vadd.f32 %v2224_v16, %v2112_v19  ;;  %v2115_v2 = vadd.f32 %v2114_v29, %v3751_v48 }
 0x2c0   : > { %2497 = vst [vmem:[%s3776_s25 + $0xb8] sm:$0xff] %v2448_v31  ;;  %v2528_v53 = vadd.f32 %v2527_v51, %v2448_v31  ;;  %v2567_v39 = vmul.f32 %v2448_v31, %v2448_v31 }
 0x2c1   : > { %v2453_v30 = vpop.f32.mrf.mxu0 }
 0x2c2   : > { %v2598_v42 = vadd.f32 %v2597_v4, %v2567_v39 }
 0x2c3   : > { %v2337_v61 = vpop.f32.mrf.mxu3 }
 0x2c4   : > { %v2338_v45 = vadd.f32 %v2337_v61, %v2225_v47 }
 0x2c6   : > { %v2451_v3 = vadd.f32 %v2450_v25, %v2338_v45  ;;  %v2227_v17 = vpop.f32.mrf.mxu2  ;;  %v2117_v12 = vpop.f32.mrf.mxu1 }
 0x2c7   : > { %v2228_v59 = vadd.f32 %v2227_v17, %v2115_v2  ;;  %v2118_v22 = vadd.f32 %v2117_v12, %v3754_v33 }
 0x2c8   : > { %2498 = vst [vmem:[%s3776_s25 + $0xc0] sm:$0xff] %v2451_v3  ;;  %v2529_v50 = vadd.f32 %v2528_v53, %v2451_v3  ;;  %v2568_v49 = vmul.f32 %v2451_v3, %v2451_v3 }
 0x2c9   : > { %v2456_v43 = vpop.f32.mrf.mxu0 }
 0x2ca   : > { %v2599_v57 = vadd.f32 %v2598_v42, %v2568_v49 }
 0x2cb   : > { %v2340_v28 = vpop.f32.mrf.mxu3 }
 0x2cc   : > { %v2341_v15 = vadd.f32 %v2340_v28, %v2228_v59 }
 0x2ce   : > { %v2454_v44 = vadd.f32 %v2453_v30, %v2341_v15  ;;  %v2230_v60 = vpop.f32.mrf.mxu2  ;;  %v2120_v20 = vpop.f32.mrf.mxu1 }
 0x2cf   : > { %v2231_v26 = vadd.f32 %v2230_v60, %v2118_v22  ;;  %v2121_v37 = vadd.f32 %v2120_v20, %v3757_v38 }
 0x2d0   : > { %2499 = vst [vmem:[%s3776_s25 + $0xc8] sm:$0xff] %v2454_v44  ;;  %v2530_v48 = vadd.f32 %v2529_v50, %v2454_v44  ;;  %v2569_v5 = vmul.f32 %v2454_v44, %v2454_v44 }
 0x2d1   : > { %v2459_v6 = vpop.f32.mrf.mxu0 }
 0x2d2   : > { %v2600_v1 = vadd.f32 %v2599_v57, %v2569_v5 }
 0x2d3   : > { %v2343_v21 = vpop.f32.mrf.mxu3 }
 0x2d4   : > { %v2344_v36 = vadd.f32 %v2343_v21, %v2231_v26 }
 0x2d6   : > { %v2457_v40 = vadd.f32 %v2456_v43, %v2344_v36  ;;  %v2233_v34 = vpop.f32.mrf.mxu2  ;;  %v2123_v55 = vpop.f32.mrf.mxu1 }
 0x2d7   : > { %v2234_v24 = vadd.f32 %v2233_v34, %v2121_v37  ;;  %v2124_v32 = vadd.f32 %v2123_v55, %v3760_v8 }
 0x2d8   : > { %2500 = vst [vmem:[%s3776_s25 + $0xd0] sm:$0xff] %v2457_v40  ;;  %v2531_v33 = vadd.f32 %v2530_v48, %v2457_v40  ;;  %v2570_v63 = vmul.f32 %v2457_v40, %v2457_v40 }
 0x2d9   : > { %v2462_v41 = vpop.f32.mrf.mxu0 }
 0x2da   : > { %v2601_v18 = vadd.f32 %v2600_v1, %v2570_v63 }
 0x2db   : > { %v2346_v52 = vpop.f32.mrf.mxu3 }
 0x2dc   : > { %v2347_v10 = vadd.f32 %v2346_v52, %v2234_v24 }
 0x2de   : > { %v2460_v7 = vadd.f32 %v2459_v6, %v2347_v10  ;;  %v2236_v13 = vpop.f32.mrf.mxu2  ;;  %v2126_v46 = vpop.f32.mrf.mxu1 }
 0x2df   : > { %v2237_v0 = vadd.f32 %v2236_v13, %v2124_v32  ;;  %v2127_v58 = vadd.f32 %v2126_v46, %v3763_v11 }
 0x2e0   : > { %2501 = vst [vmem:[%s3776_s25 + $0xd8] sm:$0xff] %v2460_v7  ;;  %v2532_v38 = vadd.f32 %v2531_v33, %v2460_v7  ;;  %v2571_v56 = vmul.f32 %v2460_v7, %v2460_v7 }
 0x2e1   : > { %v2465_v4 = vpop.f32.mrf.mxu0 }
 0x2e2   : > { %v2602_v23 = vadd.f32 %v2601_v18, %v2571_v56 }
 0x2e3   : > { %v2349_v62 = vpop.f32.mrf.mxu3 }
 0x2e4   : > { %v2350_v51 = vadd.f32 %v2349_v62, %v2237_v0 }
 0x2e6   : > { %v2463_v35 = vadd.f32 %v2462_v41, %v2350_v51  ;;  %v2239_v25 = vpop.f32.mrf.mxu2  ;;  %v2129_v19 = vpop.f32.mrf.mxu1 }
 0x2e7   : > { %v2240_v8 = vadd.f32 %v2239_v25, %v2127_v58  ;;  %v2130_v53 = vadd.f32 %v2129_v19, %v3766_v27 }
 0x2e8   : > { %2502 = vst [vmem:[%s3776_s25 + $0xe0] sm:$0xff] %v2463_v35  ;;  %v2533_v9 = vadd.f32 %v2532_v38, %v2463_v35  ;;  %v2572_v54 = vmul.f32 %v2463_v35, %v2463_v35 }
 0x2e9   : > { %v2468_v61 = vpop.f32.mrf.mxu0 }
 0x2ea   : > { %v2603_v31 = vadd.f32 %v2602_v23, %v2572_v54 }
 0x2eb   : > { %v2352_v16 = vpop.f32.mrf.mxu3 }
 0x2ec   : > { %v2353_v29 = vadd.f32 %v2352_v16, %v2240_v8 }
 0x2ee   : > { %v2466_v39 = vadd.f32 %v2465_v4, %v2353_v29  ;;  %v2242_v47 = vpop.f32.mrf.mxu2  ;;  %v2132_v2 = vpop.f32.mrf.mxu1 }
 0x2ef   : > { %v2243_v11 = vadd.f32 %v2242_v47, %v2130_v53  ;;  %v2133_v12 = vadd.f32 %v2132_v2, %v3769_v14 }
 0x2f0   : > { %2503 = vst [vmem:[%s3776_s25 + $0xe8] sm:$0xff] %v2466_v39  ;;  %v2534_v30 = vadd.f32 %v2533_v9, %v2466_v39  ;;  %v2573_v42 = vmul.f32 %v2466_v39, %v2466_v39 }
 0x2f1   : > { %v2471_v15 = vpop.f32.mrf.mxu0 }
 0x2f2   : > { %v2604_v45 = vadd.f32 %v2603_v31, %v2573_v42 }
 0x2f3   : > { %v2355_v3 = vpop.f32.mrf.mxu3 }
 0x2f4   : > { %v2356_v17 = vadd.f32 %v2355_v3, %v2243_v11 }
 0x2f6   : > { %v2469_v50 = vadd.f32 %v2468_v61, %v2356_v17  ;;  %v2245_v49 = vpop.f32.mrf.mxu2 }
 0x2f7   : > { %v2246_v27 = vadd.f32 %v2245_v49, %v2133_v12 }
 0x2f8   : > { %2504 = vst [vmem:[%s3776_s25 + $0xf0] sm:$0xff] %v2469_v50  ;;  %v2535_v59 = vadd.f32 %v2534_v30, %v2469_v50  ;;  %v2574_v43 = vmul.f32 %v2469_v50, %v2469_v50 }
 0x2fa   : > { %v2605_v57 = vadd.f32 %v2604_v45, %v2574_v43 }
 0x2fb   : > { %v2358_v28 = vpop.f32.mrf.mxu3 }
 0x2fc   : > { %v2359_v22 = vadd.f32 %v2358_v28, %v2246_v27 }
 0x2fe   : > { %v2472_v44 = vadd.f32 %v2471_v15, %v2359_v22 }
 0x300   : > { %2505 = vst [vmem:[%s3776_s25 + $0xf8] sm:$0xff] %v2472_v44  ;;  %v2536_v60 = vadd.f32 %v2535_v59, %v2472_v44  ;;  %v2575_v20 = vmul.f32 %v2472_v44, %v2472_v44 }
 0x302   : > { %v2537_v48 = vrot.slane %v2536_v60, 4  ;;  %v2606_v5 = vadd.f32 %v2605_v57, %v2575_v20 }
 0x304   : > { %v2538_v26 = vadd.f32 %v2537_v48, %v2536_v60  ;;  %v2607_v1 = vrot.slane %v2606_v5, 4 }
 0x306   : > { %v2539_v14 = vrot.slane %v2538_v26, 2  ;;  %v2608_v21 = vadd.f32 %v2607_v1, %v2606_v5 }
 0x308   : > { %v2540_v6 = vadd.f32 %v2539_v14, %v2538_v26  ;;  %v2609_v36 = vrot.slane %v2608_v21, 2 }
 0x30a   : > { %v2541_v37 = vrot.slane %v2540_v6, 1  ;;  %v2610_v40 = vadd.f32 %v2609_v36, %v2608_v21 }
 0x30c   : > { %v2542_v34 = vadd.f32 %v2541_v37, %v2540_v6  ;;  %v2611_v55 = vrot.slane %v2610_v40, 1 }
 0x30e   : > { %2543 = vst [vmem:[%s235_s29] sm:$0x1] %v2542_v34  ;;  %v2612_v33 = vadd.f32 %v2611_v55, %v2610_v40 }
 0x310   : > { %2613 = vst [vmem:[%s235_s29 + $0x1] sm:$0x1] %v2612_v33 }
 0x311 PF: > { %s16_s18 = sadd.s32 1, %s2782_s18  }
 0x312   : > { %p13_p4 = scmp.ge.s32.totalorder %s16_s18, 4  }
 0x314   :  { %15 = sbr.rel (!%p13_p4) target bundleno = 1 (0x1), region = 81 }

</bundles_post_ra>
